<compile_context>
chip_gen: v7x
topology: tpu7x:2x2x1
jax: 0.10.0
libtpu: 0.0.40
codegen_flags: <defaults>
</compile_context>

<pallas_src>
import functools

import jax
import jax.numpy as jnp
from jax import lax
from jax.experimental import pallas as pl
from jax.experimental.pallas import tpu as pltpu


def _pick_row_tile(H, W, target_rows=256):
    """Largest divisor TH of H with TH*W <= max(target_rows, W)."""
    cap = max(target_rows, W)
    best = 1
    for th in range(1, H + 1):
        if H % th == 0 and th * W <= cap:
            best = th
    return best


def _scale_pred_kernel(xp_ref, w1_ref, bias1_ref, w2_ref, b2_ref, o_ref,
                       *, TH, W, C, C2, CO_PAD):
    """Fused 3x3 conv (BN folded) + LeakyReLU + 1x1 conv for one row tile.

    xp_ref   : (1, H+2, W+2, C)   bf16, spatially padded NHWC image (per batch)
    w1_ref   : (9, C, C2)         bf16, 3x3 weights (BN scale folded), tap-major (dy*3+dx)
    bias1_ref: (1, C2)            f32, folded BN bias
    w2_ref   : (C2, CO_PAD)       bf16, 1x1 weights (zero-padded cols)
    b2_ref   : (1, CO_PAD)        f32, 1x1 bias (zero-padded)
    o_ref    : (1, TH, W, CO_PAD) f32 output row tile
    """
    row0 = pl.program_id(1) * TH

    # 3x3 conv as 9 shifted pointwise matmuls, accumulated in f32 on the MXU.
    acc = jnp.zeros((TH * W, C2), jnp.float32)
    for dy in range(3):
        for dx in range(3):
            tap = xp_ref[0, pl.ds(row0 + dy, TH), dx:dx + W, :]     # (TH, W, C) bf16
            acc += jnp.dot(tap.reshape(TH * W, C), w1_ref[dy * 3 + dx],
                           preferred_element_type=jnp.float32)

    # Folded BN bias + LeakyReLU(0.1), in f32 on the VPU.
    y = acc + bias1_ref[0]
    y = jnp.where(y > 0, y, 0.1 * y)

    # 1x1 conv (pointwise matmul, lane-dense N) + bias.
    z = jnp.dot(y.astype(jnp.bfloat16), w2_ref[...],
                preferred_element_type=jnp.float32) + b2_ref[0]

    o_ref[0] = z.reshape(TH, W, CO_PAD)


def scale_prediction_pallas(x_nchw, w1_hwio, bn_gamma, bn_beta, bn_mean, bn_var,
                            w2_io, b2, *, num_classes, eps=1e-5, row_tile=None):
    B, C, H, W = x_nchw.shape
    C2 = 2 * C
    CO = (num_classes + 5) * 3
    CO_PAD = ((CO + 127) // 128) * 128
    TH = row_tile if row_tile is not None else _pick_row_tile(H, W)
    assert H % TH == 0

    # ---- glue (plain JAX): layout + parameter prep ----
    x_nhwc = jnp.transpose(x_nchw, (0, 2, 3, 1)).astype(jnp.bfloat16)
    x_pad = jnp.pad(x_nhwc, ((0, 0), (1, 1), (1, 1), (0, 0)))   # (B, H+2, W+2, C)

    # Fold eval-mode BN scale into the 3x3 conv weights; keep only the bias.
    scale = (bn_gamma / jnp.sqrt(bn_var + eps)).astype(jnp.float32)
    bias1 = (bn_beta - bn_mean * scale).astype(jnp.float32).reshape(1, C2)
    w1_folded = (w1_hwio.astype(jnp.float32) * scale[None, None, None, :])
    w1_folded = w1_folded.reshape(9, C, C2).astype(jnp.bfloat16)   # tap-major (dy,dx)

    # Lane-dense output: pad CO -> CO_PAD with zero weight columns / bias.
    w2_p = jnp.zeros((C2, CO_PAD), jnp.bfloat16).at[:, :CO].set(
        w2_io.astype(jnp.bfloat16))
    b2_p = jnp.zeros((1, CO_PAD), jnp.float32).at[0, :CO].set(
        b2.astype(jnp.float32))

    kernel = functools.partial(_scale_pred_kernel,
                               TH=TH, W=W, C=C, C2=C2, CO_PAD=CO_PAD)

    out_p = pl.pallas_call(
        kernel,
        out_shape=jax.ShapeDtypeStruct((B, H, W, CO_PAD), jnp.float32),
        grid_spec=pltpu.PrefetchScalarGridSpec(
            num_scalar_prefetch=0,
            grid=(B, H // TH),
            in_specs=[
                # Whole padded image per batch element; resident across row tiles.
                pl.BlockSpec((1, H + 2, W + 2, C), lambda b, r: (b, 0, 0, 0)),
                # Grid-invariant weights / biases.
                pl.BlockSpec((9, C, C2), lambda b, r: (0, 0, 0)),
                pl.BlockSpec((1, C2), lambda b, r: (0, 0)),
                pl.BlockSpec((C2, CO_PAD), lambda b, r: (0, 0)),
                pl.BlockSpec((1, CO_PAD), lambda b, r: (0, 0)),
            ],
            out_specs=pl.BlockSpec((1, TH, W, CO_PAD), lambda b, r: (b, r, 0, 0)),
        ),
        compiler_params=pltpu.CompilerParams(
            dimension_semantics=("parallel", "parallel"),
            vmem_limit_bytes=48 * 1024 * 1024),
    )(x_pad, w1_folded, bias1, w2_p, b2_p)

    # Drop channel padding; (B,H,W,CO) -> (B,H,W,3,nc+5) -> (B,3,H,W,nc+5)
    out = out_p[..., :CO].reshape(B, H, W, 3, num_classes + 5)
    return jnp.transpose(out, (0, 3, 1, 2, 4))


def scale_prediction_ref(x_nchw, w1_hwio, bn_gamma, bn_beta, bn_mean, bn_var,
                         w2_io, b2, *, num_classes, eps=1e-5):
    """Pure-JAX f32 reference (same eval-mode BN semantics)."""
    B, C, H, W = x_nchw.shape
    x = jnp.transpose(x_nchw, (0, 2, 3, 1)).astype(jnp.float32)
    y = lax.conv_general_dilated(
        x, w1_hwio.astype(jnp.float32), window_strides=(1, 1), padding="SAME",
        dimension_numbers=("NHWC", "HWIO", "NHWC"))
    scale = bn_gamma / jnp.sqrt(bn_var + eps)
    bias = bn_beta - bn_mean * scale
    y = y * scale + bias
    y = jnp.where(y > 0, y, 0.1 * y)
    z = jnp.einsum("bhwc,co->bhwo", y, w2_io.astype(jnp.float32)) + b2
    out = z.reshape(B, H, W, 3, num_classes + 5)
    return jnp.transpose(out, (0, 3, 1, 2, 4))


if __name__ == "__main__":
    num_classes = 1
    B, C, H, W = 2, 4, 16, 16
    C2 = 2 * C
    CO = (num_classes + 5) * 3

    key = jax.random.PRNGKey(0)
    k = jax.random.split(key, 8)
    x = jax.random.normal(k[0], (B, C, H, W), dtype=jnp.float32)           # NCHW
    w1 = jax.random.normal(k[1], (3, 3, C, C2), dtype=jnp.float32) * 0.1   # HWIO
    bn_gamma = 1.0 + 0.1 * jax.random.normal(k[2], (C2,), dtype=jnp.float32)
    bn_beta = 0.1 * jax.random.normal(k[3], (C2,), dtype=jnp.float32)
    bn_mean = 0.1 * jax.random.normal(k[4], (C2,), dtype=jnp.float32)
    bn_var = jnp.abs(jax.random.normal(k[5], (C2,), dtype=jnp.float32)) + 0.5
    w2 = jax.random.normal(k[6], (C2, CO), dtype=jnp.float32) * 0.1
    b2 = 0.1 * jax.random.normal(k[7], (CO,), dtype=jnp.float32)

    out = scale_prediction_pallas(x, w1, bn_gamma, bn_beta, bn_mean, bn_var,
                                  w2, b2, num_classes=num_classes)
    out = jax.block_until_ready(out)

    ref = scale_prediction_ref(x, w1, bn_gamma, bn_beta, bn_mean, bn_var,
                               w2, b2, num_classes=num_classes)
    assert out.shape == (B, 3, H, W, num_classes + 5), out.shape
    max_err = float(jnp.max(jnp.abs(out - ref)))
    # bf16 matmul operands with f32 accumulation -> relaxed tolerance vs f32 ref.
    assert jnp.allclose(out, ref, atol=3e-2, rtol=3e-2), f"max_err={max_err}"

    print("KERNEL_OK")
</pallas_src>

<mosaic_0001>
module attributes {stable_mosaic.version = 11 : i64} {
  func.func @_scale_pred_kernel(%arg0: i32, %arg1: i32, %arg2: memref<1x18x18x4xbf16, #tpu.memory_space<vmem>>, %arg3: memref<9x4x8xbf16, #tpu.memory_space<vmem>>, %arg4: memref<1x8xf32, #tpu.memory_space<vmem>>, %arg5: memref<8x128xbf16, #tpu.memory_space<vmem>>, %arg6: memref<1x128xf32, #tpu.memory_space<vmem>>, %arg7: memref<1x16x16x128xf32, #tpu.memory_space<vmem>>) attributes {dimension_semantics = [#tpu.dimension_semantics<parallel>, #tpu.dimension_semantics<parallel>], iteration_bounds = array<i64: 2, 1>, scalar_prefetch = 0 : i64, scratch_operands = 0 : i64, tpu.core_type = #tpu.core_type<tc>, window_params = [{transform_indices = @transform_0, window_bounds = array<i64: 1, 18, 18, 4>}, {pipeline_mode = #tpu.pipeline_mode<synchronous>, transform_indices = @transform_1, window_bounds = array<i64: 9, 4, 8>}, {pipeline_mode = #tpu.pipeline_mode<synchronous>, transform_indices = @transform_2, window_bounds = array<i64: 1, 8>}, {pipeline_mode = #tpu.pipeline_mode<synchronous>, transform_indices = @transform_3, window_bounds = array<i64: 8, 128>}, {pipeline_mode = #tpu.pipeline_mode<synchronous>, transform_indices = @transform_4, window_bounds = array<i64: 1, 128>}, {transform_indices = @transform_5, window_bounds = array<i64: 1, 16, 16, 128>}]} {
    %c16_i32 = arith.constant 16 : i32
    %0 = arith.muli %arg1, %c16_i32 : i32
    %cst = arith.constant 0.000000e+00 : f32
    %1 = vector.broadcast %cst : f32 to vector<256x8xf32>
    %c0_i32 = arith.constant 0 : i32
    %2 = arith.addi %0, %c0_i32 : i32
    %c0 = arith.constant 0 : index
    %3 = arith.index_cast %2 : i32 to index
    %c0_0 = arith.constant 0 : index
    %c0_1 = arith.constant 0 : index
    %4 = vector.load %arg2[%c0, %3, %c0_0, %c0_1] : memref<1x18x18x4xbf16, #tpu.memory_space<vmem>>, vector<1x16x16x4xbf16>
    %5 = vector.shape_cast %4 : vector<1x16x16x4xbf16> to vector<16x16x4xbf16>
    %6 = vector.shape_cast %5 : vector<16x16x4xbf16> to vector<256x4xbf16>
    %c0_2 = arith.constant 0 : index
    %c0_3 = arith.constant 0 : index
    %c0_4 = arith.constant 0 : index
    %7 = vector.load %arg3[%c0_2, %c0_3, %c0_4] : memref<9x4x8xbf16, #tpu.memory_space<vmem>>, vector<1x4x8xbf16>
    %8 = vector.shape_cast %7 : vector<1x4x8xbf16> to vector<4x8xbf16>
    %cst_5 = arith.constant dense<0.000000e+00> : vector<256x8xf32>
    %9 = tpu.matmul %6, %8, %cst_5 {dimension_numbers = #tpu.dot_dimension_numbers<[1], [0], [0], [1], [0, 0, 1, 1], [], []>} : vector<256x4xbf16>, vector<4x8xbf16>, vector<256x8xf32> -> vector<256x8xf32>
    %10 = arith.addf %1, %9 : vector<256x8xf32>
    %c0_i32_6 = arith.constant 0 : i32
    %11 = arith.addi %0, %c0_i32_6 : i32
    %c0_7 = arith.constant 0 : index
    %12 = arith.index_cast %11 : i32 to index
    %c1 = arith.constant 1 : index
    %c0_8 = arith.constant 0 : index
    %13 = vector.load %arg2[%c0_7, %12, %c1, %c0_8] : memref<1x18x18x4xbf16, #tpu.memory_space<vmem>>, vector<1x16x16x4xbf16>
    %14 = vector.shape_cast %13 : vector<1x16x16x4xbf16> to vector<16x16x4xbf16>
    %15 = vector.shape_cast %14 : vector<16x16x4xbf16> to vector<256x4xbf16>
    %c1_9 = arith.constant 1 : index
    %c0_10 = arith.constant 0 : index
    %c0_11 = arith.constant 0 : index
    %16 = vector.load %arg3[%c1_9, %c0_10, %c0_11] : memref<9x4x8xbf16, #tpu.memory_space<vmem>>, vector<1x4x8xbf16>
    %17 = vector.shape_cast %16 : vector<1x4x8xbf16> to vector<4x8xbf16>
    %cst_12 = arith.constant dense<0.000000e+00> : vector<256x8xf32>
    %18 = tpu.matmul %15, %17, %cst_12 {dimension_numbers = #tpu.dot_dimension_numbers<[1], [0], [0], [1], [0, 0, 1, 1], [], []>} : vector<256x4xbf16>, vector<4x8xbf16>, vector<256x8xf32> -> vector<256x8xf32>
    %19 = arith.addf %10, %18 : vector<256x8xf32>
    %c0_i32_13 = arith.constant 0 : i32
    %20 = arith.addi %0, %c0_i32_13 : i32
    %c0_14 = arith.constant 0 : index
    %21 = arith.index_cast %20 : i32 to index
    %c2 = arith.constant 2 : index
    %c0_15 = arith.constant 0 : index
    %22 = vector.load %arg2[%c0_14, %21, %c2, %c0_15] : memref<1x18x18x4xbf16, #tpu.memory_space<vmem>>, vector<1x16x16x4xbf16>
    %23 = vector.shape_cast %22 : vector<1x16x16x4xbf16> to vector<16x16x4xbf16>
    %24 = vector.shape_cast %23 : vector<16x16x4xbf16> to vector<256x4xbf16>
    %c2_16 = arith.constant 2 : index
    %c0_17 = arith.constant 0 : index
    %c0_18 = arith.constant 0 : index
    %25 = vector.load %arg3[%c2_16, %c0_17, %c0_18] : memref<9x4x8xbf16, #tpu.memory_space<vmem>>, vector<1x4x8xbf16>
    %26 = vector.shape_cast %25 : vector<1x4x8xbf16> to vector<4x8xbf16>
    %cst_19 = arith.constant dense<0.000000e+00> : vector<256x8xf32>
    %27 = tpu.matmul %24, %26, %cst_19 {dimension_numbers = #tpu.dot_dimension_numbers<[1], [0], [0], [1], [0, 0, 1, 1], [], []>} : vector<256x4xbf16>, vector<4x8xbf16>, vector<256x8xf32> -> vector<256x8xf32>
    %28 = arith.addf %19, %27 : vector<256x8xf32>
    %c1_i32 = arith.constant 1 : i32
    %29 = arith.addi %0, %c1_i32 : i32
    %c0_20 = arith.constant 0 : index
    %30 = arith.index_cast %29 : i32 to index
    %c0_21 = arith.constant 0 : index
    %c0_22 = arith.constant 0 : index
    %31 = vector.load %arg2[%c0_20, %30, %c0_21, %c0_22] : memref<1x18x18x4xbf16, #tpu.memory_space<vmem>>, vector<1x16x16x4xbf16>
    %32 = vector.shape_cast %31 : vector<1x16x16x4xbf16> to vector<16x16x4xbf16>
    %33 = vector.shape_cast %32 : vector<16x16x4xbf16> to vector<256x4xbf16>
    %c3 = arith.constant 3 : index
    %c0_23 = arith.constant 0 : index
    %c0_24 = arith.constant 0 : index
    %34 = vector.load %arg3[%c3, %c0_23, %c0_24] : memref<9x4x8xbf16, #tpu.memory_space<vmem>>, vector<1x4x8xbf16>
    %35 = vector.shape_cast %34 : vector<1x4x8xbf16> to vector<4x8xbf16>
    %cst_25 = arith.constant dense<0.000000e+00> : vector<256x8xf32>
    %36 = tpu.matmul %33, %35, %cst_25 {dimension_numbers = #tpu.dot_dimension_numbers<[1], [0], [0], [1], [0, 0, 1, 1], [], []>} : vector<256x4xbf16>, vector<4x8xbf16>, vector<256x8xf32> -> vector<256x8xf32>
    %37 = arith.addf %28, %36 : vector<256x8xf32>
    %c1_i32_26 = arith.constant 1 : i32
    %38 = arith.addi %0, %c1_i32_26 : i32
    %c0_27 = arith.constant 0 : index
    %39 = arith.index_cast %38 : i32 to index
    %c1_28 = arith.constant 1 : index
    %c0_29 = arith.constant 0 : index
    %40 = vector.load %arg2[%c0_27, %39, %c1_28, %c0_29] : memref<1x18x18x4xbf16, #tpu.memory_space<vmem>>, vector<1x16x16x4xbf16>
    %41 = vector.shape_cast %40 : vector<1x16x16x4xbf16> to vector<16x16x4xbf16>
    %42 = vector.shape_cast %41 : vector<16x16x4xbf16> to vector<256x4xbf16>
    %c4 = arith.constant 4 : index
    %c0_30 = arith.constant 0 : index
    %c0_31 = arith.constant 0 : index
    %43 = vector.load %arg3[%c4, %c0_30, %c0_31] : memref<9x4x8xbf16, #tpu.memory_space<vmem>>, vector<1x4x8xbf16>
    %44 = vector.shape_cast %43 : vector<1x4x8xbf16> to vector<4x8xbf16>
    %cst_32 = arith.constant dense<0.000000e+00> : vector<256x8xf32>
    %45 = tpu.matmul %42, %44, %cst_32 {dimension_numbers = #tpu.dot_dimension_numbers<[1], [0], [0], [1], [0, 0, 1, 1], [], []>} : vector<256x4xbf16>, vector<4x8xbf16>, vector<256x8xf32> -> vector<256x8xf32>
    %46 = arith.addf %37, %45 : vector<256x8xf32>
    %c1_i32_33 = arith.constant 1 : i32
    %47 = arith.addi %0, %c1_i32_33 : i32
    %c0_34 = arith.constant 0 : index
    %48 = arith.index_cast %47 : i32 to index
    %c2_35 = arith.constant 2 : index
    %c0_36 = arith.constant 0 : index
    %49 = vector.load %arg2[%c0_34, %48, %c2_35, %c0_36] : memref<1x18x18x4xbf16, #tpu.memory_space<vmem>>, vector<1x16x16x4xbf16>
    %50 = vector.shape_cast %49 : vector<1x16x16x4xbf16> to vector<16x16x4xbf16>
    %51 = vector.shape_cast %50 : vector<16x16x4xbf16> to vector<256x4xbf16>
    %c5 = arith.constant 5 : index
    %c0_37 = arith.constant 0 : index
    %c0_38 = arith.constant 0 : index
    %52 = vector.load %arg3[%c5, %c0_37, %c0_38] : memref<9x4x8xbf16, #tpu.memory_space<vmem>>, vector<1x4x8xbf16>
    %53 = vector.shape_cast %52 : vector<1x4x8xbf16> to vector<4x8xbf16>
    %cst_39 = arith.constant dense<0.000000e+00> : vector<256x8xf32>
    %54 = tpu.matmul %51, %53, %cst_39 {dimension_numbers = #tpu.dot_dimension_numbers<[1], [0], [0], [1], [0, 0, 1, 1], [], []>} : vector<256x4xbf16>, vector<4x8xbf16>, vector<256x8xf32> -> vector<256x8xf32>
    %55 = arith.addf %46, %54 : vector<256x8xf32>
    %c2_i32 = arith.constant 2 : i32
    %56 = arith.addi %0, %c2_i32 : i32
    %c0_40 = arith.constant 0 : index
    %57 = arith.index_cast %56 : i32 to index
    %c0_41 = arith.constant 0 : index
    %c0_42 = arith.constant 0 : index
    %58 = vector.load %arg2[%c0_40, %57, %c0_41, %c0_42] : memref<1x18x18x4xbf16, #tpu.memory_space<vmem>>, vector<1x16x16x4xbf16>
    %59 = vector.shape_cast %58 : vector<1x16x16x4xbf16> to vector<16x16x4xbf16>
    %60 = vector.shape_cast %59 : vector<16x16x4xbf16> to vector<256x4xbf16>
    %c6 = arith.constant 6 : index
    %c0_43 = arith.constant 0 : index
    %c0_44 = arith.constant 0 : index
    %61 = vector.load %arg3[%c6, %c0_43, %c0_44] : memref<9x4x8xbf16, #tpu.memory_space<vmem>>, vector<1x4x8xbf16>
    %62 = vector.shape_cast %61 : vector<1x4x8xbf16> to vector<4x8xbf16>
    %cst_45 = arith.constant dense<0.000000e+00> : vector<256x8xf32>
    %63 = tpu.matmul %60, %62, %cst_45 {dimension_numbers = #tpu.dot_dimension_numbers<[1], [0], [0], [1], [0, 0, 1, 1], [], []>} : vector<256x4xbf16>, vector<4x8xbf16>, vector<256x8xf32> -> vector<256x8xf32>
    %64 = arith.addf %55, %63 : vector<256x8xf32>
    %c2_i32_46 = arith.constant 2 : i32
    %65 = arith.addi %0, %c2_i32_46 : i32
    %c0_47 = arith.constant 0 : index
    %66 = arith.index_cast %65 : i32 to index
    %c1_48 = arith.constant 1 : index
    %c0_49 = arith.constant 0 : index
    %67 = vector.load %arg2[%c0_47, %66, %c1_48, %c0_49] : memref<1x18x18x4xbf16, #tpu.memory_space<vmem>>, vector<1x16x16x4xbf16>
    %68 = vector.shape_cast %67 : vector<1x16x16x4xbf16> to vector<16x16x4xbf16>
    %69 = vector.shape_cast %68 : vector<16x16x4xbf16> to vector<256x4xbf16>
    %c7 = arith.constant 7 : index
    %c0_50 = arith.constant 0 : index
    %c0_51 = arith.constant 0 : index
    %70 = vector.load %arg3[%c7, %c0_50, %c0_51] : memref<9x4x8xbf16, #tpu.memory_space<vmem>>, vector<1x4x8xbf16>
    %71 = vector.shape_cast %70 : vector<1x4x8xbf16> to vector<4x8xbf16>
    %cst_52 = arith.constant dense<0.000000e+00> : vector<256x8xf32>
    %72 = tpu.matmul %69, %71, %cst_52 {dimension_numbers = #tpu.dot_dimension_numbers<[1], [0], [0], [1], [0, 0, 1, 1], [], []>} : vector<256x4xbf16>, vector<4x8xbf16>, vector<256x8xf32> -> vector<256x8xf32>
    %73 = arith.addf %64, %72 : vector<256x8xf32>
    %c2_i32_53 = arith.constant 2 : i32
    %74 = arith.addi %0, %c2_i32_53 : i32
    %c0_54 = arith.constant 0 : index
    %75 = arith.index_cast %74 : i32 to index
    %c2_55 = arith.constant 2 : index
    %c0_56 = arith.constant 0 : index
    %76 = vector.load %arg2[%c0_54, %75, %c2_55, %c0_56] : memref<1x18x18x4xbf16, #tpu.memory_space<vmem>>, vector<1x16x16x4xbf16>
    %77 = vector.shape_cast %76 : vector<1x16x16x4xbf16> to vector<16x16x4xbf16>
    %78 = vector.shape_cast %77 : vector<16x16x4xbf16> to vector<256x4xbf16>
    %c8 = arith.constant 8 : index
    %c0_57 = arith.constant 0 : index
    %c0_58 = arith.constant 0 : index
    %79 = vector.load %arg3[%c8, %c0_57, %c0_58] : memref<9x4x8xbf16, #tpu.memory_space<vmem>>, vector<1x4x8xbf16>
    %80 = vector.shape_cast %79 : vector<1x4x8xbf16> to vector<4x8xbf16>
    %cst_59 = arith.constant dense<0.000000e+00> : vector<256x8xf32>
    %81 = tpu.matmul %78, %80, %cst_59 {dimension_numbers = #tpu.dot_dimension_numbers<[1], [0], [0], [1], [0, 0, 1, 1], [], []>} : vector<256x4xbf16>, vector<4x8xbf16>, vector<256x8xf32> -> vector<256x8xf32>
    %82 = arith.addf %73, %81 : vector<256x8xf32>
    %c0_60 = arith.constant 0 : index
    %c0_61 = arith.constant 0 : index
    %83 = vector.load %arg4[%c0_60, %c0_61] : memref<1x8xf32, #tpu.memory_space<vmem>>, vector<1x8xf32>
    %84 = vector.shape_cast %83 : vector<1x8xf32> to vector<8xf32>
    %85 = vector.shape_cast %84 : vector<8xf32> to vector<1x8xf32>
    %86 = vector.broadcast %85 : vector<1x8xf32> to vector<256x8xf32>
    %87 = arith.addf %82, %86 : vector<256x8xf32>
    %cst_62 = arith.constant 0.000000e+00 : f32
    %88 = vector.broadcast %cst_62 : f32 to vector<256x8xf32>
    %89 = arith.cmpf ogt, %87, %88 : vector<256x8xf32>
    %cst_63 = arith.constant 1.000000e-01 : f32
    %90 = vector.broadcast %cst_63 : f32 to vector<256x8xf32>
    %91 = arith.mulf %90, %87 : vector<256x8xf32>
    %92 = arith.select %89, %87, %91 : vector<256x8xi1>, vector<256x8xf32>
    %93 = arith.truncf %92 : vector<256x8xf32> to vector<256x8xbf16>
    %c0_64 = arith.constant 0 : index
    %c0_65 = arith.constant 0 : index
    %94 = vector.load %arg5[%c0_64, %c0_65] : memref<8x128xbf16, #tpu.memory_space<vmem>>, vector<8x128xbf16>
    %cst_66 = arith.constant dense<0.000000e+00> : vector<256x128xf32>
    %95 = tpu.matmul %93, %94, %cst_66 {dimension_numbers = #tpu.dot_dimension_numbers<[1], [0], [0], [1], [0, 0, 1, 1], [], []>} : vector<256x8xbf16>, vector<8x128xbf16>, vector<256x128xf32> -> vector<256x128xf32>
    %c0_67 = arith.constant 0 : index
    %c0_68 = arith.constant 0 : index
    %96 = vector.load %arg6[%c0_67, %c0_68] : memref<1x128xf32, #tpu.memory_space<vmem>>, vector<1x128xf32>
    %97 = vector.shape_cast %96 : vector<1x128xf32> to vector<128xf32>
    %98 = vector.shape_cast %97 : vector<128xf32> to vector<1x128xf32>
    %99 = vector.broadcast %98 : vector<1x128xf32> to vector<256x128xf32>
    %100 = arith.addf %95, %99 : vector<256x128xf32>
    %101 = vector.shape_cast %100 : vector<256x128xf32> to vector<16x16x128xf32>
    %c0_69 = arith.constant 0 : index
    %c0_70 = arith.constant 0 : index
    %c0_71 = arith.constant 0 : index
    %c0_72 = arith.constant 0 : index
    %102 = vector.load %arg7[%c0_69, %c0_70, %c0_71, %c0_72] : memref<1x16x16x128xf32, #tpu.memory_space<vmem>>, vector<1x16x16x128xf32>
    %103 = vector.shape_cast %102 : vector<1x16x16x128xf32> to vector<16x16x128xf32>
    %104 = vector.shape_cast %101 : vector<16x16x128xf32> to vector<1x16x16x128xf32>
    tpu.vector_store %arg7[%c0_69, %c0_70, %c0_71, %c0_72], %104 {strides = array<i32>} : memref<1x16x16x128xf32, #tpu.memory_space<vmem>>, vector<1x16x16x128xf32>,
    return
  }
  func.func @transform_0(%arg0: i32, %arg1: i32) -> (i32, i32, i32, i32) {
    %c0_i32 = arith.constant 0 : i32
    %c0_i32_0 = arith.constant 0 : i32
    %c0_i32_1 = arith.constant 0 : i32
    %c0_i32_2 = arith.constant 0 : i32
    return %arg0, %c0_i32, %c0_i32_0, %c0_i32_1 : i32, i32, i32, i32
  }
  func.func @transform_1(%arg0: i32, %arg1: i32) -> (i32, i32, i32) {
    %c0_i32 = arith.constant 0 : i32
    %c0_i32_0 = arith.constant 0 : i32
    %c0_i32_1 = arith.constant 0 : i32
    %c0_i32_2 = arith.constant 0 : i32
    return %c0_i32, %c0_i32_0, %c0_i32_1 : i32, i32, i32
  }
  func.func @transform_2(%arg0: i32, %arg1: i32) -> (i32, i32) {
    %c0_i32 = arith.constant 0 : i32
    %c0_i32_0 = arith.constant 0 : i32
    %c0_i32_1 = arith.constant 0 : i32
    return %c0_i32, %c0_i32_0 : i32, i32
  }
  func.func @transform_3(%arg0: i32, %arg1: i32) -> (i32, i32) {
    %c0_i32 = arith.constant 0 : i32
    %c0_i32_0 = arith.constant 0 : i32
    %c0_i32_1 = arith.constant 0 : i32
    return %c0_i32, %c0_i32_0 : i32, i32
  }
  func.func @transform_4(%arg0: i32, %arg1: i32) -> (i32, i32) {
    %c0_i32 = arith.constant 0 : i32
    %c0_i32_0 = arith.constant 0 : i32
    %c0_i32_1 = arith.constant 0 : i32
    return %c0_i32, %c0_i32_0 : i32, i32
  }
  func.func @transform_5(%arg0: i32, %arg1: i32) -> (i32, i32, i32, i32) {
    %c0_i32 = arith.constant 0 : i32
    %c0_i32_0 = arith.constant 0 : i32
    %c0_i32_1 = arith.constant 0 : i32
    return %arg0, %arg1, %c0_i32, %c0_i32_0 : i32, i32, i32, i32
  }
}

</mosaic_0001>

<bundles_post_ra>
// kernel: tpu_custom_call.1
= control target key start
LH: loop header
LB: loop body
LE: loop exit
PB: predicated region body
PF: predicated region fallthrough
CT: control target
= control target key end

     0   :  { %10 = vsyncpa [#allocation3], 0  ;;  %s8956_s0 = inlined_call_operand.vmem [shape: bf16[2,18,18,4], index: 0, kind: input, shape index: {}]   ;;  %s8957_s1 = inlined_call_operand.vmem [shape: bf16[9,4,8], index: 1, kind: input, shape index: {}]   ;;  %s8958_s2 = inlined_call_operand.vmem [shape: f32[1,8], index: 2, kind: input, shape index: {}]   ;;  %s8959_s3 = inlined_call_operand.vmem [shape: bf16[8,128], index: 3, kind: input, shape index: {}]   ;;  %s8960_s4 = inlined_call_operand.vmem [shape: f32[1,128], index: 4, kind: input, shape index: {}]   ;;  %s8961_s5 = inlined_call_operand.hbm [shape: f32[2,16,16,128], index: 5, kind: output, shape index: {}]  }
   0x1   :  { %12 = vsyncpa [#allocation3 + $0x1], 0  ;;  %s6927_s18 = smov 0   ;;  %s6929_s19 = smov 0  }
   0x2   :  { %s6931_s20 = smov 0   ;;  %s6933_s21 = smov 0  }
   0x3   :  { %s6935_s22 = smov 0   ;;  %s6937_s23 = smov 0  }
   0x4 LB: > { %s5313_s24 = sadd.s32 4294967295, %s6892_s23   ;;  %s5314_s25 = sadd.s32 4294967294, %s6892_s23   ;;  %s6892_s23 = sphi %s6937_s23, %s18_s23   ;;  %s6888_s22 = sphi %s6935_s22, %s9048_s22   ;;  %s6884_s21 = sphi %s6933_s21, %s9047_s21   ;;  %s6880_s20 = sphi %s6931_s20, %s9046_s20   ;;  %s6876_s19 = sphi %s6929_s19, %s9045_s19   ;;  %s6872_s18 = sphi %s6927_s18, %s9044_s18  }
   0x5   : > { %s30_s26 = sadd.s32 1, %s6888_s22  ;;  %s149_s27 = sadd.s32 1, %s6880_s20 }
   0x6   : > { %p32_p0 = scmp.ge.s32.totalorder %s30_s26, 2  ;;  %p159_p1 = scmp.ne.s32.totalorder %s6880_s20, %s6876_s19 }
   0x7   : > { %p160_p2 = scmp.eq.s32.totalorder %s5313_s24, 1  ;;  %p165_p3 = scmp.ne.s32.totalorder %s6876_s19, %s6872_s18 }
   0x8   : > { %s9050_s26 = smov (%p32_p0, %s30_s26), 0  ;;  %p166_p5 = scmp.eq.s32.totalorder %s5314_s25, 1 }
   0x9   : > { %p6967_p4 = por %p160_p2, %p159_p1  ;;  %s144_s29 = ssub.s32 %s6888_s22, %s9050_s26 }
   0xa   : > { %p5317_p6 = scmp.ge.s32.totalorder %s6892_s23, 1  ;;  %p147_p7 = scmp.eq.s32.totalorder %s144_s29, 0 }
   0xb   : > { %p6974_p8 = por %p166_p5, %p165_p3  ;;  %p204_p9 = scmp.lt.s32.totalorder %s6892_s23, 3 }
   0xc   : > { %s6980_s6 = scalar_select %p147_p7, %s6880_s20, %s149_s27  }
   0xd   : > { %p205_p10 = pnand %p5317_p6, %p204_p9 }
   0xf   : > { %208 = sbr.rel (%p205_p10) target bundleno = 885 (0x375), region = 40 }
  0x16   : > { %vm778_vm0 = vcmask 1041408   ;;  %v5547_v0 = vld [vmem:[%s8957_s1 + $0x8] sm:$0x3]  ;;  %v5320_v1 = vld [vmem:[%s8957_s1 + $0x2] sm:$0x3]  ;;  %p232_p11 = scmp.lt.s32.totalorder %s6884_s21, 1 }
  0x17   : > { %6650 = vmatprep.subr.msk.bf16.mxu0 %vm778_vm0, %v5547_v0  ;;  %6646 = vmatprep.subr.msk.bf16.mxu1 %vm778_vm0, %v5320_v1  ;;  %v2585_v2 = vsel %vm778_vm0, %v5547_v0, 0  ;;  %v780_v3 = vsel %vm778_vm0, %v5320_v1, 0  ;;  %v6997_v4 = vld [vmem:[%s8957_s1 + $0xa] sm:$0x3]  ;;  %vm292_vm1 = vsmask.f32 3328 }
  0x18   : > { %6187 = vmatpush3.bf16.msra.mxu0 %v2585_v2  ;;  %6051 = vmatpush3.bf16.msra.mxu1 %v780_v3  ;;  %s233_s11 = scalar_select %p232_p11, %s6884_s21, 1  ;;  %vm293_vm2 = vsmask.f32 7440  ;;  %v8980_v29 = vmov 0  ;;  %vm729_vm4 = vcmask 31744   ;;  %v7045_v60 = vsel %vm778_vm0, %v6997_v4, 0 }
  0x19   : > { %6651 = vmatprep.subr.msk.bf16.mxu0 %vm778_vm0, %v6997_v4  ;;  %vm7022_vm3 = vmor %vm292_vm1, %vm293_vm2  ;;  %vm1283_vm5 = vcmask 1042432   ;;  %vm1284_vm6 = vcmask 1046532   ;;  %vm5016_vm8 = vcmask 1043456   ;;  %vm4967_vm13 = vcmask 64512   ;;  %s229_s25 = sand.u32 1, %s6876_s19   ;;  %s5879_s9 = sshll.u32 %s6884_s21, 12 }
  0x1a   : > { %s6656_s14 = smul.u32 216, %s233_s11  ;;  %v8981_v29 = vsel %vm7022_vm3, 4294967295, %v8980_v29  ;;  %vm7434_vm7 = vmor %vm1283_vm5, %vm1284_vm6  ;;  %s5318_s27 = sshll.u32 %s229_s25, 8 }
  0x1b   : > { %8982 = vst [vmem:[#allocation5_spill] sm:$0xff] %v8981_v29  ;;  %s8835_s8 = scalar_lea.vmem [#allocation2], %s5318_s27  ;;  %s8900_s13 = scalar_lea.hbm %s8961_s5, %s5879_s9 }
  0x1c   : > { %s7004_s17 = scalar_lea.vmem %s8956_s0, %s6656_s14  ;;  %s5230_s10 = sshll.u32 %s8835_s8, 4  ;;  %s8902_s10 = int_to_ptr.vmem [resolvable:$true] %s5230_s10 }
  0x1d   : > { %v243_v5 = vld [vmem:[%s7004_s17] sm:$0xf]  ;;  %v244_v6 = vld [vmem:[%s7004_s17 + $0x4] sm:$0xf]  ;;  %v276_v7 = vld [vmem:[%s7004_s17 + $0x8] sm:$0x1] }
  0x1e   : > { %v296_v8 = vshrl.u32 %v243_v5, 16  ;;  %v299_v9 = vshll.u32 %v243_v5, 16  ;;  %v305_v10 = vshll.u32 %v244_v6, 16  ;;  %v309_v11 = vshrl.u32 %v244_v6, 16  ;;  %v5499_v12 = vld [vmem:[%s7004_s17 + $0xc] sm:$0xf] }
  0x1f   : > { %v315_v13 = vshll.u32 %v276_v7, 16  ;;  %v7011_v14 = vld [vmem:[%s7004_s17 + $0x10] sm:$0xf]  ;;  %v7014_v15 = vld [vmem:[%s7004_s17 + $0x14] sm:$0x1]  ;;  %v2103_v21 = vshrl.u32 %v5499_v12, 16 }
  0x20   : > { %v298_v16 = vrot.slane %v296_v8, 4  ;;  %v301_v17 = vrot.slane %v299_v9, 5  ;;  %v307_v18 = vrot.slane %v305_v10, 5  ;;  %v311_v19 = vrot.slane %v309_v11, 4  ;;  %v245_v28 = vld [vmem:[%s7004_s17 + $0xc] sm:$0xf] }
  0x21   : > { %v317_v20 = vrot.slane %v315_v13, 5  ;;  %v2106_v22 = vshll.u32 %v5499_v12, 16  ;;  %v2112_v23 = vshll.u32 %v7011_v14, 16  ;;  %v2116_v26 = vshrl.u32 %v7011_v14, 16  ;;  %v246_v33 = vld [vmem:[%s7004_s17 + $0x10] sm:$0xf] }
  0x22   : > { %v302_v24 = vor.u32 %v301_v17, %v298_v16  ;;  %v312_v25 = vor.u32 %v311_v19, %v307_v18  ;;  %v2122_v27 = vshll.u32 %v7014_v15, 16  ;;  %v2105_v30 = vrot.slane %v2103_v21, 4  ;;  %v277_v39 = vld [vmem:[%s7004_s17 + $0x14] sm:$0x1]  ;;  %v5502_v50 = vld [vmem:[%s7004_s17 + $0x18] sm:$0xf] }
  0x23   : > { %v2108_v31 = vrot.slane %v2106_v22, 5  ;;  %v2114_v32 = vrot.slane %v2112_v23, 5  ;;  %v2118_v36 = vrot.slane %v2116_v26, 4  ;;  %v320_v40 = vshrl.u32 %v245_v28, 16  ;;  %v7034_v55 = vld [vmem:[%s7004_s17 + $0x1c] sm:$0xf] }
  0x24   : > { %v303_v34 = vrot.slane %v302_v24, 4  ;;  %v313_v35 = vrot.slane %v312_v25, 4  ;;  %v2124_v38 = vrot.slane %v2122_v27, 5  ;;  %v323_v41 = vshll.u32 %v245_v28, 16  ;;  %v7041_v59 = vld [vmem:[%s7004_s17 + $0x20] sm:$0x1] }
  0x25   : > { %v2109_v37 = vor.u32 %v2108_v31, %v2105_v30  ;;  %v2119_v44 = vor.u32 %v2118_v36, %v2114_v32  ;;  %v329_v45 = vshll.u32 %v246_v33, 16  ;;  %v322_v48 = vrot.slane %v320_v40, 4  ;;  %v247_v9 = vld [vmem:[%s7004_s17 + $0x18] sm:$0xf]  ;;  %v248_v16 = vld [vmem:[%s7004_s17 + $0x1c] sm:$0xf] }
  0x26   : > { %v308_v42 = vsel %vm7022_vm3, %v303_v34, %v307_v18  ;;  %v318_v43 = vsel %vm7022_vm3, %v313_v35, %v317_v20  ;;  %v325_v49 = vrot.slane %v323_v41, 5  ;;  %v333_v53 = vshrl.u32 %v246_v33, 16  ;;  %v278_v23 = vld [vmem:[%s7004_s17 + $0x20] sm:$0x1]  ;;  %v5505_v31 = vld [vmem:[%s7004_s17 + $0x24] sm:$0xf] }
  0x27   : > { %v5321_v46 = vcombine.low %v308_v42, %v318_v43  ;;  %v2110_v47 = vrot.slane %v2109_v37, 4  ;;  %v2120_v51 = vrot.slane %v2119_v44, 4  ;;  %v331_v52 = vrot.slane %v329_v45, 5  ;;  %v5506_v36 = vld [vmem:[%s7004_s17 + $0x28] sm:$0xf]  ;;  %s8910_s21 = scalar_lea.sflag [#allocation3], %s229_s25 }
  0x28   : > { %v339_v54 = vshll.u32 %v277_v39, 16  ;;  %v326_v58 = vor.u32 %v325_v49, %v322_v48  ;;  %v335_v62 = vrot.slane %v333_v53, 4  ;;  %v2127_v0 = vshrl.u32 %v5502_v50, 16  ;;  %v5507_v43 = vld [vmem:[%s7004_s17 + $0x2c] sm:$0x1]  ;;  %s6814_s14 = scalar_lea.vmem %s8902_s10, 4096 }
  0x29   : > { %6052 = vmatprep.mubr.msk.bf16.mxu1 %vm729_vm4, %v5321_v46  ;;  %v2115_v56 = vsel %vm7022_vm3, %v2110_v47, %v2114_v32  ;;  %v2125_v61 = vsel %vm7022_vm3, %v2120_v51, %v2124_v38  ;;  %v2130_v3 = vshll.u32 %v5502_v50, 16  ;;  %v2136_v5 = vshll.u32 %v7034_v55, 16  ;;  %v249_v50 = vld [vmem:[%s7004_s17 + $0x24] sm:$0xf]  ;;  %p6815_p12 = scmp.ne.s32.totalorder %s8902_s10, %s6814_s14  ;;  %s6894_s15 = smov [#allocation2]  }
  0x2a   : > { %v341_v63 = vrot.slane %v339_v54, 5  ;;  %v5548_v1 = vcombine.low %v2115_v56, %v2125_v61  ;;  %v327_v2 = vrot.slane %v326_v58, 4  ;;  %v336_v6 = vor.u32 %v335_v62, %v331_v52  ;;  %v250_v56 = vld [vmem:[%s7004_s17 + $0x28] sm:$0xf]  ;;  %s6818_s16 = sshll.u32 %s6894_s15, 4  ;;  %s6819_s16 = int_to_ptr.vmem [resolvable:$false] %s6818_s16 }
  0x2b   : > { %v2129_v7 = vrot.slane %v2127_v0, 4  ;;  %v2140_v8 = vshrl.u32 %v7034_v55, 16  ;;  %v2146_v4 = vshll.u32 %v7041_v59, 16  ;;  %v2132_v12 = vrot.slane %v2130_v3, 5  ;;  %p6816_p13 = pnand %p6815_p12, %p6967_p4  ;;  %p6821_p1 = scmp.lt.s32.totalorder %s8902_s10, %s6819_s16 }
  0x2c   : > { %6188 = vmatprep.mubr.msk.bf16.mxu0 %vm729_vm4, %v5548_v1  ;;  %v332_v11 = vsel %vm7022_vm3, %v327_v2, %v331_v52  ;;  %v2138_v13 = vrot.slane %v2136_v5, 5  ;;  %v337_v17 = vrot.slane %v336_v6, 4  ;;  %v2853_v20 = vrot.slane %v7034_v55, 5  ;;  %v279_v2 = vld [vmem:[%s7004_s17 + $0x2c] sm:$0x1] }
  0x2d   : > { %v2142_v18 = vrot.slane %v2140_v8, 4  ;;  %v2148_v19 = vrot.slane %v2146_v4, 5  ;;  %v2133_v21 = vor.u32 %v2132_v12, %v2129_v7  ;;  %v344_v24 = vshrl.u32 %v247_v9, 16  ;;  %p6817_p0 = pneg %p6816_p13 }
  0x2e   : > { %v347_v25 = vshll.u32 %v247_v9, 16  ;;  %v342_v26 = vsel %vm7022_vm3, %v337_v17, %v341_v63  ;;  %v353_v28 = vshll.u32 %v248_v16, 16  ;;  %v357_v30 = vshrl.u32 %v248_v16, 16  ;;  %v5508_v9 = vld [vmem:[%s7004_s17 + $0x30] sm:$0xf] }
  0x2f   : > { %v2143_v27 = vor.u32 %v2142_v18, %v2138_v13  ;;  %v5322_v32 = vcombine.low %v332_v11, %v342_v26  ;;  %v2134_v33 = vrot.slane %v2133_v21, 4  ;;  %v346_v34 = vrot.slane %v344_v24, 4  ;;  %v5509_v17 = vld [vmem:[%s7004_s17 + $0x34] sm:$0xf] }
  0x30   : > { %v349_v35 = vrot.slane %v347_v25, 5  ;;  %v355_v38 = vrot.slane %v353_v28, 5  ;;  %v359_v39 = vrot.slane %v357_v30, 4  ;;  %v363_v40 = vshll.u32 %v278_v23, 16  ;;  %v5510_v25 = vld [vmem:[%s7004_s17 + $0x38] sm:$0x1] }
  0x31   : > { %v2144_v37 = vrot.slane %v2143_v27, 4  ;;  %6053 = vmatmul.mubr.msk.bf16.vlgmr.msra.gmra.mrb[0].mxu1 %vm729_vm4, %v5322_v32  ;;  %v2139_v41 = vsel %vm7022_vm3, %v2134_v33, %v2138_v13  ;;  %v2151_v44 = vshrl.u32 %v5505_v31, 16  ;;  %v2154_v45 = vshll.u32 %v5505_v31, 16 }
  0x32   : > { %v350_v42 = vor.u32 %v349_v35, %v346_v34  ;;  %v360_v47 = vor.u32 %v359_v39, %v355_v38  ;;  %v365_v48 = vrot.slane %v363_v40, 5  ;;  %v2160_v49 = vshll.u32 %v5506_v36, 16 }
  0x33   : > { %v2149_v46 = vsel %vm7022_vm3, %v2144_v37, %v2148_v19  ;;  %v2153_v53 = vrot.slane %v2151_v44, 4  ;;  %v2156_v54 = vrot.slane %v2154_v45, 5  ;;  %v2164_v62 = vshrl.u32 %v5506_v36, 16  ;;  %v251_v37 = vld [vmem:[%s7004_s17 + $0x30] sm:$0xf] }
  0x34   : > { %v5549_v51 = vcombine.low %v2139_v41, %v2149_v46  ;;  %v351_v52 = vrot.slane %v350_v42, 4  ;;  %v361_v58 = vrot.slane %v360_v47, 4  ;;  %v2162_v61 = vrot.slane %v2160_v49, 5  ;;  %v252_v42 = vld [vmem:[%s7004_s17 + $0x34] sm:$0xf] }
  0x35   : > { %v2170_v63 = vshll.u32 %v5507_v43, 16  ;;  %v2157_v1 = vor.u32 %v2156_v54, %v2153_v53  ;;  %v368_v3 = vshrl.u32 %v249_v50, 16  ;;  %v371_v5 = vshll.u32 %v249_v50, 16  ;;  %v280_v47 = vld [vmem:[%s7004_s17 + $0x38] sm:$0x1] }
  0x36   : > { %6189 = vmatmul.mubr.msk.bf16.vlgmr.msra.gmra.mrb[0].mxu0 %vm729_vm4, %v5549_v51  ;;  %v356_v0 = vsel %vm7022_vm3, %v351_v52, %v355_v38  ;;  %v366_v6 = vsel %vm7022_vm3, %v361_v58, %v365_v48  ;;  %v2166_v7 = vrot.slane %v2164_v62, 4  ;;  %v377_v4 = vshll.u32 %v250_v56, 16  ;;  %v5511_v58 = vld [vmem:[%s7004_s17 + $0x3c] sm:$0xf] }
  0x37   : > { %6221 = vmatpush3.bf16.msra.mxu0 %v7045_v60  ;;  %v2172_v8 = vrot.slane %v2170_v63, 5  ;;  %v5323_v11 = vcombine.low %v356_v0, %v366_v6  ;;  %v2158_v12 = vrot.slane %v2157_v1, 4  ;;  %v370_v13 = vrot.slane %v368_v3, 4  ;;  %v5512_v1 = vld [vmem:[%s7004_s17 + $0x40] sm:$0xf] }
  0x38   : > { %v373_v16 = vrot.slane %v371_v5, 5  ;;  %v2167_v18 = vor.u32 %v2166_v7, %v2162_v61  ;;  %v379_v19 = vrot.slane %v377_v4, 5  ;;  %v381_v21 = vshrl.u32 %v250_v56, 16 }
  0x39   : > { %v387_v23 = vshll.u32 %v279_v2, 16  ;;  %6056 = vmatprep.mubr.msk.bf16.mxu1 %vm729_vm4, %v5323_v11  ;;  %v2163_v60 = vsel %vm7022_vm3, %v2158_v12, %v2162_v61  ;;  %v2175_v26 = vshrl.u32 %v5508_v9, 16  ;;  %v2178_v27 = vshll.u32 %v5508_v9, 16  ;;  %v5513_v9 = vld [vmem:[%s7004_s17 + $0x44] sm:$0x1] }
  0x3a   : > { %v374_v24 = vor.u32 %v373_v16, %v370_v13  ;;  %v2168_v28 = vrot.slane %v2167_v18, 4  ;;  %v383_v30 = vrot.slane %v381_v21, 4  ;;  %v2184_v32 = vshll.u32 %v5509_v17, 16  ;;  %v253_v18 = vld [vmem:[%s7004_s17 + $0x3c] sm:$0xf] }
  0x3b   : > { %v389_v31 = vrot.slane %v387_v23, 5  ;;  %v2177_v34 = vrot.slane %v2175_v26, 4  ;;  %v2180_v35 = vrot.slane %v2178_v27, 5  ;;  %v2188_v36 = vshrl.u32 %v5509_v17, 16 }
  0x3c   : > { %v375_v33 = vrot.slane %v374_v24, 4  ;;  %v2173_v38 = vsel %vm7022_vm3, %v2168_v28, %v2172_v8  ;;  %v384_v39 = vor.u32 %v383_v30, %v379_v19  ;;  %v2186_v40 = vrot.slane %v2184_v32, 5  ;;  %v254_v24 = vld [vmem:[%s7004_s17 + $0x40] sm:$0xf] }
  0x3d   : > { %v2194_v41 = vshll.u32 %v5510_v25, 16  ;;  %v5550_v43 = vcombine.low %v2163_v60, %v2173_v38  ;;  %v2181_v45 = vor.u32 %v2180_v35, %v2177_v34  ;;  %v2190_v46 = vrot.slane %v2188_v36, 4 }
  0x3e   : > { %v380_v44 = vsel %vm7022_vm3, %v375_v33, %v379_v19  ;;  %v385_v48 = vrot.slane %v384_v39, 4  ;;  %v392_v50 = vshrl.u32 %v251_v37, 16  ;;  %v395_v51 = vshll.u32 %v251_v37, 16  ;;  %v281_v37 = vld [vmem:[%s7004_s17 + $0x44] sm:$0x1] }
  0x3f   : > { %v2196_v49 = vrot.slane %v2194_v41, 5  ;;  %6192 = vmatprep.mubr.msk.bf16.mxu0 %vm729_vm4, %v5550_v43  ;;  %v2182_v52 = vrot.slane %v2181_v45, 4  ;;  %v2191_v53 = vor.u32 %v2190_v46, %v2186_v40  ;;  %v401_v54 = vshll.u32 %v252_v42, 16  ;;  %v5514_v39 = vld [vmem:[%s7004_s17 + $0x48] sm:$0xf] }
  0x40   : > { %v405_v56 = vshrl.u32 %v252_v42, 16  ;;  %v390_v61 = vsel %vm7022_vm3, %v385_v48, %v389_v31  ;;  %v394_v62 = vrot.slane %v392_v50, 4  ;;  %v397_v63 = vrot.slane %v395_v51, 5 }
  0x41   : > { %v411_v0 = vshll.u32 %v280_v47, 16  ;;  %v5324_v2 = vcombine.low %v380_v44, %v390_v61  ;;  %v2187_v3 = vsel %vm7022_vm3, %v2182_v52, %v2186_v40  ;;  %v2192_v5 = vrot.slane %v2191_v53, 4  ;;  %v5515_v44 = vld [vmem:[%s7004_s17 + $0x4c] sm:$0xf] }
  0x42   : > { %v403_v6 = vrot.slane %v401_v54, 5  ;;  %v398_v7 = vor.u32 %v397_v63, %v394_v62  ;;  %v407_v8 = vrot.slane %v405_v56, 4  ;;  %v2199_v11 = vshrl.u32 %v5511_v58, 16  ;;  %v5516_v56 = vld [vmem:[%s7004_s17 + $0x50] sm:$0x1] }
  0x43   : > { %v413_v4 = vrot.slane %v411_v0, 5  ;;  %6057 = vmatmul.mubr.msk.bf16.gmra.mrb[4].mxu1 %vm729_vm4, %v5324_v2  ;;  %v2197_v12 = vsel %vm7022_vm3, %v2192_v5, %v2196_v49  ;;  %v2202_v13 = vshll.u32 %v5511_v58, 16  ;;  %v2208_v16 = vshll.u32 %v5512_v1, 16  ;;  %v255_v62 = vld [vmem:[%s7004_s17 + $0x48] sm:$0xf] }
  0x44   : > { %v2212_v17 = vshrl.u32 %v5512_v1, 16  ;;  %v5551_v19 = vcombine.low %v2187_v3, %v2197_v12  ;;  %v399_v21 = vrot.slane %v398_v7, 4  ;;  %v408_v23 = vor.u32 %v407_v8, %v403_v6  ;;  %v256_v3 = vld [vmem:[%s7004_s17 + $0x4c] sm:$0xf]  ;;  %v282_v12 = vld [vmem:[%s7004_s17 + $0x50] sm:$0x1] }
  0x45   : > { %v2201_v60 = vrot.slane %v2199_v11, 4  ;;  %v2204_v25 = vrot.slane %v2202_v13, 5  ;;  %v2210_v26 = vrot.slane %v2208_v16, 5  ;;  %v2218_v28 = vshll.u32 %v5513_v9, 16 }
  0x46   : > { %v2214_v27 = vrot.slane %v2212_v17, 4  ;;  %6193 = vmatmul.mubr.msk.bf16.gmra.mrb[4].mxu0 %vm729_vm4, %v5551_v19  ;;  %v404_v30 = vsel %vm7022_vm3, %v399_v21, %v403_v6  ;;  %v409_v31 = vrot.slane %v408_v23, 4  ;;  %v416_v32 = vshrl.u32 %v253_v18, 16  ;;  %v5517_v21 = vld [vmem:[%s7004_s17 + $0x54] sm:$0xf] }
  0x47   : > { %v419_v33 = vshll.u32 %v253_v18, 16  ;;  %v2205_v34 = vor.u32 %v2204_v25, %v2201_v60  ;;  %v2220_v36 = vrot.slane %v2218_v28, 5  ;;  %v425_v38 = vshll.u32 %v254_v24, 16 }
  0x48   : > { %v2215_v35 = vor.u32 %v2214_v27, %v2210_v26  ;;  %v414_v40 = vsel %vm7022_vm3, %v409_v31, %v413_v4  ;;  %v418_v41 = vrot.slane %v416_v32, 4  ;;  %v429_v43 = vshrl.u32 %v254_v24, 16  ;;  %v5518_v31 = vld [vmem:[%s7004_s17 + $0x58] sm:$0xf] }
  0x49   : > { %v421_v42 = vrot.slane %v419_v33, 5  ;;  %v5325_v45 = vcombine.low %v404_v30, %v414_v40  ;;  %v2206_v46 = vrot.slane %v2205_v34, 4  ;;  %v427_v48 = vrot.slane %v425_v38, 5 }
  0x4a   : > { %v2216_v47 = vrot.slane %v2215_v35, 4  ;;  %v431_v50 = vrot.slane %v429_v43, 4  ;;  %v435_v51 = vshll.u32 %v281_v37, 16  ;;  %v2223_v52 = vshrl.u32 %v5514_v39, 16 }
  0x4b   : > { %v422_v49 = vor.u32 %v421_v42, %v418_v41  ;;  %6060 = vmatprep.mubr.msk.bf16.mxu1 %vm729_vm4, %v5325_v45  ;;  %v2211_v53 = vsel %vm7022_vm3, %v2206_v46, %v2210_v26  ;;  %v2226_v58 = vshll.u32 %v5514_v39, 16  ;;  %v2232_v61 = vshll.u32 %v5515_v44, 16  ;;  %v5519_v39 = vld [vmem:[%s7004_s17 + $0x5c] sm:$0x1]  ;;  %v257_v45 = vld [vmem:[%s7004_s17 + $0x54] sm:$0xf] }
  0x4c   : > { %v2221_v54 = vsel %vm7022_vm3, %v2216_v47, %v2220_v36  ;;  %v432_v1 = vor.u32 %v431_v50, %v427_v48  ;;  %v437_v2 = vrot.slane %v435_v51, 5  ;;  %v2225_v5 = vrot.slane %v2223_v52, 4  ;;  %v258_v50 = vld [vmem:[%s7004_s17 + $0x58] sm:$0xf] }
  0x4d   : > { %v5552_v63 = vcombine.low %v2211_v53, %v2221_v54  ;;  %v423_v0 = vrot.slane %v422_v49, 4  ;;  %v2228_v6 = vrot.slane %v2226_v58, 5  ;;  %v2234_v7 = vrot.slane %v2232_v61, 5 }
  0x4e   : > { %v2236_v8 = vshrl.u32 %v5515_v44, 16  ;;  %v433_v9 = vrot.slane %v432_v1, 4  ;;  %v2242_v11 = vshll.u32 %v5516_v56, 16  ;;  %v440_v13 = vshrl.u32 %v255_v62, 16 }
  0x4f   : > { %6196 = vmatprep.mubr.msk.bf16.mxu0 %vm729_vm4, %v5552_v63  ;;  %v428_v4 = vsel %vm7022_vm3, %v423_v0, %v427_v48  ;;  %v2229_v16 = vor.u32 %v2228_v6, %v2225_v5  ;;  %v443_v18 = vshll.u32 %v255_v62, 16  ;;  %v449_v19 = vshll.u32 %v256_v3, 16  ;;  %v283_v62 = vld [vmem:[%s7004_s17 + $0x5c] sm:$0x1]  ;;  %v5520_v5 = vld [vmem:[%s7004_s17 + $0x60] sm:$0xf] }
  0x50   : > { %v2238_v17 = vrot.slane %v2236_v8, 4  ;;  %v438_v23 = vsel %vm7022_vm3, %v433_v9, %v437_v2  ;;  %v2244_v60 = vrot.slane %v2242_v11, 5  ;;  %v442_v24 = vrot.slane %v440_v13, 4  ;;  %v5521_v9 = vld [vmem:[%s7004_s17 + $0x64] sm:$0xf] }
  0x51   : > { %v453_v25 = vshrl.u32 %v256_v3, 16  ;;  %v5326_v26 = vcombine.low %v428_v4, %v438_v23  ;;  %v2230_v27 = vrot.slane %v2229_v16, 4  ;;  %v445_v30 = vrot.slane %v443_v18, 5 }
  0x52   : > { %v2239_v28 = vor.u32 %v2238_v17, %v2234_v7  ;;  %v451_v32 = vrot.slane %v449_v19, 5  ;;  %v459_v34 = vshll.u32 %v282_v12, 16  ;;  %v2247_v35 = vshrl.u32 %v5517_v21, 16  ;;  %v5522_v19 = vld [vmem:[%s7004_s17 + $0x68] sm:$0x1] }
  0x53   : > { %v455_v33 = vrot.slane %v453_v25, 4  ;;  %6061 = vmatmul.mubr.msk.bf16.gmra.mrb[8].mxu1 %vm729_vm4, %v5326_v26  ;;  %v2235_v36 = vsel %vm7022_vm3, %v2230_v27, %v2234_v7  ;;  %v446_v38 = vor.u32 %v445_v30, %v442_v24  ;;  %v2250_v40 = vshll.u32 %v5517_v21, 16  ;;  %v259_v27 = vld [vmem:[%s7004_s17 + $0x60] sm:$0xf] }
  0x54   : > { %v2240_v37 = vrot.slane %v2239_v28, 4  ;;  %v461_v42 = vrot.slane %v459_v34, 5  ;;  %v2249_v43 = vrot.slane %v2247_v35, 4  ;;  %v2256_v44 = vshll.u32 %v5518_v31, 16 }
  0x55   : > { %v456_v41 = vor.u32 %v455_v33, %v451_v32  ;;  %v447_v47 = vrot.slane %v446_v38, 4  ;;  %v2252_v48 = vrot.slane %v2250_v40, 5  ;;  %v2260_v49 = vshrl.u32 %v5518_v31, 16  ;;  %v7154_v33 = vld [vmem:[%s7004_s17 + $0x64] sm:$0xf] }
  0x56   : > { %v2245_v46 = vsel %vm7022_vm3, %v2240_v37, %v2244_v60  ;;  %v2258_v53 = vrot.slane %v2256_v44, 5  ;;  %v2266_v54 = vshll.u32 %v5519_v39, 16  ;;  %v464_v63 = vshrl.u32 %v257_v45, 16  ;;  %v284_v44 = vld [vmem:[%s7004_s17 + $0x68] sm:$0x1] }
  0x57   : > { %v5553_v51 = vcombine.low %v2235_v36, %v2245_v46  ;;  %v457_v52 = vrot.slane %v456_v41, 4  ;;  %v452_v56 = vsel %vm7022_vm3, %v447_v47, %v451_v32  ;;  %v2253_v58 = vor.u32 %v2252_v48, %v2249_v43 }
  0x58   : > { %v2262_v61 = vrot.slane %v2260_v49, 4  ;;  %v2268_v1 = vrot.slane %v2266_v54, 5  ;;  %v467_v2 = vshll.u32 %v257_v45, 16  ;;  %v473_v3 = vshll.u32 %v258_v50, 16 }
  0x59   : > { %6197 = vmatmul.mubr.msk.bf16.gmra.mrb[8].mxu0 %vm729_vm4, %v5553_v51  ;;  %v462_v0 = vsel %vm7022_vm3, %v457_v52, %v461_v42  ;;  %v2254_v7 = vrot.slane %v2253_v58, 4  ;;  %v466_v4 = vrot.slane %v464_v63, 4  ;;  %v477_v13 = vshrl.u32 %v258_v50, 16  ;;  %v5523_v51 = vld [vmem:[%s7004_s17 + $0x6c] sm:$0xf] }
  0x5a   : > { %v5327_v6 = vcombine.low %v452_v56, %v462_v0  ;;  %v2263_v8 = vor.u32 %v2262_v61, %v2258_v53  ;;  %v469_v11 = vrot.slane %v467_v2, 5  ;;  %v475_v12 = vrot.slane %v473_v3, 5  ;;  %v7166_v58 = vld [vmem:[%s7004_s17 + $0x70] sm:$0xf]  ;;  %v7176_v2 = vld [vmem:[%s8957_s1] sm:$0x3] }
  0x5b   : > { %v483_v16 = vshll.u32 %v283_v62, 16  ;;  %v2259_v17 = vsel %vm7022_vm3, %v2254_v7, %v2258_v53  ;;  %v2271_v21 = vshrl.u32 %v5520_v5, 16  ;;  %v2274_v23 = vshll.u32 %v5520_v5, 16  ;;  %6647 = vmatprep.subr.msk.bf16.mxu1 %vm778_vm0, %v7176_v2 }
  0x5c   : > { %6064 = vmatprep.mubr.msk.bf16.mxu1 %vm729_vm4, %v5327_v6  ;;  %v2264_v18 = vrot.slane %v2263_v8, 4  ;;  %v470_v60 = vor.u32 %v469_v11, %v466_v4  ;;  %v479_v24 = vrot.slane %v477_v13, 4  ;;  %v2280_v26 = vshll.u32 %v5521_v9, 16  ;;  %v261_v8 = vld [vmem:[%s7004_s17 + $0x6c] sm:$0xf] }
  0x5d   : > { %v485_v25 = vrot.slane %v483_v16, 5  ;;  %v2273_v30 = vrot.slane %v2271_v21, 4  ;;  %v2276_v31 = vrot.slane %v2274_v23, 5  ;;  %v2284_v32 = vshrl.u32 %v5521_v9, 16  ;;  %v7189_v13 = vld [vmem:[%s8957_s1 + $0xc] sm:$0x3] }
  0x5e   : > { %v2269_v28 = vsel %vm7022_vm3, %v2264_v18, %v2268_v1  ;;  %v471_v35 = vrot.slane %v470_v60, 4  ;;  %v480_v36 = vor.u32 %v479_v24, %v475_v12  ;;  %v2282_v37 = vrot.slane %v2280_v26, 5  ;;  %v7171_v1 = vld [vmem:[%s7004_s17 + $0x74] sm:$0x1]  ;;  %v262_v21 = vld [vmem:[%s7004_s17 + $0x70] sm:$0xf]  ;;  %6652 = vmatprep.subr.msk.bf16.mxu0 %vm778_vm0, %v7189_v13 }
  0x5f   : > { %v5554_v34 = vcombine.low %v2259_v17, %v2269_v28  ;;  %v2277_v38 = vor.u32 %v2276_v31, %v2273_v30  ;;  %v2286_v39 = vrot.slane %v2284_v32, 4  ;;  %v2290_v40 = vshll.u32 %v5522_v19, 16 }
  0x60   : > { %v488_v41 = vshrl.u32 %v259_v27, 16  ;;  %v476_v42 = vsel %vm7022_vm3, %v471_v35, %v475_v12  ;;  %v481_v43 = vrot.slane %v480_v36, 4  ;;  %v491_v45 = vshll.u32 %v259_v27, 16  ;;  %v285_v35 = vld [vmem:[%s7004_s17 + $0x74] sm:$0x1] }
  0x61   : > { %6200 = vmatprep.mubr.msk.bf16.mxu0 %vm729_vm4, %v5554_v34  ;;  %v497_v46 = vshll.u32 %v7154_v33, 16  ;;  %v2278_v47 = vrot.slane %v2277_v38, 4  ;;  %v2287_v48 = vor.u32 %v2286_v39, %v2282_v37  ;;  %v2292_v49 = vrot.slane %v2290_v40, 5 }
  0x62   : > { %v490_v50 = vrot.slane %v488_v41, 4  ;;  %v486_v52 = vsel %vm7022_vm3, %v481_v43, %v485_v25  ;;  %v493_v53 = vrot.slane %v491_v45, 5  ;;  %v501_v56 = vshrl.u32 %v7154_v33, 16 }
  0x63   : > { %v499_v54 = vrot.slane %v497_v46, 5  ;;  %v5328_v61 = vcombine.low %v476_v42, %v486_v52  ;;  %v2283_v62 = vsel %vm7022_vm3, %v2278_v47, %v2282_v37  ;;  %v2288_v63 = vrot.slane %v2287_v48, 4  ;;  %v5526_v37 = vld [vmem:[%s7004_s17 + $0x78] sm:$0xf]  ;;  %v7203_v42 = vld [vmem:[%s7004_s17 + $0x7c] sm:$0xf] }
  0x64   : > { %v507_v0 = vshll.u32 %v284_v44, 16  ;;  %v494_v3 = vor.u32 %v493_v53, %v490_v50  ;;  %v503_v5 = vrot.slane %v501_v56, 4  ;;  %v2295_v6 = vshrl.u32 %v5523_v51, 16  ;;  %v7211_v53 = vld [vmem:[%s7004_s17 + $0x80] sm:$0x1] }
  0x65   : > { %v2298_v7 = vshll.u32 %v5523_v51, 16  ;;  %6065 = vmatmul.mubr.msk.bf16.gmra.mrb[12].mxu1 %vm729_vm4, %v5328_v61  ;;  %v2293_v4 = vsel %vm7022_vm3, %v2288_v63, %v2292_v49  ;;  %v2304_v11 = vshll.u32 %v7166_v58, 16  ;;  %v2308_v12 = vshrl.u32 %v7166_v58, 16  ;;  %v7215_v61 = vld [vmem:[%s7004_s17 + $0x78] sm:$0xf] }
  0x66   : > { %v509_v9 = vrot.slane %v507_v0, 5  ;;  %v5555_v16 = vcombine.low %v2283_v62, %v2293_v4  ;;  %v495_v17 = vrot.slane %v494_v3, 4  ;;  %v504_v18 = vor.u32 %v503_v5, %v499_v54  ;;  %v7218_v5 = vld [vmem:[%s7004_s17 + $0x7c] sm:$0xf] }
  0x67   : > { %v2297_v19 = vrot.slane %v2295_v6, 4  ;;  %v2300_v23 = vrot.slane %v2298_v7, 5  ;;  %v2306_v60 = vrot.slane %v2304_v11, 5  ;;  %v2310_v24 = vrot.slane %v2308_v12, 4 }
  0x68   : > { %v2314_v25 = vshll.u32 %v7171_v1, 16  ;;  %6201 = vmatmul.mubr.msk.bf16.gmra.mrb[12].mxu0 %vm729_vm4, %v5555_v16  ;;  %v500_v26 = vsel %vm7022_vm3, %v495_v17, %v499_v54  ;;  %v505_v27 = vrot.slane %v504_v18, 4  ;;  %v512_v28 = vshrl.u32 %v261_v8, 16  ;;  %v286_v16 = vld [vmem:[%s7004_s17 + $0x80] sm:$0x1] }
  0x69   : > { %v515_v30 = vshll.u32 %v261_v8, 16  ;;  %v2301_v31 = vor.u32 %v2300_v23, %v2297_v19  ;;  %v2311_v32 = vor.u32 %v2310_v24, %v2306_v60  ;;  %v521_v36 = vshll.u32 %v262_v21, 16 }
  0x6a   : > { %v2316_v34 = vrot.slane %v2314_v25, 5  ;;  %v510_v38 = vsel %vm7022_vm3, %v505_v27, %v509_v9  ;;  %v514_v39 = vrot.slane %v512_v28, 4  ;;  %v525_v41 = vshrl.u32 %v262_v21, 16  ;;  %v7234_v28 = vld [vmem:[%s7004_s17 + $0x88] sm:$0xf] }
  0x6b   : > { %v517_v40 = vrot.slane %v515_v30, 5  ;;  %v5329_v43 = vcombine.low %v500_v26, %v510_v38  ;;  %v2302_v44 = vrot.slane %v2301_v31, 4  ;;  %v2312_v45 = vrot.slane %v2311_v32, 4 }
  0x6c   : > { %v523_v46 = vrot.slane %v521_v36, 5  ;;  %v527_v48 = vrot.slane %v525_v41, 4  ;;  %v531_v49 = vshll.u32 %v285_v35, 16  ;;  %v2319_v50 = vshrl.u32 %v5526_v37, 16  ;;  %v7237_v35 = vld [vmem:[%s7004_s17 + $0x8c] sm:$0x1] }
  0x6d   : > { %v518_v47 = vor.u32 %v517_v40, %v514_v39  ;;  %6068 = vmatprep.mubr.msk.bf16.mxu1 %vm729_vm4, %v5329_v43  ;;  %v2307_v51 = vsel %vm7022_vm3, %v2302_v44, %v2306_v60  ;;  %v2317_v52 = vsel %vm7022_vm3, %v2312_v45, %v2316_v34  ;;  %v2322_v54 = vshll.u32 %v5526_v37, 16  ;;  %v5529_v60 = vld [vmem:[%s7004_s17 + $0x84] sm:$0xf] }
  0x6e   : > { %v2328_v56 = vshll.u32 %v7203_v42, 16  ;;  %v5556_v62 = vcombine.low %v2307_v51, %v2317_v52  ;;  %v528_v0 = vor.u32 %v527_v48, %v523_v46  ;;  %v533_v3 = vrot.slane %v531_v49, 5  ;;  %v7240_v40 = vld [vmem:[%s7004_s17 + $0x84] sm:$0xf] }
  0x6f   : > { %v519_v63 = vrot.slane %v518_v47, 4  ;;  %v2321_v6 = vrot.slane %v2319_v50, 4  ;;  %v2324_v7 = vrot.slane %v2322_v54, 5  ;;  %v2332_v4 = vshrl.u32 %v7203_v42, 16 }
  0x70   : > { %v2330_v8 = vrot.slane %v2328_v56, 5  ;;  %6204 = vmatprep.mubr.msk.bf16.mxu0 %vm729_vm4, %v5556_v62  ;;  %v529_v11 = vrot.slane %v528_v0, 4  ;;  %v2338_v12 = vshll.u32 %v7211_v53, 16  ;;  %v536_v17 = vshrl.u32 %v7215_v61, 16  ;;  %v287_v62 = vld [vmem:[%s7004_s17 + $0x8c] sm:$0x1] }
  0x71   : > { %v524_v9 = vsel %vm7022_vm3, %v519_v63, %v523_v46  ;;  %v2325_v18 = vor.u32 %v2324_v7, %v2321_v6  ;;  %v2334_v19 = vrot.slane %v2332_v4, 4  ;;  %v539_v21 = vshll.u32 %v7215_v61, 16  ;;  %v7246_v46 = vld [vmem:[%s7004_s17 + $0x88] sm:$0xf]  ;;  %v5532_v7 = vld [vmem:[%s7004_s17 + $0x90] sm:$0xf] }
  0x72   : > { %v545_v23 = vshll.u32 %v7218_v5, 16  ;;  %v534_v24 = vsel %vm7022_vm3, %v529_v11, %v533_v3  ;;  %v2340_v25 = vrot.slane %v2338_v12, 5  ;;  %v538_v26 = vrot.slane %v536_v17, 4  ;;  %v7259_v12 = vld [vmem:[%s7004_s17 + $0x94] sm:$0xf] }
  0x73   : > { %v549_v27 = vshrl.u32 %v7218_v5, 16  ;;  %v5330_v30 = vcombine.low %v524_v9, %v534_v24  ;;  %v2326_v31 = vrot.slane %v2325_v18, 4  ;;  %v2335_v32 = vor.u32 %v2334_v19, %v2330_v8 }
  0x74   : > { %v541_v34 = vrot.slane %v539_v21, 5  ;;  %v547_v36 = vrot.slane %v545_v23, 5  ;;  %v555_v38 = vshll.u32 %v286_v16, 16  ;;  %v2343_v39 = vshrl.u32 %v5529_v60, 16 }
  0x75   : > { %v551_v37 = vrot.slane %v549_v27, 4  ;;  %6069 = vmatmul.mubr.msk.bf16.gmra.mrb[16].mxu1 %vm729_vm4, %v5330_v30  ;;  %v2331_v41 = vsel %vm7022_vm3, %v2326_v31, %v2330_v8  ;;  %v2336_v43 = vrot.slane %v2335_v32, 4  ;;  %v2346_v45 = vshll.u32 %v5529_v60, 16  ;;  %v7268_v31 = vld [vmem:[%s7004_s17 + $0x98] sm:$0x1] }
  0x76   : > { %v542_v44 = vor.u32 %v541_v34, %v538_v26  ;;  %v557_v48 = vrot.slane %v555_v38, 5  ;;  %v2345_v49 = vrot.slane %v2343_v39, 4  ;;  %v2352_v50 = vshll.u32 %v7234_v28, 16  ;;  %v7271_v32 = vld [vmem:[%s7004_s17 + $0x90] sm:$0xf] }
  0x77   : > { %v552_v47 = vor.u32 %v551_v37, %v547_v36  ;;  %v2341_v51 = vsel %vm7022_vm3, %v2336_v43, %v2340_v25  ;;  %v2348_v54 = vrot.slane %v2346_v45, 5  ;;  %v2356_v56 = vshrl.u32 %v7234_v28, 16  ;;  %v7278_v45 = vld [vmem:[%s7004_s17 + $0x94] sm:$0xf] }
  0x78   : > { %v543_v52 = vrot.slane %v542_v44, 4  ;;  %v5557_v63 = vcombine.low %v2331_v41, %v2341_v51  ;;  %v2354_v3 = vrot.slane %v2352_v50, 5  ;;  %v2362_v6 = vshll.u32 %v7237_v35, 16 }
  0x79   : > { %v553_v0 = vrot.slane %v552_v47, 4  ;;  %v2349_v4 = vor.u32 %v2348_v54, %v2345_v49  ;;  %v2358_v9 = vrot.slane %v2356_v56, 4  ;;  %v560_v11 = vshrl.u32 %v7240_v40, 16 }
  0x7a   : > { %v548_v8 = vsel %vm7022_vm3, %v543_v52, %v547_v36  ;;  %6205 = vmatmul.mubr.msk.bf16.gmra.mrb[16].mxu0 %vm729_vm4, %v5557_v63  ;;  %v2364_v17 = vrot.slane %v2362_v6, 5  ;;  %v563_v18 = vshll.u32 %v7240_v40, 16  ;;  %v569_v19 = vshll.u32 %v7246_v46, 16 }
  0x7b   : > { %v558_v16 = vsel %vm7022_vm3, %v553_v0, %v557_v48  ;;  %v2350_v23 = vrot.slane %v2349_v4, 4  ;;  %v2359_v60 = vor.u32 %v2358_v9, %v2354_v3  ;;  %v562_v24 = vrot.slane %v560_v11, 4 }
  0x7c   : > { %v5331_v21 = vcombine.low %v548_v8, %v558_v16  ;;  %v565_v25 = vrot.slane %v563_v18, 5  ;;  %v571_v26 = vrot.slane %v569_v19, 5  ;;  %v573_v27 = vshrl.u32 %v7246_v46, 16  ;;  %v7293_v16 = vld [vmem:[%s7004_s17 + $0xa0] sm:$0xf] }
  0x7d   : > { %v579_v30 = vshll.u32 %v287_v62, 16  ;;  %v2355_v34 = vsel %vm7022_vm3, %v2350_v23, %v2354_v3  ;;  %v2360_v36 = vrot.slane %v2359_v60, 4  ;;  %v2367_v37 = vshrl.u32 %v5532_v7, 16  ;;  %v288_v62 = vld [vmem:[%s7004_s17 + $0x98] sm:$0x1] }
  0x7e   : > { %6072 = vmatprep.mubr.msk.bf16.mxu1 %vm729_vm4, %v5331_v21  ;;  %v2370_v38 = vshll.u32 %v5532_v7, 16  ;;  %v566_v39 = vor.u32 %v565_v25, %v562_v24  ;;  %v575_v41 = vrot.slane %v573_v27, 4  ;;  %v2376_v44 = vshll.u32 %v7259_v12, 16  ;;  %v5535_v7 = vld [vmem:[%s7004_s17 + $0x9c] sm:$0xf] }
  0x7f   : > { %v581_v43 = vrot.slane %v579_v30, 5  ;;  %v2365_v47 = vsel %vm7022_vm3, %v2360_v36, %v2364_v17  ;;  %v2369_v48 = vrot.slane %v2367_v37, 4  ;;  %v2380_v50 = vshrl.u32 %v7259_v12, 16  ;;  %v7304_v37 = vld [vmem:[%s7004_s17 + $0x9c] sm:$0xf] }
  0x80   : > { %v2372_v49 = vrot.slane %v2370_v38, 5  ;;  %v5558_v51 = vcombine.low %v2355_v34, %v2365_v47  ;;  %v567_v52 = vrot.slane %v566_v39, 4  ;;  %v576_v54 = vor.u32 %v575_v41, %v571_v26 }
  0x81   : > { %v2378_v56 = vrot.slane %v2376_v44, 5  ;;  %v2382_v0 = vrot.slane %v2380_v50, 4  ;;  %v2386_v3 = vshll.u32 %v7268_v31, 16  ;;  %v584_v6 = vshrl.u32 %v7271_v32, 16 }
  0x82   : > { %v2373_v63 = vor.u32 %v2372_v49, %v2369_v48  ;;  %6208 = vmatprep.mubr.msk.bf16.mxu0 %vm729_vm4, %v5558_v51  ;;  %v572_v8 = vsel %vm7022_vm3, %v567_v52, %v571_v26  ;;  %v577_v4 = vrot.slane %v576_v54, 4  ;;  %v587_v9 = vshll.u32 %v7271_v32, 16  ;;  %v7299_v26 = vld [vmem:[%s7004_s17 + $0xa4] sm:$0x1] }
  0x83   : > { %v593_v11 = vshll.u32 %v7278_v45, 16  ;;  %v2383_v18 = vor.u32 %v2382_v0, %v2378_v56  ;;  %v2388_v19 = vrot.slane %v2386_v3, 5  ;;  %v586_v21 = vrot.slane %v584_v6, 4  ;;  %v7316_v6 = vld [vmem:[%s7004_s17 + $0xa4] sm:$0x1] }
  0x84   : > { %v2374_v17 = vrot.slane %v2373_v63, 4  ;;  %v582_v23 = vsel %vm7022_vm3, %v577_v4, %v581_v43  ;;  %v589_v60 = vrot.slane %v587_v9, 5  ;;  %v597_v25 = vshrl.u32 %v7278_v45, 16  ;;  %v7307_v43 = vld [vmem:[%s7004_s17 + $0xa0] sm:$0xf]  ;;  %8983 = vst [vmem:[#allocation6_spill] sm:$0xff] %v7316_v6 }
  0x85   : > { %v595_v24 = vrot.slane %v593_v11, 5  ;;  %v5332_v27 = vcombine.low %v572_v8, %v582_v23  ;;  %v2384_v34 = vrot.slane %v2383_v18, 4  ;;  %v603_v36 = vshll.u32 %v288_v62, 16 }
  0x86   : > { %v2379_v30 = vsel %vm7022_vm3, %v2374_v17, %v2378_v56  ;;  %v590_v38 = vor.u32 %v589_v60, %v586_v21  ;;  %v599_v39 = vrot.slane %v597_v25, 4  ;;  %v2391_v41 = vshrl.u32 %v5535_v7, 16 }
  0x87   : > { %v2394_v44 = vshll.u32 %v5535_v7, 16  ;;  %6073 = vmatmul.mubr.msk.bf16.gmra.mrb[20].mxu1 %vm729_vm4, %v5332_v27  ;;  %v2389_v47 = vsel %vm7022_vm3, %v2384_v34, %v2388_v19  ;;  %v605_v48 = vrot.slane %v603_v36, 5  ;;  %v2400_v49 = vshll.u32 %v7293_v16, 16  ;;  %v5538_v7 = vld [vmem:[%s7004_s17 + $0xa8] sm:$0xf] }
  0x88   : > { %v2404_v50 = vshrl.u32 %v7293_v16, 16  ;;  %v5559_v51 = vcombine.low %v2379_v30, %v2389_v47  ;;  %v591_v52 = vrot.slane %v590_v38, 4  ;;  %v600_v54 = vor.u32 %v599_v39, %v595_v24  ;;  %v7329_v27 = vld [vmem:[%s7004_s17 + $0xac] sm:$0xf]  ;;  %v7332_v39 = vld [vmem:[%s7004_s17 + $0xb0] sm:$0x1] }
  0x89   : > { %v2393_v56 = vrot.slane %v2391_v41, 4  ;;  %v2396_v62 = vrot.slane %v2394_v44, 5  ;;  %v2402_v63 = vrot.slane %v2400_v49, 5  ;;  %v2410_v3 = vshll.u32 %v7299_v26, 16  ;;  %v7335_v41 = vld [vmem:[%s7004_s17 + $0xa8] sm:$0xf] }
  0x8a   : > { %v2406_v0 = vrot.slane %v2404_v50, 4  ;;  %6209 = vmatmul.mubr.msk.bf16.gmra.mrb[20].mxu0 %vm729_vm4, %v5559_v51  ;;  %v596_v8 = vsel %vm7022_vm3, %v591_v52, %v595_v24  ;;  %v601_v4 = vrot.slane %v600_v54, 4  ;;  %v608_v9 = vshrl.u32 %v7304_v37, 16  ;;  %v7339_v50 = vld [vmem:[%s7004_s17 + $0xac] sm:$0xf] }
  0x8b   : > { %v611_v11 = vshll.u32 %v7304_v37, 16  ;;  %v2397_v17 = vor.u32 %v2396_v62, %v2393_v56  ;;  %v2412_v19 = vrot.slane %v2410_v3, 5  ;;  %v617_v21 = vshll.u32 %v7307_v43, 16 }
  0x8c   : > { %v2407_v18 = vor.u32 %v2406_v0, %v2402_v63  ;;  %v606_v23 = vsel %vm7022_vm3, %v601_v4, %v605_v48  ;;  %v610_v60 = vrot.slane %v608_v9, 4  ;;  %v621_v24 = vshrl.u32 %v7307_v43, 16 }
  0x8d   : > { %v613_v25 = vrot.slane %v611_v11, 5  ;;  %v5333_v30 = vcombine.low %v596_v8, %v606_v23  ;;  %v2398_v34 = vrot.slane %v2397_v17, 4  ;;  %v619_v38 = vrot.slane %v617_v21, 5  ;;  %v5541_v21 = vld [vmem:[%s7004_s17 + $0xb4] sm:$0xf] }
  0x8e   : > { %v2408_v36 = vrot.slane %v2407_v18, 4  ;;  %v623_v47 = vrot.slane %v621_v24, 4  ;;  %v627_v49 = vshll.u32 %v7316_v6, 16  ;;  %v2415_v48 = vshrl.u32 %v5538_v7, 16  ;;  %v7349_v18 = vld [vmem:[%s7004_s17 + $0xb0] sm:$0x1] }
  0x8f   : > { %v614_v44 = vor.u32 %v613_v25, %v610_v60  ;;  %6076 = vmatprep.mubr.msk.bf16.mxu1 %vm729_vm4, %v5333_v30  ;;  %v2403_v51 = vsel %vm7022_vm3, %v2398_v34, %v2402_v63  ;;  %v2418_v54 = vshll.u32 %v5538_v7, 16  ;;  %v2424_v56 = vshll.u32 %v7329_v27, 16  ;;  %8984 = vst [vmem:[#allocation7_spill] sm:$0xff] %v7349_v18 }
  0x90   : > { %v2413_v52 = vsel %vm7022_vm3, %v2408_v36, %v2412_v19  ;;  %v624_v3 = vor.u32 %v623_v47, %v619_v38  ;;  %v629_v8 = vrot.slane %v627_v49, 5  ;;  %v2417_v4 = vrot.slane %v2415_v48, 4  ;;  %v7363_v47 = vld [vmem:[%s7004_s17 + $0xb8] sm:$0xf] }
  0x91   : > { %v5560_v62 = vcombine.low %v2403_v51, %v2413_v52  ;;  %v615_v0 = vrot.slane %v614_v44, 4  ;;  %v2420_v9 = vrot.slane %v2418_v54, 5  ;;  %v2426_v11 = vrot.slane %v2424_v56, 5  ;;  %v7366_v54 = vld [vmem:[%s7004_s17 + $0xbc] sm:$0x1] }
  0x92   : > { %v2428_v17 = vshrl.u32 %v7329_v27, 16  ;;  %v625_v7 = vrot.slane %v624_v3, 4  ;;  %v2434_v19 = vshll.u32 %v7332_v39, 16  ;;  %v632_v23 = vshrl.u32 %v7335_v41, 16 }
  0x93   : > { %6212 = vmatprep.mubr.msk.bf16.mxu0 %vm729_vm4, %v5560_v62  ;;  %v620_v63 = vsel %vm7022_vm3, %v615_v0, %v619_v38  ;;  %v2421_v60 = vor.u32 %v2420_v9, %v2417_v4  ;;  %v635_v24 = vshll.u32 %v7335_v41, 16  ;;  %v641_v30 = vshll.u32 %v7339_v50, 16 }
  0x94   : > { %v2430_v25 = vrot.slane %v2428_v17, 4  ;;  %v630_v34 = vsel %vm7022_vm3, %v625_v7, %v629_v8  ;;  %v2436_v36 = vrot.slane %v2434_v19, 5  ;;  %v634_v44 = vrot.slane %v632_v23, 4  ;;  %v7370_v8 = vld [vmem:[%s7004_s17 + $0xb4] sm:$0xf] }
  0x95   : > { %v645_v38 = vshrl.u32 %v7339_v50, 16  ;;  %v5334_v49 = vcombine.low %v620_v63, %v630_v34  ;;  %v2422_v48 = vrot.slane %v2421_v60, 4  ;;  %v637_v52 = vrot.slane %v635_v24, 5  ;;  %v7376_v7 = vld [vmem:[%s7004_s17 + $0xb8] sm:$0xf] }
  0x96   : > { %v2431_v51 = vor.u32 %v2430_v25, %v2426_v11  ;;  %v643_v56 = vrot.slane %v641_v30, 5  ;;  %v651_v0 = vshll.u32 %v7349_v18, 16  ;;  %v2439_v3 = vshrl.u32 %v5541_v21, 16  ;;  %v5592_v18 = vld [vmem:[%s7004_s17 + $0x9c] sm:$0xe] }
  0x97   : > { %v647_v62 = vrot.slane %v645_v38, 4  ;;  %6077 = vmatmul.mubr.msk.bf16.gmra.mrb[24].mxu1 %vm729_vm4, %v5334_v49  ;;  %v2427_v4 = vsel %vm7022_vm3, %v2422_v48, %v2426_v11  ;;  %v638_v17 = vor.u32 %v637_v52, %v634_v44  ;;  %v2442_v63 = vshll.u32 %v5541_v21, 16  ;;  %v7383_v49 = vld [vmem:[%s7004_s17 + $0xbc] sm:$0x1] }
  0x98   : > { %v2432_v9 = vrot.slane %v2431_v51, 4  ;;  %v653_v23 = vrot.slane %v651_v0, 5  ;;  %v2441_v60 = vrot.slane %v2439_v3, 4  ;;  %v2448_v25 = vshll.u32 %v7363_v47, 16  ;;  %8985 = vst [vmem:[#allocation8_spill] sm:$0xff] %v7383_v49 }
  0x99   : > { %v648_v19 = vor.u32 %v647_v62, %v643_v56  ;;  %v639_v30 = vrot.slane %v638_v17, 4  ;;  %v2444_v34 = vrot.slane %v2442_v63, 5  ;;  %v2452_v38 = vshrl.u32 %v7363_v47, 16  ;;  %v5544_v17 = vld [vmem:[%s7004_s17 + $0xc0] sm:$0xf] }
  0x9a   : > { %v2437_v24 = vsel %vm7022_vm3, %v2432_v9, %v2436_v36  ;;  %v2450_v21 = vrot.slane %v2448_v25, 5  ;;  %v2458_v48 = vshll.u32 %v7366_v54, 16  ;;  %v656_v36 = vshrl.u32 %v7370_v8, 16 }
  0x9b   : > { %v5561_v11 = vcombine.low %v2427_v4, %v2437_v24  ;;  %v649_v44 = vrot.slane %v648_v19, 4  ;;  %v644_v51 = vsel %vm7022_vm3, %v639_v30, %v643_v56  ;;  %v2445_v52 = vor.u32 %v2444_v34, %v2441_v60  ;;  %v7396_v60 = vld [vmem:[%s7004_s17 + $0xc4] sm:$0xf] }
  0x9c   : > { %v2454_v62 = vrot.slane %v2452_v38, 4  ;;  %v2460_v3 = vrot.slane %v2458_v48, 5  ;;  %v659_v4 = vshll.u32 %v7370_v8, 16  ;;  %v665_v9 = vshll.u32 %v7376_v7, 16 }
  0x9d   : > { %6213 = vmatmul.mubr.msk.bf16.gmra.mrb[24].mxu0 %vm729_vm4, %v5561_v11  ;;  %v654_v0 = vsel %vm7022_vm3, %v649_v44, %v653_v23  ;;  %v2446_v19 = vrot.slane %v2445_v52, 4  ;;  %v658_v56 = vrot.slane %v656_v36, 4  ;;  %v669_v34 = vshrl.u32 %v7376_v7, 16  ;;  %v7401_v23 = vld [vmem:[%s7004_s17 + $0xc8] sm:$0x1] }
  0x9e   : > { %v5335_v63 = vcombine.low %v644_v51, %v654_v0  ;;  %v2455_v25 = vor.u32 %v2454_v62, %v2450_v21  ;;  %v661_v24 = vrot.slane %v659_v4, 5  ;;  %v667_v30 = vrot.slane %v665_v9, 5  ;;  %v7410_v4 = vld [vmem:[%s8957_s1 + $0x4] sm:$0x3] }
  0x9f   : > { %v675_v38 = vshll.u32 %v7383_v49, 16  ;;  %v2451_v11 = vsel %vm7022_vm3, %v2446_v19, %v2450_v21  ;;  %v2463_v48 = vshrl.u32 %v5544_v17, 16  ;;  %v2466_v51 = vshll.u32 %v5544_v17, 16  ;;  %v5580_v19 = vld [vmem:[%s7004_s17 + $0xc] sm:$0xe] }
  0xa0   : > { %6080 = vmatprep.mubr.msk.bf16.mxu1 %vm729_vm4, %v5335_v63  ;;  %v2456_v44 = vrot.slane %v2455_v25, 4  ;;  %v662_v52 = vor.u32 %v661_v24, %v658_v56  ;;  %v671_v62 = vrot.slane %v669_v34, 4  ;;  %v2472_v0 = vshll.u32 %v7396_v60, 16  ;;  %v7528_v49 = vld [vmem:[%s7004_s17 + $0x40] sm:$0xf] }
  0xa1   : > { %v677_v36 = vrot.slane %v675_v38, 5  ;;  %v2465_v63 = vrot.slane %v2463_v48, 4  ;;  %v2468_v22 = vrot.slane %v2466_v51, 5  ;;  %v2476_v21 = vshrl.u32 %v7396_v60, 16 }
  0xa2   : > { %v2461_v9 = vsel %vm7022_vm3, %v2456_v44, %v2460_v3  ;;  %v663_v25 = vrot.slane %v662_v52, 4  ;;  %v672_v56 = vor.u32 %v671_v62, %v667_v30  ;;  %v2474_v24 = vrot.slane %v2472_v0, 5  ;;  %v6762_v62 = vld [vmem:[%s7004_s17] sm:$0xf]  ;;  %v7431_v0 = vld [vmem:[%s7004_s17 + $0x4] sm:$0xf] }
  0xa3   : > { %v5562_v17 = vcombine.low %v2451_v11, %v2461_v9  ;;  %v2469_v34 = vor.u32 %v2468_v22, %v2465_v63  ;;  %v2478_v38 = vrot.slane %v2476_v21, 4  ;;  %v2482_v10 = vshll.u32 %v7401_v23, 16  ;;  %v5581_v22 = vld [vmem:[%s7004_s17 + $0x18] sm:$0xe] }
  0xa4   : > { %v1072_v57 = vsel %vm778_vm0, %v7176_v2, 0  ;;  %v2855_v3 = vrot.slane %v2853_v20, 4  ;;  %v668_v11 = vsel %vm7022_vm3, %v663_v25, %v667_v30  ;;  %v673_v44 = vrot.slane %v672_v56, 4  ;;  %v5582_v56 = vld [vmem:[%s7004_s17 + $0x24] sm:$0xe] }
  0xa5   : > { %6216 = vmatprep.mubr.msk.bf16.mxu0 %vm729_vm4, %v5562_v17  ;;  %6085 = vmatpush3.bf16.msra.mxu1 %v1072_v57  ;;  %v2470_v48 = vrot.slane %v2469_v34, 4  ;;  %v2479_v51 = vor.u32 %v2478_v38, %v2474_v24  ;;  %v2484_v52 = vrot.slane %v2482_v10, 5  ;;  %v5353_v30 = vcombine.low %v6762_v62, %v7431_v0  ;;  %v6765_v62 = vld [vmem:[%s7004_s17 + $0x2c] sm:$0x1] }
  0xa6   : > { %6648 = vmatprep.subr.msk.bf16.mxu1 %vm778_vm0, %v7410_v4  ;;  %v678_v2 = vsel %vm7022_vm3, %v673_v44, %v677_v36  ;;  %v5596_v9 = vrot.slane %v5580_v19, 9  ;;  %v8988_v63 = vrot.slane %v7011_v14, 5  ;;  %v5597_v36 = vrot.slane %v5581_v22, 9 }
  0xa7   : > { %v5336_v21 = vcombine.low %v668_v11, %v678_v2  ;;  %v2475_v17 = vsel %vm7022_vm3, %v2470_v48, %v2474_v24  ;;  %v2480_v25 = vrot.slane %v2479_v51, 4  ;;  %v8990_v44 = vrot.slane %v7014_v15, 5  ;;  %v6764_v48 = vld [vmem:[%s7004_s17 + $0x28] sm:$0xf] }
  0xa8   : > { %v2848_v10 = vrot.slane %v8988_v63, 4  ;;  %v8989_v34 = vmov %v8988_v63  ;;  %v8991_v11 = vrot.slane %v7041_v59, 5  ;;  %v2854_v15 = vsel %vm7434_vm7, %v5597_v36, %v2853_v20  ;;  %v6766_v20 = vld [vmem:[%s7004_s17 + $0xc] sm:$0xf]  ;;  %v5583_v63 = vld [vmem:[%s7004_s17 + $0x30] sm:$0xe] }
  0xa9   : > { %v2847_v38 = vsel %vm7434_vm7, %v5596_v9, %v8989_v34  ;;  %6081 = vmatmul.mubr.msk.bf16.gmra.mrb[28].mxu1 %vm729_vm4, %v5336_v21  ;;  %v2485_v14 = vsel %vm7022_vm3, %v2480_v25, %v2484_v52  ;;  %v2860_v51 = vrot.slane %v6764_v48, 5  ;;  %v2863_v52 = vrot.slane %v6765_v62, 5  ;;  %v7469_v9 = vld [vmem:[%s7004_s17 + $0x10] sm:$0xf]  ;;  %v7476_v25 = vld [vmem:[%s7004_s17 + $0x1c] sm:$0xf] }
  0xaa   : > { %v2850_v19 = vsel %vm7434_vm7, %v2848_v10, %v8990_v44  ;;  %v2857_v2 = vsel %vm7434_vm7, %v2855_v3, %v8991_v11  ;;  %v5563_v22 = vcombine.low %v2475_v17, %v2485_v14  ;;  %6086 = vmatprep.mubr.msk.bf16.mxu1 %vm729_vm4, %v5353_v30  ;;  %v5598_v3 = vrot.slane %v5582_v56, 9  ;;  %v6768_v10 = vld [vmem:[%s7004_s17 + $0x34] sm:$0xf]  ;;  %v6769_v17 = vld [vmem:[%s7004_s17 + $0x18] sm:$0xf] }
  0xab   : > { %v5613_v24 = vcombine.low %v2847_v38, %v2850_v19  ;;  %v5614_v59 = vcombine.low %v2854_v15, %v2857_v2  ;;  %v2862_v55 = vrot.slane %v2860_v51, 4  ;;  %v5354_v30 = vcombine.low %v6766_v20, %v7469_v9  ;;  %v5584_v38 = vld [vmem:[%s7004_s17 + $0x3c] sm:$0xe]  ;;  %v6771_v44 = vld [vmem:[%s7004_s17 + $0x40] sm:$0xf] }
  0xac   : > { %6217 = vmatmul.mubr.msk.bf16.gmra.mrb[28].mxu0 %vm729_vm4, %v5563_v22  ;;  %v2867_v21 = vrot.slane %v6768_v10, 5  ;;  %v5355_v36 = vcombine.low %v6769_v17, %v7476_v25  ;;  %v2861_v56 = vsel %vm7434_vm7, %v5598_v3, %v2860_v51  ;;  %v2874_v19 = vrot.slane %v6771_v44, 5  ;;  %v6772_v14 = vld [vmem:[%s7004_s17 + $0x38] sm:$0x1]  ;;  %v5585_v15 = vld [vmem:[%s7004_s17 + $0x48] sm:$0xe] }
  0xad   : > { %6222 = vmatprep.mubr.msk.bf16.mxu0 %vm729_vm4, %v5613_v24  ;;  %v2864_v34 = vsel %vm7434_vm7, %v2862_v55, %v2863_v52  ;;  %v3417_v11 = vsel %vm778_vm0, %v7189_v13, 0  ;;  %v5599_v2 = vrot.slane %v5583_v63, 9  ;;  %v2870_v24 = vrot.slane %v6772_v14, 5  ;;  %v6773_v51 = vld [vmem:[%s7004_s17 + $0x4c] sm:$0xf] }
  0xae   : > { %v5615_v22 = vcombine.low %v2861_v56, %v2864_v34  ;;  %v2869_v3 = vrot.slane %v2867_v21, 4  ;;  %v5600_v48 = vrot.slane %v5584_v38, 9  ;;  %v2881_v62 = vrot.slane %v6773_v51, 5  ;;  %v6774_v55 = vld [vmem:[%s7004_s17 + $0x44] sm:$0x1] }
  0xaf   : > { %v2876_v52 = vrot.slane %v2874_v19, 4  ;;  %v2877_v13 = vrot.slane %v6774_v55, 5  ;;  %v5586_v20 = vld [vmem:[%s7004_s17 + $0x54] sm:$0xe]  ;;  %v6775_v63 = vld [vmem:[%s7004_s17 + $0x58] sm:$0xf]  ;;  %v2868_v34 = vsel %vm7434_vm7, %v5599_v2, %v2867_v21 }
  0xb0   : > { %v2888_v10 = vrot.slane %v6775_v63, 5  ;;  %v6776_v17 = vld [vmem:[%s7004_s17 + $0x24] sm:$0xf]  ;;  %v7503_v56 = vld [vmem:[%s7004_s17 + $0x28] sm:$0xf]  ;;  %v2871_v44 = vsel %vm7434_vm7, %v2869_v3, %v2870_v24  ;;  %v5601_v14 = vrot.slane %v5585_v15, 9 }
  0xb1   : > { %6087 = vmatmul.mubr.msk.bf16.vlgmr.msra.gmra.mrb[0].mxu1 %vm729_vm4, %v5354_v30  ;;  %v7498_v30 = vld [vmem:[%s8957_s1 + $0xe] sm:$0x3]  ;;  %v5587_v38 = vld [vmem:[%s7004_s17 + $0x60] sm:$0xe]  ;;  %v6778_v51 = vld [vmem:[%s7004_s17 + $0x50] sm:$0x1]  ;;  %v2878_v2 = vsel %vm7434_vm7, %v2876_v52, %v2877_v13  ;;  %v5616_v29 = vcombine.low %v2868_v34, %v2871_v44 }
  0xb2   : > { %6090 = vmatprep.mubr.msk.bf16.mxu1 %vm729_vm4, %v5355_v36  ;;  %v5356_v36 = vcombine.low %v6776_v17, %v7503_v56  ;;  %v2884_v55 = vrot.slane %v6778_v51, 5  ;;  %v6779_v63 = vld [vmem:[%s7004_s17 + $0x30] sm:$0xf]  ;;  %v7515_v17 = vld [vmem:[%s7004_s17 + $0x34] sm:$0xf]  ;;  %v2890_v24 = vrot.slane %v2888_v10, 4 }
  0xb3   : > { %v5357_v21 = vcombine.low %v6779_v63, %v7515_v17  ;;  %v6781_v15 = vld [vmem:[%s7004_s17 + $0x5c] sm:$0x1]  ;;  %v5591_v51 = vld [vmem:[%s7004_s17 + $0x90] sm:$0xe]  ;;  %v7532_v52 = vld [vmem:[%s7004_s17 + $0x6c] sm:$0xe] }
  0xb4   : > { %6223 = vmatmul.mubr.msk.bf16.vlgmr.msra.gmra.mrb[0].mxu0 %vm729_vm4, %v5614_v59  ;;  %v2883_v59 = vrot.slane %v2881_v62, 4  ;;  %v2891_v3 = vrot.slane %v6781_v15, 5  ;;  %v6782_v63 = vld [vmem:[%s7004_s17 + $0x3c] sm:$0xf]  ;;  %v6784_v44 = vld [vmem:[%s7004_s17 + $0x64] sm:$0xf] }
  0xb5   : > { %6255 = vmatpush3.bf16.msra.mxu0 %v3417_v11  ;;  %6226 = vmatprep.mubr.msk.bf16.mxu0 %vm729_vm4, %v5615_v22  ;;  %v2875_v11 = vsel %vm7434_vm7, %v5600_v48, %v2874_v19  ;;  %v5602_v22 = vrot.slane %v5586_v20, 9  ;;  %v5358_v19 = vcombine.low %v6782_v63, %v7528_v49  ;;  %v5603_v48 = vrot.slane %v5587_v38, 9  ;;  %v6785_v63 = vld [vmem:[%s7004_s17 + $0x48] sm:$0xf]  ;;  %v7544_v38 = vld [vmem:[%s7004_s17 + $0x4c] sm:$0xf] }
  0xb6   : > { %6653 = vmatprep.subr.msk.bf16.mxu0 %vm778_vm0, %v7498_v30  ;;  %v5617_v13 = vcombine.low %v2875_v11, %v2878_v2  ;;  %v2882_v20 = vsel %vm7434_vm7, %v5601_v14, %v2881_v62  ;;  %v2885_v34 = vsel %vm7434_vm7, %v2883_v59, %v2884_v55  ;;  %v2895_v15 = vrot.slane %v6784_v44, 5  ;;  %8992 = vst [vmem:[#allocation9_spill] sm:$0xff] %v7544_v38  ;;  %v7550_v11 = vld [vmem:[%s7004_s17 + $0x54] sm:$0xf]  ;;  %v7553_v62 = vld [vmem:[%s7004_s17 + $0x58] sm:$0xf] }
  0xb7   : > { %v5359_v6 = vcombine.low %v6785_v63, %v7544_v38  ;;  %v5607_v59 = vrot.slane %v5591_v51, 9  ;;  %v2892_v55 = vsel %vm7434_vm7, %v2890_v24, %v2891_v3  ;;  %v7561_v44 = vld [vmem:[%s7004_s17 + $0x60] sm:$0xf]  ;;  %v5618_v63 = vcombine.low %v2882_v20, %v2885_v34  ;;  %v5593_v3 = vld [vmem:[%s7004_s17 + $0xa8] sm:$0xe] }
  0xb8   : > { %v7569_v14 = vsel %vm7434_vm7, %v5603_v48, %v2895_v15  ;;  %v2923_v51 = vrot.slane %v7259_v12, 5  ;;  %v2926_v24 = vrot.slane %v7268_v31, 5  ;;  %v5608_v38 = vrot.slane %v5592_v18, 9 }
  0xb9   : > { %6091 = vmatmul.mubr.msk.bf16.gmra.mrb[4].mxu1 %vm729_vm4, %v5356_v36  ;;  %v2889_v36 = vsel %vm7434_vm7, %v5602_v22, %v2888_v10  ;;  %v5604_v22 = vrot.slane %v7532_v52, 9  ;;  %v2930_v10 = vrot.slane %v7293_v16, 5  ;;  %v2933_v52 = vrot.slane %v7299_v26, 5 }
  0xba   : > { %6094 = vmatprep.mubr.msk.bf16.mxu1 %vm729_vm4, %v5357_v21  ;;  %v6789_v21 = vld [vmem:[%s7004_s17 + $0x68] sm:$0x1]  ;;  %v5619_v20 = vcombine.low %v2889_v36, %v2892_v55  ;;  %v2902_v34 = vrot.slane %v7166_v58, 5  ;;  %v7581_v48 = vsel %vm7434_vm7, %v5607_v59, %v2923_v51  ;;  %v2925_v12 = vrot.slane %v2923_v51, 4  ;;  %v5595_v59 = vld [vmem:[%s7004_s17 + $0xc0] sm:$0xe] }
  0xbb   : > { %v2898_v2 = vrot.slane %v6789_v21, 5  ;;  %v2897_v21 = vrot.slane %v2895_v15, 4  ;;  %v7585_v31 = vsel %vm7434_vm7, %v5608_v38, %v2930_v10  ;;  %v5609_v18 = vrot.slane %v5593_v3, 9 }
  0xbc   : > { %6227 = vmatmul.mubr.msk.bf16.gmra.mrb[4].mxu0 %vm729_vm4, %v5616_v29  ;;  %v5594_v29 = vld [vmem:[%s7004_s17 + $0xb4] sm:$0xe]  ;;  %v2937_v15 = vrot.slane %v7329_v27, 5  ;;  %v2905_v16 = vrot.slane %v7171_v1, 5  ;;  %v7591_v26 = vsel %vm7434_vm7, %v2925_v12, %v2926_v24  ;;  %v2940_v58 = vrot.slane %v7332_v39, 5 }
  0xbd   : > { %6230 = vmatprep.mubr.msk.bf16.mxu0 %vm729_vm4, %v5617_v13  ;;  %v2932_v13 = vrot.slane %v2930_v10, 4  ;;  %v5610_v36 = vrot.slane %v5594_v29, 9  ;;  %v5624_v38 = vcombine.low %v7581_v48, %v7591_v26  ;;  %v2904_v10 = vrot.slane %v2902_v34, 4  ;;  %v1236_v48 = vld [vmem:[%s7004_s17 + $0xc] sm:$0xe] }
  0xbe   : > { %v7604_v1 = vsel %vm7434_vm7, %v5609_v18, %v2937_v15  ;;  %v2939_v27 = vrot.slane %v2937_v15, 4  ;;  %v2947_v51 = vrot.slane %v7366_v54, 5  ;;  %v5611_v3 = vrot.slane %v5595_v59, 9 }
  0xbf   : > { %v7600_v55 = vsel %vm7434_vm7, %v2932_v13, %v2933_v52  ;;  %v2951_v52 = vrot.slane %v7396_v60, 5  ;;  %v2954_v29 = vrot.slane %v7401_v23, 5  ;;  %v1497_v60 = vsel %vm778_vm0, %v7410_v4, 0  ;;  %v5589_v4 = vld [vmem:[%s7004_s17 + $0x78] sm:$0xe] }
  0xc0   : > { %v5625_v39 = vcombine.low %v7585_v31, %v7600_v55  ;;  %v7613_v24 = vsel %vm7434_vm7, %v2939_v27, %v2940_v58  ;;  %v2899_v23 = vsel %vm7434_vm7, %v2897_v21, %v2898_v2  ;;  %v2909_v31 = vrot.slane %v7203_v42, 5  ;;  %6119 = vmatpush3.bf16.msra.mxu1 %v1497_v60  ;;  %v5590_v42 = vld [vmem:[%s7004_s17 + $0x84] sm:$0xe] }
  0xc1   : > { %6095 = vmatmul.mubr.msk.bf16.gmra.mrb[8].mxu1 %vm729_vm4, %v5358_v19  ;;  %v2944_v19 = vrot.slane %v7363_v47, 5  ;;  %v5626_v47 = vcombine.low %v7604_v1, %v7613_v24  ;;  %v2953_v13 = vrot.slane %v2951_v52, 4  ;;  %v2903_v18 = vsel %vm7434_vm7, %v5604_v22, %v2902_v34 }
  0xc2   : > { %6098 = vmatprep.mubr.msk.bf16.mxu1 %vm729_vm4, %v5359_v6  ;;  %v7620_v6 = vld [vmem:[%s8957_s1 + $0x6] sm:$0x3]  ;;  %v2906_v15 = vsel %vm7434_vm7, %v2904_v10, %v2905_v16  ;;  %v5620_v34 = vcombine.low %v7569_v14, %v2899_v23  ;;  %v8993_v16 = vcombine.low %v7550_v11, %v7553_v62  ;;  %v2911_v59 = vrot.slane %v2909_v31, 4  ;;  %v6791_v11 = vld [vmem:[%s7004_s17 + $0x6c] sm:$0xf] }
  0xc3   : > { %v7627_v54 = vsel %vm7434_vm7, %v5610_v36, %v2944_v19  ;;  %v2946_v12 = vrot.slane %v2944_v19, 4  ;;  %6649 = vmatprep.subr.msk.bf16.mxu1 %vm778_vm0, %v7620_v6  ;;  %v7656_v22 = vsel %vm7434_vm7, %v2953_v13, %v2954_v29  ;;  %v5621_v58 = vcombine.low %v2903_v18, %v2906_v15  ;;  %v1235_v23 = vld [vmem:[%s7004_s17] sm:$0xe]  ;;  %v6794_v18 = vld [vmem:[%s7004_s17 + $0x14] sm:$0x1] }
  0xc4   : > { %6231 = vmatmul.mubr.msk.bf16.gmra.mrb[8].mxu0 %vm729_vm4, %v5618_v63  ;;  %v7637_v63 = vsel %vm7434_vm7, %v5611_v3, %v2951_v52  ;;  %v5605_v36 = vrot.slane %v5589_v4, 9  ;;  %v2912_v55 = vrot.slane %v7211_v53, 5  ;;  %v8994_v27 = vcombine.low %v7561_v44, %v7154_v33 }
  0xc5   : > { %6234 = vmatprep.mubr.msk.bf16.mxu0 %vm729_vm4, %v5619_v20  ;;  %v2916_v20 = vrot.slane %v7234_v28, 5  ;;  %v7647_v2 = vsel %vm7434_vm7, %v2946_v12, %v2947_v51  ;;  %v5628_v28 = vcombine.low %v7637_v63, %v7656_v22  ;;  %v5606_v10 = vrot.slane %v5590_v42, 9  ;;  %v7675_v51 = vld [vmem:[%s7004_s17 + $0x70] sm:$0xf] }
  0xc6   : > { %v5627_v21 = vcombine.low %v7627_v54, %v7647_v2  ;;  %v2919_v19 = vrot.slane %v7237_v35, 5  ;;  %v5362_v3 = vcombine.low %v6791_v11, %v7675_v51  ;;  %v2910_v53 = vsel %vm7434_vm7, %v5605_v36, %v2909_v31  ;;  %v1240_v36 = vld [vmem:[%s7004_s17 + $0x3c] sm:$0xe] }
  0xc7   : > { %v2918_v14 = vrot.slane %v2916_v20, 4  ;;  %v2913_v33 = vsel %vm7434_vm7, %v2911_v59, %v2912_v55  ;;  %v5363_v44 = vcombine.low %v7215_v61, %v7218_v5  ;;  %v2917_v35 = vsel %vm7434_vm7, %v5606_v10, %v2916_v20  ;;  %v1239_v20 = vld [vmem:[%s7004_s17 + $0x30] sm:$0xe] }
  0xc8   : > { %v5622_v29 = vcombine.low %v2910_v53, %v2913_v33  ;;  %v5364_v61 = vcombine.low %v7240_v40, %v7246_v46  ;;  %v5365_v5 = vcombine.low %v7271_v32, %v7278_v45  ;;  %v1288_v60 = vrot.slane %v7431_v0, 5  ;;  %v6793_v46 = vld [vmem:[%s7004_s17 + $0x8] sm:$0x1]  ;;  %v6730_v33 = vld [vmem:[%s7004_s17 + $0x18] sm:$0xff]  }
  0xc9   : > { %6099 = vmatmul.mubr.msk.bf16.gmra.mrb[12].mxu1 %vm729_vm4, %v8993_v16  ;;  %v2920_v52 = vsel %vm7434_vm7, %v2918_v14, %v2919_v19  ;;  %v5366_v40 = vcombine.low %v7304_v37, %v7307_v43  ;;  %v1291_v32 = vrot.slane %v6793_v46, 5  ;;  %v5367_v45 = vcombine.low %v7335_v41, %v7339_v50  ;;  %v1238_v41 = vld [vmem:[%s7004_s17 + $0x24] sm:$0xe]  ;;  %v6795_v16 = vld [vmem:[%s7004_s17 + $0x20] sm:$0x1] }
  0xca   : > { %6102 = vmatprep.mubr.msk.bf16.mxu1 %vm729_vm4, %v8994_v27  ;;  %v5623_v12 = vcombine.low %v2917_v35, %v2920_v52  ;;  %v5385_v31 = vrot.slane %v1235_v23, 9  ;;  %v1290_v0 = vrot.slane %v1288_v60, 4  ;;  %v1295_v13 = vrot.slane %v7469_v9, 5  ;;  %v6797_v14 = vld [vmem:[%s7004_s17 + $0x38] sm:$0x1] }
  0xcb   : > { %v1302_v26 = vrot.slane %v7476_v25, 5  ;;  %v1316_v9 = vrot.slane %v7515_v17, 5  ;;  %v1298_v25 = vrot.slane %v6794_v18, 5  ;;  %v5386_v15 = vrot.slane %v1236_v48, 9  ;;  %v1244_v48 = vld [vmem:[%s7004_s17 + $0x6c] sm:$0xe] }
  0xcc   : > { %6235 = vmatmul.mubr.msk.bf16.gmra.mrb[12].mxu0 %vm729_vm4, %v5620_v34  ;;  %v1289_v37 = vsel %vm7434_vm7, %v5385_v31, %v1288_v60  ;;  %v1292_v43 = vsel %vm7434_vm7, %v1290_v0, %v1291_v32  ;;  %v1297_v4 = vrot.slane %v1295_v13, 4  ;;  %v5368_v17 = vcombine.low %v7370_v8, %v7376_v7  ;;  %v8995_v32 = vld [vmem:[#allocation9_spill] sm:$0xff] }
  0xcd   : > { %6238 = vmatprep.mubr.msk.bf16.mxu0 %vm729_vm4, %v5621_v58  ;;  %v1304_v34 = vrot.slane %v1302_v26, 4  ;;  %v1305_v58 = vrot.slane %v6795_v16, 5  ;;  %v5402_v1 = vcombine.low %v1289_v37, %v1292_v43  ;;  %v5388_v24 = vrot.slane %v1238_v41, 9  ;;  %v1243_v31 = vld [vmem:[%s7004_s17 + $0x60] sm:$0xe]  ;;  %v6732_v16 = vld [vmem:[%s7004_s17 + $0x30] sm:$0xff]  }
  0xce   : > { %v5389_v27 = vrot.slane %v1239_v20, 9  ;;  %v1318_v10 = vrot.slane %v1316_v9, 4  ;;  %v1319_v19 = vrot.slane %v6797_v14, 5  ;;  %v1299_v54 = vsel %vm7434_vm7, %v1297_v4, %v1298_v25  ;;  %v6799_v0 = vld [vmem:[%s7004_s17 + $0x64] sm:$0xf] }
  0xcf   : > { %v5390_v2 = vrot.slane %v1240_v36, 9  ;;  %v6801_v43 = vld [vmem:[%s7004_s17 + $0x5c] sm:$0x1]  ;;  %v1246_v4 = vld [vmem:[%s7004_s17 + $0x84] sm:$0xe] }
  0xd0   : > { %v7762_v52 = vsel %vm7434_vm7, %v5389_v27, %v1316_v9  ;;  %v1340_v41 = vrot.slane %v6801_v43, 5  ;;  %v6802_v9 = vld [vmem:[%s7004_s17 + $0x7c] sm:$0xf]  ;;  %v6803_v20 = vld [vmem:[%s7004_s17 + $0x88] sm:$0xf] }
  0xd1   : > { %6103 = vmatmul.mubr.msk.bf16.gmra.mrb[16].mxu1 %vm729_vm4, %v5362_v3  ;;  %v6798_v3 = vld [vmem:[%s7004_s17 + $0x44] sm:$0x1]  ;;  %v1358_v18 = vrot.slane %v6802_v9, 5 }
  0xd2   : > { %6106 = vmatprep.mubr.msk.bf16.mxu1 %vm729_vm4, %v5363_v44  ;;  %v1326_v53 = vrot.slane %v6798_v3, 5 }
  0xd3   : > { %v1360_v14 = vrot.slane %v1358_v18, 4 }
  0xd4   : > { %6239 = vmatmul.mubr.msk.bf16.gmra.mrb[16].mxu0 %vm729_vm4, %v5622_v29  ;;  %v7766_v29 = vsel %vm7434_vm7, %v1318_v10, %v1319_v19  ;;  %v1247_v10 = vld [vmem:[%s7004_s17 + $0x90] sm:$0xe]  ;;  %v6806_v19 = vld [vmem:[%s7004_s17 + $0x80] sm:$0x1] }
  0xd5   : > { %6242 = vmatprep.mubr.msk.bf16.mxu0 %vm729_vm4, %v5623_v12  ;;  %v1241_v12 = vld [vmem:[%s7004_s17 + $0x48] sm:$0xe]  ;;  %v5406_v22 = vcombine.low %v7762_v52, %v7766_v29 }
  0xd9   : > { %6107 = vmatmul.mubr.msk.bf16.gmra.mrb[20].mxu1 %vm729_vm4, %v5364_v61 }
  0xda   : > { %6110 = vmatprep.mubr.msk.bf16.mxu1 %vm729_vm4, %v5365_v5  ;;  %v7771_v5 = vsel %vm778_vm0, %v7498_v30, 0  ;;  %v1330_v30 = vrot.slane %v8995_v32, 5 }
  0xdc   : > { %6243 = vmatmul.mubr.msk.bf16.gmra.mrb[20].mxu0 %vm729_vm4, %v5624_v38  ;;  %v1237_v38 = vld [vmem:[%s7004_s17 + $0x18] sm:$0xe] }
  0xdd   : > { %6246 = vmatprep.mubr.msk.bf16.mxu0 %vm729_vm4, %v5625_v39  ;;  %v1309_v39 = vrot.slane %v7503_v56, 5  ;;  %v5387_v42 = vrot.slane %v1237_v38, 9  ;;  %v1323_v56 = vrot.slane %v7528_v49, 5  ;;  %v1296_v49 = vsel %vm7434_vm7, %v5386_v15, %v1295_v13 }
  0xde   : > { %v5403_v61 = vcombine.low %v1296_v49, %v1299_v54  ;;  %v1344_v13 = vrot.slane %v6799_v0, 5  ;;  %v5393_v15 = vrot.slane %v1243_v31, 9  ;;  %v1361_v49 = vrot.slane %v6806_v19, 5 }
  0xdf   : > { %v1311_v55 = vrot.slane %v1309_v39, 4  ;;  %v1303_v8 = vsel %vm7434_vm7, %v5387_v42, %v1302_v26  ;;  %v1325_v11 = vrot.slane %v1323_v56, 4  ;;  %v7754_v44 = vsel %vm7434_vm7, %v5388_v24, %v1309_v39  ;;  %v1245_v39 = vld [vmem:[%s7004_s17 + $0x78] sm:$0xe] }
  0xe0   : > { %v7775_v23 = vsel %vm7434_vm7, %v5390_v2, %v1323_v56  ;;  %v1351_v26 = vrot.slane %v7675_v51, 5  ;;  %v1365_v42 = vrot.slane %v6803_v20, 5  ;;  %v1859_v51 = vsel %vm778_vm0, %v7620_v6, 0  ;;  %v1248_v2 = vld [vmem:[%s7004_s17 + $0x9c] sm:$0xe] }
  0xe1   : > { %6111 = vmatmul.mubr.msk.bf16.gmra.mrb[24].mxu1 %vm729_vm4, %v5366_v40  ;;  %v1242_v40 = vld [vmem:[%s7004_s17 + $0x54] sm:$0xe]  ;;  %v7784_v46 = vsel %vm7434_vm7, %v1325_v11, %v1326_v53  ;;  %v1346_v56 = vrot.slane %v1344_v13, 4  ;;  %v5394_v24 = vrot.slane %v1244_v48, 9  ;;  %v5395_v27 = vrot.slane %v1245_v39, 9 }
  0xe2   : > { %6114 = vmatprep.mubr.msk.bf16.mxu1 %vm729_vm4, %v5367_v45  ;;  %v1337_v45 = vrot.slane %v7553_v62, 5  ;;  %v6800_v62 = vld [vmem:[%s7004_s17 + $0x50] sm:$0x1]  ;;  %v5392_v37 = vrot.slane %v1242_v40, 9  ;;  %v5407_v25 = vcombine.low %v7775_v23, %v7784_v46  ;;  %v5396_v54 = vrot.slane %v1246_v4, 9 }
  0xe3   : > { %v1333_v38 = vrot.slane %v6800_v62, 5  ;;  %v6807_v11 = vld [vmem:[%s7004_s17 + $0x8c] sm:$0x1]  ;;  %v6808_v53 = vld [vmem:[%s7004_s17 + $0x94] sm:$0xf]  ;;  %v7842_v40 = vsel %vm7434_vm7, %v5393_v15, %v1344_v13  ;;  %v7861_v0 = vsel %vm7434_vm7, %v5395_v27, %v1358_v18  ;;  %v5397_v13 = vrot.slane %v1247_v10, 9 }
  0xe4   : > { %6247 = vmatmul.mubr.msk.bf16.gmra.mrb[24].mxu0 %vm729_vm4, %v5626_v47  ;;  %v6796_v47 = vld [vmem:[%s7004_s17 + $0x2c] sm:$0x1]  ;;  %v1339_v36 = vrot.slane %v1337_v45, 4  ;;  %v1368_v3 = vrot.slane %v6807_v11, 5  ;;  %v7870_v48 = vsel %vm7434_vm7, %v5396_v54, %v1365_v42  ;;  %v6733_v18 = vld [vmem:[%s7004_s17 + $0x3c] sm:$0xff]  }
  0xe5   : > { %6250 = vmatprep.mubr.msk.bf16.mxu0 %vm729_vm4, %v5627_v21  ;;  %v1312_v59 = vrot.slane %v6796_v47, 5  ;;  %v1306_v21 = vsel %vm7434_vm7, %v1304_v34, %v1305_v58  ;;  %v6731_v34 = vld [vmem:[%s7004_s17 + $0x24] sm:$0xff]   ;;  %v1332_v58 = vrot.slane %v1330_v30, 4  ;;  %v1353_v47 = vrot.slane %v1351_v26, 4  ;;  %v7923_v27 = vld [vmem:[%s7004_s17 + $0x34] sm:$0xf] }
  0xe6   : > { %v5404_v60 = vcombine.low %v1303_v8, %v1306_v21  ;;  %v7822_v8 = vsel %vm7434_vm7, %v5392_v37, %v1337_v45  ;;  %v1367_v21 = vrot.slane %v1365_v42, 4  ;;  %v7853_v45 = vsel %vm7434_vm7, %v5394_v24, %v1351_v26  ;;  %v6809_v26 = vld [vmem:[%s7004_s17 + $0x98] sm:$0x1]  ;;  %v5712_v10 = vld [vmem:[%s7004_s17 + $0x20] sm:$0x1] }
  0xe7   : > { %v7758_v35 = vsel %vm7434_vm7, %v1311_v55, %v1312_v59  ;;  %v6805_v59 = vld [vmem:[%s7004_s17 + $0x74] sm:$0x1]  ;;  %v1375_v62 = vrot.slane %v6809_v26, 5  ;;  %v1250_v26 = vld [vmem:[%s7004_s17 + $0xb4] sm:$0xe] }
  0xe8   : > { %v5405_v63 = vcombine.low %v7754_v44, %v7758_v35  ;;  %v1354_v55 = vrot.slane %v6805_v59, 5  ;;  %v7877_v37 = vsel %vm7434_vm7, %v1367_v21, %v1368_v3  ;;  %v5716_v59 = vld [vmem:[%s7004_s17 + $0x30] sm:$0xf]  ;;  %v7959_v23 = vld [vmem:[%s7004_s17 + $0x40] sm:$0xf] }
  0xe9   : > { %6115 = vmatmul.mubr.msk.bf16.gmra.mrb[28].mxu1 %vm729_vm4, %v5368_v17  ;;  %v6804_v17 = vld [vmem:[%s7004_s17 + $0x68] sm:$0x1]  ;;  %v5413_v35 = vcombine.low %v7870_v48, %v7877_v37  ;;  %v3709_v21 = vshrl.u32 %v5716_v59, 16  ;;  %v3712_v11 = vshll.u32 %v5716_v59, 16  ;;  %v8137_v48 = vld [vmem:[%s7004_s17 + $0x74] sm:$0x1] }
  0xea   : > { %6120 = vmatprep.mubr.msk.bf16.mxu1 %vm729_vm4, %v5402_v1  ;;  %v1347_v1 = vrot.slane %v6804_v17, 5  ;;  %v7857_v31 = vsel %vm7434_vm7, %v1353_v47, %v1354_v55  ;;  %v5713_v17 = vld [vmem:[%s7004_s17 + $0x24] sm:$0xf]  ;;  %v5714_v47 = vld [vmem:[%s7004_s17 + $0x28] sm:$0xf] }
  0xeb   : > { %v3685_v19 = vshrl.u32 %v5713_v17, 16  ;;  %v3694_v54 = vshll.u32 %v5714_v47, 16 }
  0xec   : > { %6251 = vmatmul.mubr.msk.bf16.gmra.mrb[28].mxu0 %vm729_vm4, %v5628_v28  ;;  %v5391_v28 = vrot.slane %v1241_v12, 9  ;;  %v7829_v12 = vld [vmem:[%s8957_s1 + $0x10] sm:$0x3]  ;;  %v7846_v32 = vsel %vm7434_vm7, %v1346_v56, %v1347_v1 }
  0xed   : > { %6256 = vmatprep.mubr.msk.bf16.mxu0 %vm729_vm4, %v6730_v33  ;;  %v1372_v33 = vrot.slane %v6808_v53, 5 }
  0xee   : > { %v7816_v6 = vsel %vm7434_vm7, %v5391_v28, %v1330_v30  ;;  %v5710_v30 = vld [vmem:[%s7004_s17 + $0x18] sm:$0xf]  ;;  %v5711_v28 = vld [vmem:[%s7004_s17 + $0x1c] sm:$0xf] }
  0xef   : > { %v1374_v43 = vrot.slane %v1372_v33, 4  ;;  %v3661_v39 = vshrl.u32 %v5710_v30, 16  ;;  %v3664_v9 = vshll.u32 %v5710_v30, 16  ;;  %v3670_v20 = vshll.u32 %v5711_v28, 16 }
  0xf0   : > { %v3674_v42 = vshrl.u32 %v5711_v28, 16  ;;  %v1386_v30 = vrot.slane %v7339_v50, 5  ;;  %v7947_v50 = vld [vmem:[%s7004_s17 + $0x2c] sm:$0x1] }
  0xf1   : > { %6121 = vmatmul.mubr.msk.bf16.vlgmr.msra.gmra.mrb[0].mxu1 %vm729_vm4, %v5403_v61  ;;  %v7834_v61 = vsel %vm7434_vm7, %v1332_v58, %v1333_v38  ;;  %v5398_v38 = vrot.slane %v1248_v2, 9  ;;  %v7898_v58 = vsel %vm7434_vm7, %v5397_v13, %v1372_v33  ;;  %v7916_v55 = vsel %vm7434_vm7, %v1374_v43, %v1375_v62  ;;  %v8997_v13 = vld [vmem:[#allocation7_spill] sm:$0xff]  ;;  %8998 = vst [vmem:[#allocation9_spill] sm:$0xff] %v7947_v50 }
  0xf2   : > { %6124 = vmatprep.mubr.msk.bf16.mxu1 %vm729_vm4, %v5404_v60  ;;  %6153 = vmatpush3.bf16.msra.mxu1 %v1859_v51  ;;  %v7838_v60 = vsel %vm7434_vm7, %v1339_v36, %v1340_v41  ;;  %v7880_v41 = vld [vmem:[%s7004_s17 + $0xa8] sm:$0xe]  ;;  %v5408_v15 = vcombine.low %v7816_v6, %v7834_v61  ;;  %v6810_v36 = vld [vmem:[%s7004_s17 + $0xa0] sm:$0xf]  ;;  %v3663_v29 = vrot.slane %v3661_v39, 4  ;;  %v7927_v6 = vrot.slane %v3670_v20, 5 }
  0xf3   : > { %v5409_v4 = vcombine.low %v7822_v8, %v7838_v60  ;;  %v6734_v51 = vld [vmem:[%s7004_s17 + $0x48] sm:$0xff]   ;;  %v1379_v56 = vrot.slane %v6810_v36, 5  ;;  %v5399_v24 = vrot.slane %v7880_v41, 9  ;;  %v3698_v2 = vshrl.u32 %v5714_v47, 16  ;;  %v6735_v43 = vld [vmem:[%s7004_s17 + $0x54] sm:$0xff]   ;;  %v6736_v39 = vld [vmem:[%s7004_s17 + $0x60] sm:$0xff]  }
  0xf4   : > { %6257 = vmatmul.mubr.msk.bf16.vlgmr.msra.gmra.mrb[0].mxu0 %vm729_vm4, %v6731_v34  ;;  %v5410_v34 = vcombine.low %v7842_v40, %v7846_v32  ;;  %v5414_v3 = vcombine.low %v7898_v58, %v7916_v55  ;;  %v3718_v33 = vshll.u32 %v7923_v27, 16  ;;  %v3722_v61 = vshrl.u32 %v7923_v27, 16  ;;  %v5722_v41 = vld [vmem:[%s7004_s17 + $0x48] sm:$0xf]  ;;  %v8013_v8 = vld [vmem:[%s7004_s17 + $0x44] sm:$0x1] }
  0xf5   : > { %6289 = vmatpush3.bf16.msra.mxu0 %v7771_v5  ;;  %6260 = vmatprep.mubr.msk.bf16.mxu0 %vm729_vm4, %v6732_v16  ;;  %v7866_v5 = vsel %vm7434_vm7, %v1360_v14, %v1361_v49  ;;  %v5411_v16 = vcombine.low %v7853_v45, %v7857_v31  ;;  %v7920_v52 = vsel %vm7434_vm7, %v5398_v38, %v1379_v56  ;;  %v3676_v14 = vrot.slane %v3674_v42, 4  ;;  %v8144_v55 = vld [vmem:[%s7004_s17 + $0x80] sm:$0x1] }
  0xf6   : > { %6654 = vmatprep.subr.msk.bf16.mxu0 %vm778_vm0, %v7829_v12  ;;  %v5412_v44 = vcombine.low %v7861_v0, %v7866_v5  ;;  %v3688_v49 = vshll.u32 %v5713_v17, 16  ;;  %v1381_v53 = vrot.slane %v1379_v56, 4  ;;  %v1389_v28 = vrot.slane %v8997_v13, 5  ;;  %v8091_v5 = vld [vmem:[%s7004_s17 + $0x5c] sm:$0x1] }
  0xf7   : > { %v1393_v62 = vrot.slane %v7376_v7, 5  ;;  %v3680_v38 = vshll.u32 %v5712_v10, 16  ;;  %v3687_v20 = vrot.slane %v3685_v19, 4  ;;  %v7949_v36 = vrot.slane %v3694_v54, 5  ;;  %v7963_v10 = vld [vmem:[%s7004_s17 + $0x38] sm:$0x1] }
  0xf8   : > { %v3690_v42 = vrot.slane %v3688_v49, 5  ;;  %v3700_v7 = vrot.slane %v3698_v2, 4  ;;  %v3711_v56 = vrot.slane %v3709_v21, 4  ;;  %v3714_v17 = vrot.slane %v3712_v11, 5 }
  0xf9   : > { %6125 = vmatmul.mubr.msk.bf16.gmra.mrb[4].mxu1 %vm729_vm4, %v5405_v63  ;;  %v8996_v63 = vld [vmem:[#allocation6_spill] sm:$0xff]  ;;  %v5400_v47 = vrot.slane %v1250_v26, 9  ;;  %v7956_v59 = vrot.slane %v3718_v33, 5  ;;  %v1388_v46 = vrot.slane %v1386_v30, 4  ;;  %v3704_v54 = vshll.u32 %v7947_v50, 16 }
  0xfa   : > { %6128 = vmatprep.mubr.msk.bf16.mxu1 %vm729_vm4, %v5406_v22  ;;  %v1382_v1 = vrot.slane %v8996_v63, 5  ;;  %v3666_v22 = vrot.slane %v3664_v9, 5  ;;  %v3691_v21 = vor.u32 %v3690_v42, %v3687_v20  ;;  %v3701_v11 = vor.u32 %v3700_v7, %v7949_v36  ;;  %v6738_v7 = vld [vmem:[%s7004_s17 + $0x78] sm:$0xff]  }
  0xfb   : > { %v7973_v33 = vsel %vm7434_vm7, %v5399_v24, %v1386_v30  ;;  %v3728_v13 = vshll.u32 %v7963_v10, 16  ;;  %v3742_v26 = vshll.u32 %v7959_v23, 16  ;;  %v7987_v24 = vsel %vm7434_vm7, %v1388_v46, %v1389_v28 }
  0xfc   : > { %6261 = vmatmul.mubr.msk.bf16.gmra.mrb[4].mxu0 %vm729_vm4, %v6733_v18  ;;  %v3667_v9 = vor.u32 %v3666_v22, %v3663_v29  ;;  %v3677_v18 = vor.u32 %v3676_v14, %v7927_v6  ;;  %v7954_v63 = vsel %vm7434_vm7, %v1381_v53, %v1382_v1  ;;  %v3724_v29 = vrot.slane %v3722_v61, 4 }
  0xfd   : > { %6264 = vmatprep.mubr.msk.bf16.mxu0 %vm729_vm4, %v6734_v51  ;;  %v5719_v51 = vld [vmem:[%s7004_s17 + $0x3c] sm:$0xf]  ;;  %v3682_v1 = vrot.slane %v3680_v38, 5  ;;  %v3715_v53 = vor.u32 %v3714_v17, %v3711_v56  ;;  %v7980_v38 = vsel %vm7434_vm7, %v5400_v47, %v1393_v62  ;;  %v3706_v42 = vrot.slane %v3704_v54, 5 }
  0xfe   : > { %v3733_v14 = vshrl.u32 %v5719_v51, 16  ;;  %v3736_v19 = vshll.u32 %v5719_v51, 16  ;;  %v3668_v49 = vrot.slane %v3667_v9, 4  ;;  %v3678_v2 = vrot.slane %v3677_v18, 4  ;;  %v6737_v18 = vld [vmem:[%s7004_s17 + $0x6c] sm:$0xff]  }
  0xff   : > { %v3725_v61 = vor.u32 %v3724_v29, %v7956_v59  ;;  %v3746_v9 = vshrl.u32 %v7959_v23, 16  ;;  %v7997_v51 = vld [vmem:[%s7004_s17 + $0x4c] sm:$0xf]  ;;  %v3692_v56 = vrot.slane %v3691_v21, 4  ;;  %v3702_v17 = vrot.slane %v3701_v11, 4 }
 0x100   : > { %v3683_v28 = vsel %vm7022_vm3, %v3678_v2, %v3682_v1  ;;  %v3716_v47 = vrot.slane %v3715_v53, 4  ;;  %v3730_v29 = vrot.slane %v3728_v13, 5  ;;  %v8010_v46 = vrot.slane %v3742_v26, 5  ;;  %v8037_v2 = vld [vmem:[%s7004_s17 + $0x50] sm:$0x1] }
 0x101   : > { %6129 = vmatmul.mubr.msk.bf16.gmra.mrb[8].mxu1 %vm729_vm4, %v5407_v25  ;;  %v8999_v25 = vld [vmem:[#allocation8_spill] sm:$0xff]  ;;  %v3707_v1 = vsel %vm7022_vm3, %v3702_v17, %v3706_v42  ;;  %v8034_v54 = vsel %vm778_vm0, %v7829_v12, 0  ;;  %v5725_v21 = vld [vmem:[%s7004_s17 + $0x54] sm:$0xf]  ;;  %v5728_v26 = vld [vmem:[%s7004_s17 + $0x60] sm:$0xf] }
 0x102   : > { %6132 = vmatprep.mubr.msk.bf16.mxu1 %vm729_vm4, %v5408_v15  ;;  %v1396_v22 = vrot.slane %v8999_v25, 5  ;;  %v1395_v15 = vrot.slane %v1393_v62, 4  ;;  %v3673_v62 = vsel %vm7022_vm3, %v3668_v49, %v7927_v6  ;;  %v3726_v6 = vrot.slane %v3725_v61, 4  ;;  %v8049_v13 = vld [vmem:[%s7004_s17 + $0x58] sm:$0xf] }
 0x103   : > { %v3757_v25 = vshrl.u32 %v5722_v41, 16  ;;  %v3697_v49 = vsel %vm7022_vm3, %v3692_v56, %v7949_v36  ;;  %v3721_v11 = vsel %vm7022_vm3, %v3716_v47, %v7956_v59  ;;  %v3752_v36 = vshll.u32 %v8013_v8, 16  ;;  %v6739_v59 = vld [vmem:[%s7004_s17 + $0x84] sm:$0xff]  }
 0x104   : > { %6265 = vmatmul.mubr.msk.bf16.gmra.mrb[8].mxu0 %vm729_vm4, %v6735_v43  ;;  %v3735_v43 = vrot.slane %v3733_v14, 4  ;;  %v7991_v30 = vsel %vm7434_vm7, %v1395_v15, %v1396_v22  ;;  %v3760_v22 = vshll.u32 %v5722_v41, 16  ;;  %v3766_v14 = vshll.u32 %v7997_v51, 16  ;;  %v8058_v41 = vld [vmem:[%s7004_s17 + $0x64] sm:$0xf] }
 0x105   : > { %6268 = vmatprep.mubr.msk.bf16.mxu0 %vm729_vm4, %v6736_v39  ;;  %v3738_v39 = vrot.slane %v3736_v19, 5  ;;  %v3770_v19 = vshrl.u32 %v7997_v51, 16  ;;  %v8025_v15 = vcombine.low %v3673_v62, %v3683_v28  ;;  %v3731_v53 = vsel %vm7022_vm3, %v3726_v6, %v3730_v29  ;;  %v6740_v28 = vld [vmem:[%s7004_s17 + $0x90] sm:$0xff]  }
 0x106   : > { %v8046_v61 = vrot.slane %v3757_v25, 4  ;;  %v3776_v62 = vshll.u32 %v8037_v2, 16  ;;  %v3781_v42 = vshrl.u32 %v5725_v21, 16  ;;  %v3790_v56 = vshll.u32 %v8049_v13, 16 }
 0x107   : > { %v3739_v60 = vor.u32 %v3738_v39, %v3735_v43  ;;  %v3762_v39 = vrot.slane %v3760_v22, 5  ;;  %v3794_v17 = vshrl.u32 %v8049_v13, 16  ;;  %v3805_v47 = vshrl.u32 %v5728_v26, 16  ;;  %v8095_v22 = vld [vmem:[%s7004_s17 + $0x70] sm:$0xf] }
 0x108   : > { %v3808_v6 = vshll.u32 %v5728_v26, 16  ;;  %v8075_v29 = vcombine.low %v3697_v49, %v3707_v1  ;;  %v8077_v45 = vrot.slane %v3752_v36, 5  ;;  %v3814_v31 = vshll.u32 %v8058_v41, 16  ;;  %v8107_v26 = vld [vmem:[%s7004_s17 + $0x7c] sm:$0xf] }
 0x109   : > { %6133 = vmatmul.mubr.msk.bf16.gmra.mrb[12].mxu1 %vm729_vm4, %v5409_v4  ;;  %v3748_v4 = vrot.slane %v3746_v9, 4  ;;  %v8052_v12 = vrot.slane %v3739_v60, 4  ;;  %v8055_v9 = vrot.slane %v3766_v14, 5  ;;  %v8081_v25 = vcombine.low %v3721_v11, %v3731_v53 }
 0x10a   : > { %6136 = vmatprep.mubr.msk.bf16.mxu1 %vm729_vm4, %v5410_v34  ;;  %v3763_v0 = vor.u32 %v3762_v39, %v8046_v61  ;;  %v3783_v49 = vrot.slane %v3781_v42, 4  ;;  %v8104_v11 = vrot.slane %v3790_v56, 5  ;;  %v3796_v53 = vrot.slane %v3794_v17, 4  ;;  %v6741_v17 = vld [vmem:[%s7004_s17 + $0x9c] sm:$0xff]  }
 0x10b   : > { %v3749_v43 = vor.u32 %v3748_v4, %v8010_v46  ;;  %9001 = vst [vmem:[#allocation6_spill] sm:$0xff] %v8081_v25  ;;  %v3807_v36 = vrot.slane %v3805_v47, 4  ;;  %v3810_v61 = vrot.slane %v3808_v6, 5  ;;  %v8112_v39 = vrot.slane %v3814_v31, 5 }
 0x10c   : > { %6269 = vmatmul.mubr.msk.bf16.gmra.mrb[12].mxu0 %vm729_vm4, %v6737_v18  ;;  %v8061_v18 = vrot.slane %v3770_v19, 4  ;;  %v8100_v19 = vrot.slane %v3776_v62, 5  ;;  %v3838_v42 = vshll.u32 %v8095_v22, 16  ;;  %v3800_v6 = vshll.u32 %v8091_v5, 16 }
 0x10d   : > { %6272 = vmatprep.mubr.msk.bf16.mxu0 %vm729_vm4, %v6738_v7  ;;  %v3784_v7 = vshll.u32 %v5725_v21, 16  ;;  %v8087_v4 = vrot.slane %v3749_v43, 4  ;;  %v5734_v21 = vld [vmem:[%s7004_s17 + $0x78] sm:$0xf]  ;;  %v8110_v43 = vld [vmem:[%s7004_s17 + $0x68] sm:$0x1]  ;;  %v3797_v34 = vor.u32 %v3796_v53, %v8104_v11  ;;  %v3811_v60 = vor.u32 %v3810_v61, %v3807_v36 }
 0x10e   : > { %v3773_v14 = vor.u32 %v8061_v18, %v8055_v9  ;;  %v3856_v56 = vshll.u32 %v5734_v21, 16  ;;  %v3862_v31 = vshll.u32 %v8107_v26, 16  ;;  %v3824_v47 = vshll.u32 %v8110_v43, 16  ;;  %v5737_v36 = vld [vmem:[%s7004_s17 + $0x84] sm:$0xf] }
 0x10f   : > { %v3786_v1 = vrot.slane %v3784_v7, 5  ;;  %v3842_v7 = vshrl.u32 %v8095_v22, 16  ;;  %v3764_v32 = vrot.slane %v3763_v0, 4  ;;  %v8139_v50 = vrot.slane %v3838_v42, 5 }
 0x110   : > { %v3858_v53 = vrot.slane %v3856_v56, 5  ;;  %v3774_v61 = vrot.slane %v3773_v14, 4  ;;  %v3802_v58 = vrot.slane %v3800_v6, 5  ;;  %v3826_v42 = vrot.slane %v3824_v47, 5 }
 0x111   : > { %6137 = vmatmul.mubr.msk.bf16.gmra.mrb[16].mxu1 %vm729_vm4, %v5411_v16  ;;  %v3818_v16 = vshrl.u32 %v8058_v41, 16  ;;  %v3848_v56 = vshll.u32 %v8137_v48, 16  ;;  %v3877_v14 = vshrl.u32 %v5737_v36, 16 }
 0x112   : > { %6140 = vmatprep.mubr.msk.bf16.mxu1 %vm729_vm4, %v5412_v44  ;;  %v5731_v44 = vld [vmem:[%s7004_s17 + $0x6c] sm:$0xf] }
 0x113   : > { %v3829_v18 = vshrl.u32 %v5731_v44, 16  ;;  %v3832_v62 = vshll.u32 %v5731_v44, 16  ;;  %v6742_v44 = vld [vmem:[%s7004_s17 + $0xa8] sm:$0xff]  }
 0x114   : > { %6273 = vmatmul.mubr.msk.bf16.gmra.mrb[16].mxu0 %vm729_vm4, %v6739_v59  ;;  %v3820_v59 = vrot.slane %v3818_v16, 4  ;;  %v3866_v16 = vshrl.u32 %v8107_v26, 16 }
 0x115   : > { %6276 = vmatprep.mubr.msk.bf16.mxu0 %vm729_vm4, %v6740_v28  ;;  %v3853_v28 = vshrl.u32 %v5734_v21, 16  ;;  %v3787_v21 = vor.u32 %v3786_v1, %v3783_v49  ;;  %v3831_v37 = vrot.slane %v3829_v18, 4  ;;  %v3844_v49 = vrot.slane %v3842_v7, 4  ;;  %v8150_v7 = vld [vmem:[%s7004_s17 + $0x88] sm:$0xf] }
 0x116   : > { %v3821_v40 = vor.u32 %v3820_v59, %v8112_v39  ;;  %v3868_v0 = vrot.slane %v3866_v16, 4  ;;  %v3798_v18 = vrot.slane %v3797_v34, 4  ;;  %v3872_v16 = vshll.u32 %v8144_v55, 16 }
 0x117   : > { %v3855_v1 = vrot.slane %v3853_v28, 4  ;;  %v3788_v59 = vrot.slane %v3787_v21, 4  ;;  %v3769_v34 = vsel %vm7022_vm3, %v3764_v32, %v8055_v9  ;;  %v3886_v47 = vshll.u32 %v8150_v7, 16 }
 0x118   : > { %v3822_v6 = vrot.slane %v3821_v40, 4  ;;  %v3890_v21 = vshrl.u32 %v8150_v7, 16  ;;  %v9002_v40 = vcombine.low %v7920_v52, %v7954_v63  ;;  %v3803_v9 = vsel %vm7022_vm3, %v3798_v18, %v3802_v58  ;;  %v8179_v52 = vld [vmem:[%s7004_s17 + $0x8c] sm:$0x1] }
 0x119   : > { %6141 = vmatmul.mubr.msk.bf16.gmra.mrb[20].mxu1 %vm729_vm4, %v5413_v35  ;;  %v3834_v35 = vrot.slane %v3832_v62, 5  ;;  %v3812_v62 = vrot.slane %v3811_v60, 4  ;;  %v3859_v25 = vor.u32 %v3858_v53, %v3855_v1  ;;  %v3793_v32 = vsel %vm7022_vm3, %v3788_v59, %v8104_v11 }
 0x11a   : > { %6144 = vmatprep.mubr.msk.bf16.mxu1 %vm729_vm4, %v5414_v3  ;;  %v8146_v3 = vrot.slane %v3862_v31, 5  ;;  %v3845_v31 = vor.u32 %v3844_v49, %v8139_v50  ;;  %v9003_v63 = vcombine.low %v7973_v33, %v7987_v24  ;;  %v3879_v53 = vrot.slane %v3877_v14, 4  ;;  %v8199_v33 = vld [vmem:[%s7004_s17 + $0x94] sm:$0xf] }
 0x11b   : > { %v3835_v28 = vor.u32 %v3834_v35, %v3831_v37  ;;  %v6744_v37 = vld [vmem:[%s7004_s17 + $0xc0] sm:$0xff]   ;;  %v3779_v35 = vsel %vm7022_vm3, %v3774_v61, %v8100_v19  ;;  %v3817_v49 = vsel %vm7022_vm3, %v3812_v62, %v8112_v39  ;;  %v8187_v19 = vrot.slane %v3848_v56, 5 }
 0x11c   : > { %6277 = vmatmul.mubr.msk.bf16.gmra.mrb[20].mxu0 %vm729_vm4, %v6741_v17  ;;  %v3880_v17 = vshll.u32 %v5737_v36, 16  ;;  %v3869_v60 = vor.u32 %v3868_v0, %v8146_v3  ;;  %v5740_v36 = vld [vmem:[%s7004_s17 + $0x90] sm:$0xf]  ;;  %v3827_v61 = vsel %vm7022_vm3, %v3822_v6, %v3826_v42  ;;  %v8192_v39 = vrot.slane %v3845_v31, 4 }
 0x11d   : > { %6280 = vmatprep.mubr.msk.bf16.mxu0 %vm729_vm4, %v6742_v44  ;;  %v6743_v44 = vld [vmem:[%s7004_s17 + $0xb4] sm:$0xff]   ;;  %v8185_v1 = vrot.slane %v3835_v28, 4  ;;  %v8194_v58 = vrot.slane %v3859_v25, 4  ;;  %v8196_v0 = vrot.slane %v3872_v16, 5  ;;  %v8204_v59 = vrot.slane %v3886_v47, 5  ;;  %v6746_v31 = vld [vmem:[%s7004_s17 + $0xc] sm:$0xff]  }
 0x11e   : > { %v3882_v11 = vrot.slane %v3880_v17, 5  ;;  %v8202_v24 = vrot.slane %v3869_v60, 4  ;;  %v8206_v18 = vrot.slane %v3890_v21, 4  ;;  %v3896_v62 = vshll.u32 %v8179_v52, 16  ;;  %v5793_v6 = vld [vmem:[%s7004_s17 + $0x30] sm:$0xe] }
 0x11f   : > { %v9004_v25 = vsel %vm7022_vm3, %v8087_v4, %v8077_v45  ;;  %v9005_v42 = vsel %vm7022_vm3, %v8052_v12, %v8010_v46  ;;  %v8222_v56 = vcombine.low %v3769_v34, %v3779_v35  ;;  %v3901_v14 = vshrl.u32 %v5740_v36, 16  ;;  %v5794_v47 = vld [vmem:[%s7004_s17 + $0x3c] sm:$0xe]  ;;  %v6745_v21 = vld [vmem:[%s7004_s17 + $0xcc] sm:$0xff]   ;;  %v8450_v12 = vld [vmem:[%s7004_s17 + $0xc4] sm:$0xf] }
 0x120   : > { %v8220_v28 = vcombine.low %v9005_v42, %v9004_v25  ;;  %v3904_v17 = vshll.u32 %v5740_v36, 16  ;;  %v8226_v16 = vcombine.low %v3793_v32, %v3803_v9  ;;  %v3883_v60 = vor.u32 %v3882_v11, %v3879_v53  ;;  %v5795_v36 = vld [vmem:[%s7004_s17 + $0x48] sm:$0xe] }
 0x121   : > { %6145 = vmatmul.mubr.msk.bf16.gmra.mrb[24].mxu1 %vm729_vm4, %v9002_v40  ;;  %v3910_v45 = vshll.u32 %v8199_v33, 16  ;;  %v3914_v34 = vshrl.u32 %v8199_v33, 16  ;;  %v8252_v35 = vrot.slane %v3896_v62, 5  ;;  %v5809_v32 = vrot.slane %v5793_v6, 9  ;;  %v5805_v40 = vld [vmem:[%s7004_s17 + $0xc0] sm:$0xe] }
 0x122   : > { %6148 = vmatprep.mubr.msk.bf16.mxu1 %vm729_vm4, %v9003_v63  ;;  %v9006_v9 = vcombine.low %v7980_v38, %v7991_v30  ;;  %v8260_v63 = vrot.slane %v3904_v17, 5  ;;  %v4418_v53 = vrot.slane %v7923_v27, 5  ;;  %v4421_v11 = vrot.slane %v7963_v10, 5  ;;  %v5796_v30 = vld [vmem:[%s7004_s17 + $0x54] sm:$0xe] }
 0x123   : > { %v8268_v62 = vrot.slane %v3910_v45, 5  ;;  %v5810_v25 = vrot.slane %v5794_v47, 9  ;;  %v4425_v38 = vrot.slane %v7959_v23, 5  ;;  %v8272_v42 = vrot.slane %v3914_v34, 4 }
 0x124   : > { %6281 = vmatmul.mubr.msk.bf16.gmra.mrb[24].mxu0 %vm729_vm4, %v6743_v44  ;;  %v8228_v44 = vcombine.low %v3817_v49, %v3827_v61  ;;  %v8258_v49 = vrot.slane %v3901_v14, 4  ;;  %v8266_v61 = vrot.slane %v3883_v60, 4  ;;  %v8276_v27 = vsel %vm7434_vm7, %v5809_v32, %v4418_v53  ;;  %v6747_v60 = vld [vmem:[%s7004_s17 + $0x18] sm:$0xff]   ;;  %v6748_v32 = vld [vmem:[%s7004_s17 + $0x24] sm:$0xff]  }
 0x125   : > { %6284 = vmatprep.mubr.msk.bf16.mxu0 %vm729_vm4, %v6744_v37  ;;  %v4420_v10 = vrot.slane %v4418_v53, 4  ;;  %v4428_v14 = vrot.slane %v8013_v8, 5  ;;  %v8282_v17 = vsel %vm7434_vm7, %v5810_v25, %v4425_v38  ;;  %v4427_v23 = vrot.slane %v4425_v38, 4  ;;  %v8453_v37 = vld [vmem:[%s7004_s17 + $0xc8] sm:$0x1] }
 0x126   : > { %v5811_v6 = vrot.slane %v5795_v36, 9  ;;  %v4435_v8 = vrot.slane %v8037_v2, 5  ;;  %v5812_v34 = vrot.slane %v5796_v30, 9  ;;  %v4439_v47 = vrot.slane %v8049_v13, 5  ;;  %v5798_v2 = vld [vmem:[%s7004_s17 + $0x6c] sm:$0xe] }
 0x127   : > { %v8290_v45 = vsel %vm7434_vm7, %v4420_v10, %v4421_v11  ;;  %v4442_v25 = vrot.slane %v8091_v5, 5  ;;  %v4446_v10 = vrot.slane %v8058_v41, 5  ;;  %v5814_v5 = vrot.slane %v5798_v2, 9  ;;  %v8389_v41 = vld [vmem:[%s7004_s17 + $0xa4] sm:$0x1] }
 0x128   : > { %v8311_v11 = vsel %vm7434_vm7, %v5812_v34, %v4439_v47  ;;  %v4441_v36 = vrot.slane %v4439_v47, 4  ;;  %v4453_v34 = vrot.slane %v8095_v22, 5  ;;  %v4456_v47 = vrot.slane %v8137_v48, 5 }
 0x129   : > { %6149 = vmatmul.mubr.msk.bf16.gmra.mrb[28].mxu1 %vm729_vm4, %v9006_v9  ;;  %v4463_v48 = vrot.slane %v8144_v55, 5 }
 0x12a   : > { %6154 = vmatprep.mubr.msk.bf16.mxu1 %vm729_vm4, %v6746_v31  ;;  %v4432_v31 = vrot.slane %v7997_v51, 5  ;;  %v8300_v51 = vsel %vm7434_vm7, %v4427_v23, %v4428_v14  ;;  %v4449_v14 = vrot.slane %v8110_v43, 5  ;;  %v5799_v23 = vld [vmem:[%s7004_s17 + $0x78] sm:$0xe]  ;;  %v4455_v22 = vrot.slane %v4453_v34, 4 }
 0x12c   : > { %6285 = vmatmul.mubr.msk.bf16.gmra.mrb[28].mxu0 %vm729_vm4, %v6745_v21  ;;  %v5797_v21 = vld [vmem:[%s7004_s17 + $0x60] sm:$0xe]  ;;  %v4434_v53 = vrot.slane %v4432_v31, 4 }
 0x12d   : > { %6290 = vmatprep.mubr.msk.bf16.mxu0 %vm729_vm4, %v8025_v15  ;;  %v8304_v15 = vsel %vm7434_vm7, %v5811_v6, %v4432_v31  ;;  %v5813_v30 = vrot.slane %v5797_v21, 9  ;;  %v8326_v31 = vsel %vm7434_vm7, %v4441_v36, %v4442_v25  ;;  %v8340_v21 = vsel %vm7434_vm7, %v5814_v5, %v4453_v34  ;;  %v8369_v5 = vld [vmem:[%s7004_s17 + $0x98] sm:$0x1]  ;;  %v8372_v34 = vld [vmem:[%s7004_s17 + $0xa0] sm:$0xf] }
 0x12e   : > { %v8316_v38 = vsel %vm7434_vm7, %v4434_v53, %v4435_v8  ;;  %v5800_v8 = vld [vmem:[%s7004_s17 + $0x84] sm:$0xe]  ;;  %v5815_v53 = vrot.slane %v5799_v23, 9  ;;  %v4467_v25 = vrot.slane %v8150_v7, 5  ;;  %v6750_v23 = vld [vmem:[%s7004_s17 + $0x3c] sm:$0xff]   ;;  %v9026_v57 = vcombine.low %v8311_v11, %v8326_v31 }
 0x12f   : > { %v8335_v43 = vsel %vm7434_vm7, %v5813_v30, %v4446_v10  ;;  %v5816_v36 = vrot.slane %v5800_v8, 9  ;;  %v5801_v30 = vld [vmem:[%s7004_s17 + $0x90] sm:$0xe]  ;;  %v5803_v8 = vld [vmem:[%s7004_s17 + $0xa8] sm:$0xe] }
 0x130   : > { %v5819_v6 = vrot.slane %v5803_v8, 9  ;;  %v5743_v8 = vld [vmem:[%s7004_s17 + $0x9c] sm:$0xf]  ;;  %v4959_v11 = vld [vmem:[%s8959_s3] sm:$0xf] }
 0x131   : > { %6155 = vmatmul.mubr.msk.bf16.vlgmr.msra.gmra.mrb[0].mxu1 %vm729_vm4, %v6747_v60  ;;  %v4448_v60 = vrot.slane %v4446_v10, 4  ;;  %v9007_v10 = vld [vmem:[#allocation6_spill] sm:$0xff]  ;;  %6655 = vmatprep.subr.msk.bf16.mxu1 %vm5016_vm8, %v4959_v11 }
 0x132   : > { %6158 = vmatprep.mubr.msk.bf16.mxu1 %vm729_vm4, %v6748_v32  ;;  %v4460_v32 = vrot.slane %v8107_v26, 5  ;;  %v6749_v26 = vld [vmem:[%s7004_s17 + $0x30] sm:$0xff]  }
 0x133   : > { %v8347_v2 = vsel %vm7434_vm7, %v4448_v60, %v4449_v14  ;;  %v8361_v14 = vsel %vm7434_vm7, %v4455_v22, %v4456_v47  ;;  %v8378_v60 = vsel %vm7434_vm7, %v5816_v36, %v4467_v25  ;;  %v4469_v47 = vrot.slane %v4467_v25, 4 }
 0x134   : > { %6291 = vmatmul.mubr.msk.bf16.vlgmr.msra.gmra.mrb[0].mxu0 %vm729_vm4, %v8075_v29  ;;  %v8365_v55 = vsel %vm7434_vm7, %v5815_v53, %v4460_v32  ;;  %v4462_v7 = vrot.slane %v4460_v32, 4  ;;  %9009 = vst [vmem:[#allocation8_spill] sm:$0xff] %v8378_v60  ;;  %v4470_v22 = vrot.slane %v8179_v52, 5  ;;  %v5817_v32 = vrot.slane %v5801_v30, 9  ;;  %v8404_v30 = vld [vmem:[%s7004_s17 + $0xb8] sm:$0xf] }
 0x135   : > { %6323 = vmatpush3.bf16.msra.mxu0 %v8034_v54  ;;  %6294 = vmatprep.mubr.msk.bf16.mxu0 %vm729_vm4, %v9007_v10  ;;  %9008 = vst [vmem:[#allocation7_spill] sm:$0xff] %v8365_v55  ;;  %v5802_v54 = vld [vmem:[%s7004_s17 + $0x9c] sm:$0xe]  ;;  %v4474_v10 = vrot.slane %v8199_v33, 5  ;;  %v4477_v29 = vrot.slane %v8369_v5, 5  ;;  %v4495_v4 = vrot.slane %v8404_v30, 5 }
 0x136   : > { %v8383_v53 = vsel %vm7434_vm7, %v4462_v7, %v4463_v48  ;;  %v8395_v25 = vsel %vm7434_vm7, %v4469_v47, %v4470_v22  ;;  %v5818_v52 = vrot.slane %v5802_v54, 9  ;;  %v4481_v48 = vrot.slane %v8372_v34, 5  ;;  %v5804_v7 = vld [vmem:[%s7004_s17 + $0xb4] sm:$0xe]  ;;  %v8401_v33 = vld [vmem:[%s7004_s17 + $0xac] sm:$0xf] }
 0x137   : > { %9010 = vst [vmem:[#allocation5_spill] sm:$0xff] %v8383_v53  ;;  %9011 = vst [vmem:[#allocation6_spill] sm:$0xff] %v8395_v25  ;;  %v8410_v36 = vsel %vm7434_vm7, %v5817_v32, %v4474_v10  ;;  %v4476_v54 = vrot.slane %v4474_v10, 4  ;;  %v4484_v47 = vrot.slane %v8389_v41, 5  ;;  %v4488_v9 = vrot.slane %v8401_v33, 5 }
 0x138   : > { %9012 = vst [vmem:[#allocation10_spill] sm:$0xff] %v8410_v36  ;;  %v8419_v22 = vsel %vm7434_vm7, %v5818_v52, %v4481_v48  ;;  %v4483_v13 = vrot.slane %v4481_v48, 4  ;;  %v6751_v52 = vld [vmem:[%s7004_s17 + $0x48] sm:$0xff]   ;;  %v8434_v48 = vld [vmem:[%s7004_s17 + $0xbc] sm:$0x1]  ;;  %v5821_v36 = vrot.slane %v5805_v40, 9 }
 0x139   : > { %6159 = vmatmul.mubr.msk.bf16.gmra.mrb[4].mxu1 %vm729_vm4, %v6749_v26  ;;  %v8415_v26 = vld [vmem:[%s7004_s17 + $0xb0] sm:$0x1]  ;;  %9013 = vst [vmem:[#allocation11_spill] sm:$0xff] %v8419_v22  ;;  %v8424_v32 = vsel %vm7434_vm7, %v4476_v54, %v4477_v29  ;;  %v4490_v46 = vrot.slane %v4488_v9, 4  ;;  %v4502_v25 = vrot.slane %v8450_v12, 5  ;;  %v4505_v60 = vrot.slane %v8453_v37, 5 }
 0x13a   : > { %6162 = vmatprep.mubr.msk.bf16.mxu1 %vm729_vm4, %v6750_v23  ;;  %9014 = vst [vmem:[#allocation12_spill] sm:$0xff] %v8424_v32  ;;  %v4491_v10 = vrot.slane %v8415_v26, 5  ;;  %v5820_v23 = vrot.slane %v5804_v7, 9  ;;  %v8440_v54 = vsel %vm7434_vm7, %v4483_v13, %v4484_v47  ;;  %v8444_v7 = vsel %vm7434_vm7, %v5819_v6, %v4488_v9  ;;  %v6752_v9 = vld [vmem:[%s7004_s17 + $0x54] sm:$0xff]   ;;  %v8464_v32 = vld [vmem:[%s7004_s17 + $0xd0] sm:$0xf] }
 0x13b   : > { %9015 = vst [vmem:[#allocation13_spill] sm:$0xff] %v8440_v54  ;;  %v4497_v6 = vrot.slane %v4495_v4, 4  ;;  %v4498_v47 = vrot.slane %v8434_v48, 5  ;;  %v8473_v29 = vld [vmem:[%s7004_s17 + $0xd4] sm:$0x1]  ;;  %v4509_v22 = vrot.slane %v8464_v32, 5  ;;  %v8487_v40 = vsel %vm7434_vm7, %v5821_v36, %v4502_v25 }
 0x13c   : > { %6295 = vmatmul.mubr.msk.bf16.gmra.mrb[4].mxu0 %vm729_vm4, %v8220_v28  ;;  %v5806_v28 = vld [vmem:[%s7004_s17 + $0xcc] sm:$0xe]  ;;  %v8459_v13 = vsel %vm7434_vm7, %v5820_v23, %v4495_v4  ;;  %v5746_v53 = vld [vmem:[%s7004_s17 + $0xa8] sm:$0xf]  ;;  %v4512_v55 = vrot.slane %v8473_v29, 5  ;;  %v3925_v23 = vshrl.u32 %v5743_v8, 16 }
 0x13d   : > { %6298 = vmatprep.mubr.msk.bf16.mxu0 %vm729_vm4, %v8222_v56  ;;  %v8468_v56 = vsel %vm7434_vm7, %v4490_v46, %v4491_v10  ;;  %v8479_v4 = vsel %vm7434_vm7, %v4497_v6, %v4498_v47  ;;  %v5822_v54 = vrot.slane %v5806_v28, 9  ;;  %v4504_v10 = vrot.slane %v4502_v25, 4  ;;  %v9032_v31 = vld [vmem:[#allocation8_spill] sm:$0xff] }
 0x13e   : > { %9016 = vst [vmem:[#allocation14_spill] sm:$0xff] %v8468_v56  ;;  %v3928_v56 = vshll.u32 %v5743_v8, 16  ;;  %v4511_v6 = vrot.slane %v4509_v22, 4  ;;  %v9017_v47 = vor.u32 %v8206_v18, %v8204_v59  ;;  %v3934_v25 = vshll.u32 %v8372_v34, 16 }
 0x13f   : > { %v8493_v28 = vsel %vm7434_vm7, %v5822_v54, %v4509_v22  ;;  %v3938_v46 = vshrl.u32 %v8372_v34, 16  ;;  %v3949_v8 = vshrl.u32 %v5746_v53, 16  ;;  %v3952_v54 = vshll.u32 %v5746_v53, 16 }
 0x140   : > { %v3894_v36 = vrot.slane %v9017_v47, 4  ;;  %v3907_v18 = vor.u32 %v8260_v63, %v8258_v49  ;;  %v3958_v34 = vshll.u32 %v8401_v33, 16  ;;  %v3930_v47 = vrot.slane %v3928_v56, 5 }
 0x141   : > { %6163 = vmatmul.mubr.msk.bf16.gmra.mrb[8].mxu1 %vm729_vm4, %v6751_v52  ;;  %v8503_v52 = vsel %vm7434_vm7, %v4504_v10, %v4505_v60  ;;  %v3962_v60 = vshrl.u32 %v8401_v33, 16  ;;  %v6753_v10 = vld [vmem:[%s7004_s17 + $0x60] sm:$0xff]   ;;  %v9018_v49 = vsel %vm7022_vm3, %v8192_v39, %v8187_v19  ;;  %v9019_v63 = vsel %vm7022_vm3, %v8185_v1, %v8139_v50  ;;  %v6754_v33 = vld [vmem:[%s7004_s17 + $0x6c] sm:$0xff]  }
 0x142   : > { %6166 = vmatprep.mubr.msk.bf16.mxu1 %vm729_vm4, %v6752_v9  ;;  %v5838_v22 = vcombine.low %v8487_v40, %v8503_v52  ;;  %v8509_v9 = vsel %vm7434_vm7, %v4511_v6, %v4512_v55  ;;  %v3917_v55 = vor.u32 %v8272_v42, %v8268_v62  ;;  %v3927_v6 = vrot.slane %v3925_v23, 4 }
 0x143   : > { %v5839_v53 = vcombine.low %v8493_v28, %v8509_v9  ;;  %v3889_v42 = vsel %vm7022_vm3, %v8266_v61, %v8204_v59  ;;  %v8543_v56 = vrot.slane %v3934_v25, 5  ;;  %v3940_v23 = vrot.slane %v3938_v46, 4 }
 0x144   : > { %6299 = vmatmul.mubr.msk.bf16.gmra.mrb[8].mxu0 %vm729_vm4, %v8226_v16  ;;  %v3920_v16 = vshll.u32 %v8369_v5, 16  ;;  %v3899_v5 = vsel %vm7022_vm3, %v3894_v36, %v8252_v35  ;;  %v3951_v19 = vrot.slane %v3949_v8, 4  ;;  %v3954_v39 = vrot.slane %v3952_v54, 5  ;;  %v5749_v36 = vld [vmem:[%s7004_s17 + $0xb4] sm:$0xf] }
 0x145   : > { %6302 = vmatprep.mubr.msk.bf16.mxu0 %vm729_vm4, %v8228_v44  ;;  %v5766_v44 = vcombine.low %v9019_v63, %v9018_v49  ;;  %v9020_v50 = vsel %vm7022_vm3, %v8202_v24, %v8196_v0  ;;  %v9021_v1 = vsel %vm7022_vm3, %v8194_v58, %v8146_v3  ;;  %v3908_v61 = vrot.slane %v3907_v18, 4 }
 0x146   : > { %v5767_v59 = vcombine.low %v9021_v1, %v9020_v50  ;;  %v8555_v49 = vrot.slane %v3958_v34, 5  ;;  %v3964_v35 = vrot.slane %v3962_v60, 4  ;;  %v3918_v46 = vrot.slane %v3917_v55, 4  ;;  %v5752_v34 = vld [vmem:[%s7004_s17 + $0xc0] sm:$0xf] }
 0x147   : > { %v3922_v25 = vrot.slane %v3920_v16, 5  ;;  %v3931_v8 = vor.u32 %v3930_v47, %v3927_v6  ;;  %v3944_v0 = vshll.u32 %v8389_v41, 16  ;;  %v5768_v24 = vcombine.low %v3889_v42, %v3899_v5  ;;  %v6755_v16 = vld [vmem:[%s7004_s17 + $0x78] sm:$0xff]  }
 0x148   : > { %v3941_v3 = vor.u32 %v3940_v23, %v8543_v56  ;;  %v3955_v58 = vor.u32 %v3954_v39, %v3951_v19  ;;  %v3968_v54 = vshll.u32 %v8415_v26, 16  ;;  %v3973_v18 = vshrl.u32 %v5749_v36, 16 }
 0x149   : > { %6167 = vmatmul.mubr.msk.bf16.gmra.mrb[12].mxu1 %vm729_vm4, %v6753_v10  ;;  %v3965_v60 = vor.u32 %v3964_v35, %v8555_v49  ;;  %v3976_v10 = vshll.u32 %v5749_v36, 16  ;;  %v3982_v55 = vshll.u32 %v8404_v30, 16  ;;  %v3986_v41 = vshrl.u32 %v8404_v30, 16 }
 0x14a   : > { %6170 = vmatprep.mubr.msk.bf16.mxu1 %vm729_vm4, %v6754_v33  ;;  %v3913_v6 = vsel %vm7022_vm3, %v3908_v61, %v8268_v62  ;;  %v3923_v26 = vsel %vm7022_vm3, %v3918_v46, %v3922_v25  ;;  %v3932_v47 = vrot.slane %v3931_v8, 4  ;;  %v3946_v63 = vrot.slane %v3944_v0, 5 }
 0x14b   : > { %v3997_v33 = vshrl.u32 %v5752_v34, 16  ;;  %v4000_v42 = vshll.u32 %v5752_v34, 16  ;;  %v4006_v5 = vshll.u32 %v8450_v12, 16  ;;  %v4010_v23 = vshrl.u32 %v8450_v12, 16  ;;  %v5755_v12 = vld [vmem:[%s7004_s17 + $0xcc] sm:$0xf] }
 0x14c   : > { %6303 = vmatmul.mubr.msk.bf16.gmra.mrb[12].mxu0 %vm729_vm4, %v5766_v44  ;;  %v6756_v44 = vld [vmem:[%s7004_s17 + $0x84] sm:$0xff]   ;;  %v3942_v30 = vrot.slane %v3941_v3, 4  ;;  %v3956_v19 = vrot.slane %v3955_v58, 4  ;;  %v3970_v39 = vrot.slane %v3968_v54, 5  ;;  %v3975_v50 = vrot.slane %v3973_v18, 4 }
 0x14d   : > { %6306 = vmatprep.mubr.msk.bf16.mxu0 %vm729_vm4, %v5767_v59  ;;  %v3966_v1 = vrot.slane %v3965_v60, 4  ;;  %v3978_v59 = vrot.slane %v3976_v10, 5  ;;  %v3984_v62 = vrot.slane %v3982_v55, 5  ;;  %v3988_v61 = vrot.slane %v3986_v41, 4  ;;  %v6757_v10 = vld [vmem:[%s7004_s17 + $0x90] sm:$0xff]  }
 0x14e   : > { %v5769_v35 = vcombine.low %v3913_v6, %v3923_v26  ;;  %v3999_v36 = vrot.slane %v3997_v33, 4  ;;  %v4002_v46 = vrot.slane %v4000_v42, 5  ;;  %v4008_v25 = vrot.slane %v4006_v5, 5 }
 0x14f   : > { %v4012_v8 = vrot.slane %v4010_v23, 4  ;;  %v3937_v0 = vsel %vm7022_vm3, %v3932_v47, %v8543_v56  ;;  %v3947_v3 = vsel %vm7022_vm3, %v3942_v30, %v3946_v63  ;;  %v3992_v58 = vshll.u32 %v8434_v48, 16 }
 0x150   : > { %v3961_v54 = vsel %vm7022_vm3, %v3956_v19, %v8555_v49  ;;  %v3971_v18 = vsel %vm7022_vm3, %v3966_v1, %v3970_v39  ;;  %v3979_v34 = vor.u32 %v3978_v59, %v3975_v50  ;;  %v3989_v60 = vor.u32 %v3988_v61, %v3984_v62  ;;  %v6759_v50 = vld [vmem:[%s7004_s17 + $0xa8] sm:$0xff]  }
 0x151   : > { %6171 = vmatmul.mubr.msk.bf16.gmra.mrb[16].mxu1 %vm729_vm4, %v6755_v16  ;;  %v4021_v56 = vshrl.u32 %v5755_v12, 16  ;;  %v4024_v55 = vshll.u32 %v5755_v12, 16  ;;  %v4030_v41 = vshll.u32 %v8464_v32, 16  ;;  %v4034_v48 = vshrl.u32 %v8464_v32, 16  ;;  %v6758_v16 = vld [vmem:[%s7004_s17 + $0x9c] sm:$0xff]  }
 0x152   : > { %6174 = vmatprep.mubr.msk.bf16.mxu1 %vm729_vm4, %v6756_v44  ;;  %v4013_v6 = vor.u32 %v4012_v8, %v4008_v25  ;;  %v4016_v26 = vshll.u32 %v8453_v37, 16  ;;  %v5770_v49 = vcombine.low %v3937_v0, %v3947_v3  ;;  %v5771_v47 = vcombine.low %v3961_v54, %v3971_v18  ;;  %v6811_v12 = vld [vmem:[%s7004_s17 + $0x1c] sm:$0xf]  ;;  %v5791_v0 = vld [vmem:[%s7004_s17 + $0x18] sm:$0xe] }
 0x153   : > { %v3980_v63 = vrot.slane %v3979_v34, 4  ;;  %v3990_v44 = vrot.slane %v3989_v60, 4  ;;  %v3994_v33 = vrot.slane %v3992_v58, 5  ;;  %v4023_v42 = vrot.slane %v4021_v56, 4  ;;  %v6812_v60 = vld [vmem:[%s7004_s17 + $0x20] sm:$0x1] }
 0x154   : > { %6307 = vmatmul.mubr.msk.bf16.gmra.mrb[16].mxu0 %vm729_vm4, %v5768_v24  ;;  %v4003_v24 = vor.u32 %v4002_v46, %v3999_v36  ;;  %v4026_v5 = vrot.slane %v4024_v55, 5  ;;  %v4032_v23 = vrot.slane %v4030_v41, 5  ;;  %v4036_v30 = vrot.slane %v4034_v48, 4  ;;  %v6760_v36 = vld [vmem:[%s7004_s17 + $0xb4] sm:$0xff]   ;;  %v6761_v56 = vld [vmem:[%s7004_s17 + $0xc0] sm:$0xff]  }
 0x155   : > { %6310 = vmatprep.mubr.msk.bf16.mxu0 %vm729_vm4, %v5769_v35  ;;  %v4014_v19 = vrot.slane %v4013_v6, 4  ;;  %v4018_v37 = vrot.slane %v4016_v26, 5  ;;  %v3985_v39 = vsel %vm7022_vm3, %v3980_v63, %v3984_v62  ;;  %v3995_v1 = vsel %vm7022_vm3, %v3990_v44, %v3994_v33  ;;  %v6813_v48 = vld [vmem:[%s7004_s17 + $0x28] sm:$0xf]  ;;  %v5792_v26 = vld [vmem:[%s7004_s17 + $0x24] sm:$0xe] }
 0x156   : > { %v4004_v32 = vrot.slane %v4003_v24, 4  ;;  %v4027_v59 = vor.u32 %v4026_v5, %v4023_v42  ;;  %v4037_v61 = vor.u32 %v4036_v30, %v4032_v23  ;;  %v4040_v35 = vshll.u32 %v8473_v29, 16  ;;  %v9022_v33 = vld [vmem:[#allocation9_spill] sm:$0xff]  ;;  %s6820_s17 = scalar_lea.vmem %s6819_s16, 8192 }
 0x157   : > { %v4019_v8 = vsel %vm7022_vm3, %v4014_v19, %v4018_v37  ;;  %v4404_v62 = vrot.slane %v6811_v12, 5  ;;  %v5772_v3 = vcombine.low %v3985_v39, %v3995_v1  ;;  %v5807_v34 = vrot.slane %v5791_v0, 9  ;;  %v9038_v39 = vld [vmem:[#allocation11_spill] sm:$0xff]  ;;  %p6822_p2 = scmp.lt.s32.totalorder %s6820_s17, %s6814_s14 }
 0x158   : > { %v4009_v46 = vsel %vm7022_vm3, %v4004_v32, %v4008_v25  ;;  %v4028_v54 = vrot.slane %v4027_v59, 4  ;;  %v4038_v18 = vrot.slane %v4037_v61, 4  ;;  %v4042_v29 = vrot.slane %v4040_v35, 5  ;;  %v9041_v59 = vld [vmem:[#allocation14_spill] sm:$0xff] }
 0x159   : > { %6175 = vmatmul.mubr.msk.bf16.gmra.mrb[20].mxu1 %vm729_vm4, %v6757_v10  ;;  %v5773_v58 = vcombine.low %v4009_v46, %v4019_v8  ;;  %v4406_v25 = vrot.slane %v4404_v62, 4  ;;  %v4407_v10 = vrot.slane %v6812_v60, 5  ;;  %v4405_v24 = vsel %vm7434_vm7, %v5807_v34, %v4404_v62  ;;  %p6823_p3 = por %p6822_p2, %p6821_p1 }
 0x15a   : > { %6178 = vmatprep.mubr.msk.bf16.mxu1 %vm729_vm4, %v6758_v16  ;;  %v4033_v55 = vsel %vm7022_vm3, %v4028_v54, %v4032_v23  ;;  %v4043_v41 = vsel %vm7022_vm3, %v4038_v18, %v4042_v29  ;;  %v4411_v16 = vrot.slane %v6813_v48, 5  ;;  %v5808_v63 = vrot.slane %v5792_v26, 9 }
 0x15b   : > { %v4408_v6 = vsel %vm7434_vm7, %v4406_v25, %v4407_v10  ;;  %v4414_v42 = vrot.slane %v9022_v33, 5  ;;  %v9023_v30 = vcombine.low %v8276_v27, %v8290_v45  ;;  %v9024_v32 = vcombine.low %v8282_v17, %v8300_v51  ;;  %v9029_v45 = vld [vmem:[#allocation7_spill] sm:$0xff]  ;;  %v9030_v51 = vld [vmem:[#allocation5_spill] sm:$0xff]  ;;  %p6824_p5 = pnand %p6823_p3, %p6817_p0 }
 0x15c   : > { %6311 = vmatmul.mubr.msk.bf16.gmra.mrb[20].mxu0 %vm729_vm4, %v5770_v49  ;;  %v5774_v49 = vcombine.low %v4033_v55, %v4043_v41  ;;  %v4413_v44 = vrot.slane %v4411_v16, 4  ;;  %v4412_v20 = vsel %vm7434_vm7, %v5808_v63, %v4411_v16  ;;  %v9025_v19 = vcombine.low %v8304_v15, %v8316_v38 }
 0x15d   : > { %6314 = vmatprep.mubr.msk.bf16.mxu0 %vm729_vm4, %v5771_v47  ;;  %v5824_v47 = vcombine.low %v4405_v24, %v4408_v6  ;;  %v9027_v27 = vcombine.low %v8335_v43, %v8347_v2  ;;  %v9028_v17 = vcombine.low %v8340_v21, %v8361_v14  ;;  %v9031_v15 = vcombine.low %v9029_v45, %v9030_v51  ;;  %v9033_v43 = vld [vmem:[#allocation6_spill] sm:$0xff]  ;;  %v9036_v14 = vld [vmem:[#allocation12_spill] sm:$0xff] }
 0x15e   : > { %v4415_v5 = vsel %vm7434_vm7, %v4413_v44, %v4414_v42  ;;  %v5018_v38 = vsel %vm5016_vm8, %v4959_v11, 0  ;;  %v9034_v2 = vcombine.low %v9032_v31, %v9033_v43  ;;  %v9035_v21 = vld [vmem:[#allocation10_spill] sm:$0xff]  ;;  %v9042_v61 = vcombine.low %v8444_v7, %v9041_v59 }
 0x15f   : > { %v5825_v23 = vcombine.low %v4412_v20, %v4415_v5  ;;  %6357 = vmatpush3.bf16.msra.mxu1 %v5018_v38  ;;  %v9037_v37 = vcombine.low %v9035_v21, %v9036_v14  ;;  %v9043_v35 = vcombine.low %v8459_v13, %v8479_v4 }
 0x161   : > { %6179 = vmatmul.mubr.msk.bf16.gmra.mrb[24].mxu1 %vm729_vm4, %v6759_v50  ;;  %v9039_v50 = vld [vmem:[#allocation13_spill] sm:$0xff] }
 0x162   : > { %6182 = vmatprep.mubr.msk.bf16.mxu1 %vm729_vm4, %v6760_v36  ;;  %v9040_v1 = vcombine.low %v9038_v39, %v9039_v50 }
 0x164   : > { %6315 = vmatmul.mubr.msk.bf16.gmra.mrb[24].mxu0 %vm729_vm4, %v5772_v3 }
 0x165   : > { %6318 = vmatprep.mubr.msk.bf16.mxu0 %vm729_vm4, %v5773_v58 }
 0x169   : > { %6183 = vmatmul.mubr.msk.bf16.gmra.mrb[28].mxu1 %vm729_vm4, %v6761_v56 }
 0x16c   : > { %6319 = vmatmul.mubr.msk.bf16.gmra.mrb[28].mxu0 %vm729_vm4, %v5774_v49 }
 0x16d   : > { %6324 = vmatprep.mubr.msk.bf16.mxu0 %vm729_vm4, %v5824_v47  ;;  %v8751_v47 = vld [vmem:[%s8958_s2] ss:$0 sm:$0xff] }
 0x174   : > { %6325 = vmatmul.mubr.msk.bf16.vlgmr.msra.gmra.mrb[0].mxu0 %vm729_vm4, %v5825_v23 }
 0x175   : > { %6328 = vmatprep.mubr.msk.bf16.mxu0 %vm729_vm4, %v9023_v30 }
 0x17c   : > { %6329 = vmatmul.mubr.msk.bf16.gmra.mrb[4].mxu0 %vm729_vm4, %v9024_v32 }
 0x17d   : > { %6332 = vmatprep.mubr.msk.bf16.mxu0 %vm729_vm4, %v9025_v19 }
 0x184   : > { %6333 = vmatmul.mubr.msk.bf16.gmra.mrb[8].mxu0 %vm729_vm4, %v9026_v57 }
 0x185   : > { %6336 = vmatprep.mubr.msk.bf16.mxu0 %vm729_vm4, %v9027_v27 }
 0x18c   : > { %6337 = vmatmul.mubr.msk.bf16.gmra.mrb[12].mxu0 %vm729_vm4, %v9028_v17 }
 0x18d   : > { %6340 = vmatprep.mubr.msk.bf16.mxu0 %vm729_vm4, %v9031_v15 }
 0x194   : > { %6341 = vmatmul.mubr.msk.bf16.gmra.mrb[16].mxu0 %vm729_vm4, %v9034_v2 }
 0x195   : > { %6344 = vmatprep.mubr.msk.bf16.mxu0 %vm729_vm4, %v9037_v37 }
 0x19c   : > { %6345 = vmatmul.mubr.msk.bf16.gmra.mrb[20].mxu0 %vm729_vm4, %v9040_v1 }
 0x19d   : > { %6348 = vmatprep.mubr.msk.bf16.mxu0 %vm729_vm4, %v9042_v61 }
 0x1a4   : > { %6349 = vmatmul.mubr.msk.bf16.gmra.mrb[24].mxu0 %vm729_vm4, %v9043_v35 }
 0x1a5   : > { %6352 = vmatprep.mubr.msk.bf16.mxu0 %vm729_vm4, %v5838_v22 }
 0x1ac   : > { %6353 = vmatmul.mubr.msk.bf16.gmra.mrb[28].mxu0 %vm729_vm4, %v5839_v53 }
 0x204   : > { %v6156_v36 = vpop.f32.mrb[0].mxu1 }
 0x205   : > { %v1895_v46 = vpop.f32.mrb[1].mxu1 }
 0x206   : > { %v6157_v7 = vpop.f32.mrb[2].mxu1 }
 0x207   : > { %v1898_v8 = vpop.f32.mrb[3].mxu1 }
 0x20c   : > { %v6160_v12 = vpop.f32.mrb[4].mxu1 }
 0x20d   : > { %v1911_v62 = vpop.f32.mrb[5].mxu1 }
 0x20e   : > { %v6161_v0 = vpop.f32.mrb[6].mxu1 }
 0x20f   : > { %v1914_v13 = vpop.f32.mrb[7].mxu1 }
 0x214   : > { %v8700_v4 = vpop.f32.mrb[8].mxu1 }
 0x215   : > { %v8702_v3 = vpop.f32.mrb[9].mxu1 }
 0x216   : > { %v8704_v40 = vpop.f32.mrb[10].mxu1 }
 0x217   : > { %v8706_v52 = vpop.f32.mrb[11].mxu1 }
 0x21c   : > { %v8708_v22 = vpop.f32.mrb[12].mxu1 }
 0x21d   : > { %v8710_v28 = vpop.f32.mrb[13].mxu1 }
 0x21e   : > { %v8712_v9 = vpop.f32.mrb[14].mxu1 }
 0x21f   : > { %v8714_v53 = vpop.f32.mrb[15].mxu1 }
 0x224   : > { %v8716_v58 = vpop.f32.mrb[16].mxu1 }
 0x225   : > { %v8718_v54 = vpop.f32.mrb[17].mxu1 }
 0x226   : > { %v8720_v18 = vpop.f32.mrb[18].mxu1 }
 0x227   : > { %v8722_v29 = vpop.f32.mrb[19].mxu1 }
 0x22c   : > { %v8724_v34 = vpop.f32.mrb[20].mxu1 }
 0x22d   : > { %v8726_v25 = vpop.f32.mrb[21].mxu1 }
 0x22e   : > { %v8728_v60 = vpop.f32.mrb[22].mxu1 }
 0x22f   : > { %v8730_v10 = vpop.f32.mrb[23].mxu1 }
 0x234   : > { %v8732_v56 = vpop.f32.mrb[24].mxu1 }
 0x235   : > { %v8734_v55 = vpop.f32.mrb[25].mxu1 }
 0x236   : > { %v8736_v41 = vpop.f32.mrb[26].mxu1 }
 0x237   : > { %v8738_v48 = vpop.f32.mrb[27].mxu1 }
 0x23c   : > { %v8740_v16 = vpop.f32.mrb[28].mxu1 }
 0x23d   : > { %v8742_v24 = vpop.f32.mrb[29].mxu1 }
 0x23e   : > { %v8744_v6 = vpop.f32.mrb[30].mxu1 }
 0x23f   : > { %v8746_v26 = vpop.f32.mrb[31].mxu1 }
 0x247   : > { %v6326_v49 = vpop.f32.mrb[0].mxu0 }
 0x248   : > { %v6390_v63 = vadd.f32 %v6326_v49, %v6156_v36  ;;  %v4649_v44 = vpop.f32.mrb[1].mxu0 }
 0x249   : > { %v6391_v33 = vadd.f32 %v4649_v44, %v1895_v46  ;;  %v6327_v42 = vpop.f32.mrb[2].mxu0 }
 0x24a   : > { %v4817_v20 = vadd.f32 %v6390_v63, %v8751_v47  ;;  %v6392_v5 = vadd.f32 %v6327_v42, %v6157_v7  ;;  %v4652_v23 = vpop.f32.mrb[3].mxu0 }
 0x24b   : > { %v4815_v30 = vadd.f32 %v6391_v33, %v8751_v47  ;;  %v6393_v32 = vadd.f32 %v4652_v23, %v1898_v8 }
 0x24c   : > { %v4881_v19 = vmul.f32 0.1, %v4817_v20  ;;  %v4818_v57 = vadd.f32 %v6392_v5, %v8751_v47  ;;  %vm4849_vm9 = vcmp.gt.f32.partialorder %v4817_v20, 0.0 }
 0x24d   : > { %v4879_v27 = vmul.f32 0.1, %v4815_v30  ;;  %v4816_v17 = vadd.f32 %v6393_v32, %v8751_v47  ;;  %vm4847_vm10 = vcmp.gt.f32.partialorder %v4815_v30, 0.0 }
 0x24e   : > { %vm4850_vm11 = vcmp.gt.f32.partialorder %v4818_v57, 0.0  ;;  %v4882_v45 = vmul.f32 0.1, %v4818_v57  ;;  %v4913_v11 = vsel %vm4849_vm9, %v4817_v20, %v4881_v19 }
 0x24f   : > { %vm4848_vm12 = vcmp.gt.f32.partialorder %v4816_v17, 0.0  ;;  %v4880_v51 = vmul.f32 0.1, %v4816_v17  ;;  %v6330_v15 = vpop.f32.mrb[4].mxu0  ;;  %v4911_v2 = vsel %vm4847_vm10, %v4815_v30, %v4879_v27 }
 0x250   : > { %v4914_v38 = vsel %vm4850_vm11, %v4818_v57, %v4882_v45  ;;  %v6394_v31 = vadd.f32 %v6330_v15, %v6160_v12  ;;  %v4665_v43 = vpop.f32.mrb[5].mxu0 }
 0x251   : > { %v4944_v21 = vpack.c.bf16 %v4914_v38, %v4913_v11  ;;  %v4912_v14 = vsel %vm4848_vm12, %v4816_v17, %v4880_v51  ;;  %v6395_v37 = vadd.f32 %v4665_v43, %v1911_v62  ;;  %v6331_v39 = vpop.f32.mrb[6].mxu0 }
 0x252   : > { %v4821_v50 = vadd.f32 %v6394_v31, %v8751_v47  ;;  %v6396_v1 = vadd.f32 %v6331_v39, %v6161_v0  ;;  %v4668_v59 = vpop.f32.mrb[7].mxu0  ;;  %v4943_v61 = vpack.c.bf16 %v4912_v14, %v4911_v2 }
 0x253   : > { %v4819_v35 = vadd.f32 %v6395_v37, %v8751_v47  ;;  %v6397_v36 = vadd.f32 %v4668_v59, %v1914_v13 }
 0x254   : > { %v4885_v46 = vmul.f32 0.1, %v4821_v50  ;;  %v4822_v7 = vadd.f32 %v6396_v1, %v8751_v47  ;;  %6358 = vmatprep.mubr.msk.bf16.mxu1 %vm4967_vm13, %v4943_v61  ;;  %vm4853_vm14 = vcmp.gt.f32.partialorder %v4821_v50, 0.0 }
 0x255   : > { %v4883_v8 = vmul.f32 0.1, %v4819_v35  ;;  %v4820_v12 = vadd.f32 %v6397_v36, %v8751_v47  ;;  %6359 = vmatmul.mubr.msk.bf16.vlgmr.msra.gmra.mrb[32].mxu1 %vm4967_vm13, %v4944_v21  ;;  %vm4851_vm15 = vcmp.gt.f32.partialorder %v4819_v35, 0.0 }
 0x256   : > { %vm4854_vm0 = vcmp.gt.f32.partialorder %v4822_v7, 0.0  ;;  %v4886_v62 = vmul.f32 0.1, %v4822_v7  ;;  %v4917_v63 = vsel %vm4853_vm14, %v4821_v50, %v4885_v46 }
 0x257   : > { %vm4852_vm1 = vcmp.gt.f32.partialorder %v4820_v12, 0.0  ;;  %v4884_v0 = vmul.f32 0.1, %v4820_v12  ;;  %v6334_v49 = vpop.f32.mrb[8].mxu0  ;;  %v4915_v42 = vsel %vm4851_vm15, %v4819_v35, %v4883_v8 }
 0x258   : > { %v4918_v44 = vsel %vm4854_vm0, %v4822_v7, %v4886_v62  ;;  %v6398_v13 = vadd.f32 %v6334_v49, %v8700_v4  ;;  %v4681_v33 = vpop.f32.mrb[9].mxu0 }
 0x259   : > { %v4916_v20 = vsel %vm4852_vm1, %v4820_v12, %v4884_v0  ;;  %v6399_v5 = vadd.f32 %v4681_v33, %v8702_v3  ;;  %v6335_v23 = vpop.f32.mrb[10].mxu0  ;;  %v4946_v30 = vpack.c.bf16 %v4918_v44, %v4917_v63 }
 0x25a   : > { %v4825_v32 = vadd.f32 %v6398_v13, %v8751_v47  ;;  %v6400_v19 = vadd.f32 %v6335_v23, %v8704_v40  ;;  %v4684_v57 = vpop.f32.mrb[11].mxu0  ;;  %v4945_v27 = vpack.c.bf16 %v4916_v20, %v4915_v42 }
 0x25b   : > { %v4823_v17 = vadd.f32 %v6399_v5, %v8751_v47  ;;  %v6401_v45 = vadd.f32 %v4684_v57, %v8706_v52 }
 0x25c   : > { %v4889_v51 = vmul.f32 0.1, %v4825_v32  ;;  %v4826_v4 = vadd.f32 %v6400_v19, %v8751_v47  ;;  %6362 = vmatprep.mubr.msk.bf16.mxu1 %vm4967_vm13, %v4945_v27  ;;  %vm4857_vm2 = vcmp.gt.f32.partialorder %v4825_v32, 0.0 }
 0x25d   : > { %v4887_v15 = vmul.f32 0.1, %v4823_v17  ;;  %v4824_v3 = vadd.f32 %v6401_v45, %v8751_v47  ;;  %6363 = vmatmul.mubr.msk.bf16.gmra.mrb[36].mxu1 %vm4967_vm13, %v4946_v30  ;;  %vm4855_vm3 = vcmp.gt.f32.partialorder %v4823_v17, 0.0 }
 0x25e   : > { %vm4858_vm4 = vcmp.gt.f32.partialorder %v4826_v4, 0.0  ;;  %v4890_v40 = vmul.f32 0.1, %v4826_v4  ;;  %v4921_v31 = vsel %vm4857_vm2, %v4825_v32, %v4889_v51 }
 0x25f   : > { %vm4856_vm5 = vcmp.gt.f32.partialorder %v4824_v3, 0.0  ;;  %v4888_v11 = vmul.f32 0.1, %v4824_v3  ;;  %v6338_v38 = vpop.f32.mrb[12].mxu0  ;;  %v4919_v21 = vsel %vm4855_vm3, %v4823_v17, %v4887_v15 }
 0x260   : > { %v4922_v43 = vsel %vm4858_vm4, %v4826_v4, %v4890_v40  ;;  %v6402_v52 = vadd.f32 %v6338_v38, %v8708_v22  ;;  %v4697_v2 = vpop.f32.mrb[13].mxu0 }
 0x261   : > { %v4920_v14 = vsel %vm4856_vm5, %v4824_v3, %v4888_v11  ;;  %v6403_v37 = vadd.f32 %v4697_v2, %v8710_v28  ;;  %v6339_v39 = vpop.f32.mrb[14].mxu0  ;;  %v4948_v50 = vpack.c.bf16 %v4922_v43, %v4921_v31 }
 0x262   : > { %v4829_v1 = vadd.f32 %v6402_v52, %v8751_v47  ;;  %v6404_v59 = vadd.f32 %v6339_v39, %v8712_v9  ;;  %v4700_v61 = vpop.f32.mrb[15].mxu0  ;;  %v4947_v35 = vpack.c.bf16 %v4920_v14, %v4919_v21 }
 0x263   : > { %v4827_v36 = vadd.f32 %v6403_v37, %v8751_v47  ;;  %v6405_v46 = vadd.f32 %v4700_v61, %v8714_v53 }
 0x264   : > { %v4893_v7 = vmul.f32 0.1, %v4829_v1  ;;  %v4830_v22 = vadd.f32 %v6404_v59, %v8751_v47  ;;  %6366 = vmatprep.mubr.msk.bf16.mxu1 %vm4967_vm13, %v4947_v35  ;;  %vm4861_vm6 = vcmp.gt.f32.partialorder %v4829_v1, 0.0 }
 0x265   : > { %v4891_v8 = vmul.f32 0.1, %v4827_v36  ;;  %v4828_v28 = vadd.f32 %v6405_v46, %v8751_v47  ;;  %6367 = vmatmul.mubr.msk.bf16.gmra.mrb[40].mxu1 %vm4967_vm13, %v4948_v50  ;;  %vm4859_vm7 = vcmp.gt.f32.partialorder %v4827_v36, 0.0 }
 0x266   : > { %vm4862_vm8 = vcmp.gt.f32.partialorder %v4830_v22, 0.0  ;;  %v4894_v9 = vmul.f32 0.1, %v4830_v22  ;;  %v4925_v0 = vsel %vm4861_vm6, %v4829_v1, %v4893_v7 }
 0x267   : > { %vm4860_vm9 = vcmp.gt.f32.partialorder %v4828_v28, 0.0  ;;  %v4892_v12 = vmul.f32 0.1, %v4828_v28  ;;  %v6342_v62 = vpop.f32.mrb[16].mxu0  ;;  %v4923_v44 = vsel %vm4859_vm7, %v4827_v36, %v4891_v8 }
 0x268   : > { %v4926_v49 = vsel %vm4862_vm8, %v4830_v22, %v4894_v9  ;;  %v6406_v53 = vadd.f32 %v6342_v62, %v8716_v58  ;;  %v4713_v63 = vpop.f32.mrb[17].mxu0 }
 0x269   : > { %v4924_v13 = vsel %vm4860_vm9, %v4828_v28, %v4892_v12  ;;  %v6407_v33 = vadd.f32 %v4713_v63, %v8718_v54  ;;  %v6343_v42 = vpop.f32.mrb[18].mxu0  ;;  %v4950_v20 = vpack.c.bf16 %v4926_v49, %v4925_v0 }
 0x26a   : > { %v4833_v5 = vadd.f32 %v6406_v53, %v8751_v47  ;;  %v6408_v23 = vadd.f32 %v6343_v42, %v8720_v18  ;;  %v4716_v30 = vpop.f32.mrb[19].mxu0  ;;  %v4949_v32 = vpack.c.bf16 %v4924_v13, %v4923_v44 }
 0x26b   : > { %v4831_v19 = vadd.f32 %v6407_v33, %v8751_v47  ;;  %v6409_v57 = vadd.f32 %v4716_v30, %v8722_v29 }
 0x26c   : > { %v4897_v27 = vmul.f32 0.1, %v4833_v5  ;;  %v4834_v58 = vadd.f32 %v6408_v23, %v8751_v47  ;;  %6370 = vmatprep.mubr.msk.bf16.mxu1 %vm4967_vm13, %v4949_v32  ;;  %vm4865_vm10 = vcmp.gt.f32.partialorder %v4833_v5, 0.0 }
 0x26d   : > { %v4895_v17 = vmul.f32 0.1, %v4831_v19  ;;  %v4832_v54 = vadd.f32 %v6409_v57, %v8751_v47  ;;  %6371 = vmatmul.mubr.msk.bf16.gmra.mrb[44].mxu1 %vm4967_vm13, %v4950_v20  ;;  %vm4863_vm11 = vcmp.gt.f32.partialorder %v4831_v19, 0.0 }
 0x26e   : > { %vm4866_vm12 = vcmp.gt.f32.partialorder %v4834_v58, 0.0  ;;  %v4898_v18 = vmul.f32 0.1, %v4834_v58  ;;  %v4929_v4 = vsel %vm4865_vm10, %v4833_v5, %v4897_v27 }
 0x26f   : > { %vm4864_vm14 = vcmp.gt.f32.partialorder %v4832_v54, 0.0  ;;  %v4896_v45 = vmul.f32 0.1, %v4832_v54  ;;  %v6346_v51 = vpop.f32.mrb[20].mxu0  ;;  %v4927_v40 = vsel %vm4863_vm11, %v4831_v19, %v4895_v17 }
 0x270   : > { %v4930_v15 = vsel %vm4866_vm12, %v4834_v58, %v4898_v18  ;;  %v6410_v29 = vadd.f32 %v6346_v51, %v8724_v34  ;;  %v4729_v3 = vpop.f32.mrb[21].mxu0 }
 0x271   : > { %v4928_v11 = vsel %vm4864_vm14, %v4832_v54, %v4896_v45  ;;  %v6411_v38 = vadd.f32 %v4729_v3, %v8726_v25  ;;  %v6347_v31 = vpop.f32.mrb[22].mxu0  ;;  %v4952_v43 = vpack.c.bf16 %v4930_v15, %v4929_v4 }
 0x272   : > { %v4837_v52 = vadd.f32 %v6410_v29, %v8751_v47  ;;  %v6412_v2 = vadd.f32 %v6347_v31, %v8728_v60  ;;  %v4732_v21 = vpop.f32.mrb[23].mxu0  ;;  %v4951_v14 = vpack.c.bf16 %v4928_v11, %v4927_v40 }
 0x273   : > { %v4835_v37 = vadd.f32 %v6411_v38, %v8751_v47  ;;  %v6413_v39 = vadd.f32 %v4732_v21, %v8730_v10 }
 0x274   : > { %v4901_v50 = vmul.f32 0.1, %v4837_v52  ;;  %v4838_v34 = vadd.f32 %v6412_v2, %v8751_v47  ;;  %6374 = vmatprep.mubr.msk.bf16.mxu1 %vm4967_vm13, %v4951_v14  ;;  %vm4869_vm15 = vcmp.gt.f32.partialorder %v4837_v52, 0.0 }
 0x275   : > { %v4899_v1 = vmul.f32 0.1, %v4835_v37  ;;  %v4836_v25 = vadd.f32 %v6413_v39, %v8751_v47  ;;  %6375 = vmatmul.mubr.msk.bf16.gmra.mrb[48].mxu1 %vm4967_vm13, %v4952_v43  ;;  %vm4867_vm0 = vcmp.gt.f32.partialorder %v4835_v37, 0.0 }
 0x276   : > { %vm4870_vm1 = vcmp.gt.f32.partialorder %v4838_v34, 0.0  ;;  %v4902_v60 = vmul.f32 0.1, %v4838_v34  ;;  %v4933_v35 = vsel %vm4869_vm15, %v4837_v52, %v4901_v50 }
 0x277   : > { %vm4868_vm2 = vcmp.gt.f32.partialorder %v4836_v25, 0.0  ;;  %v4900_v59 = vmul.f32 0.1, %v4836_v25  ;;  %v6350_v61 = vpop.f32.mrb[24].mxu0  ;;  %v4931_v7 = vsel %vm4867_vm0, %v4835_v37, %v4899_v1 }
 0x278   : > { %v4934_v36 = vsel %vm4870_vm1, %v4838_v34, %v4902_v60  ;;  %v6414_v10 = vadd.f32 %v6350_v61, %v8732_v56  ;;  %v4745_v46 = vpop.f32.mrb[25].mxu0 }
 0x279   : > { %v4932_v22 = vsel %vm4868_vm2, %v4836_v25, %v4900_v59  ;;  %v6415_v8 = vadd.f32 %v4745_v46, %v8734_v55  ;;  %v6351_v28 = vpop.f32.mrb[26].mxu0  ;;  %v4954_v9 = vpack.c.bf16 %v4934_v36, %v4933_v35 }
 0x27a   : > { %v4841_v12 = vadd.f32 %v6414_v10, %v8751_v47  ;;  %v6416_v62 = vadd.f32 %v6351_v28, %v8736_v41  ;;  %v4748_v0 = vpop.f32.mrb[27].mxu0  ;;  %v4953_v49 = vpack.c.bf16 %v4932_v22, %v4931_v7 }
 0x27b   : > { %v4839_v53 = vadd.f32 %v6415_v8, %v8751_v47  ;;  %v6417_v63 = vadd.f32 %v4748_v0, %v8738_v48 }
 0x27c   : > { %v4905_v44 = vmul.f32 0.1, %v4841_v12  ;;  %v4842_v56 = vadd.f32 %v6416_v62, %v8751_v47  ;;  %6378 = vmatprep.mubr.msk.bf16.mxu1 %vm4967_vm13, %v4953_v49  ;;  %vm4873_vm3 = vcmp.gt.f32.partialorder %v4841_v12, 0.0 }
 0x27d   : > { %v4903_v13 = vmul.f32 0.1, %v4839_v53  ;;  %v4840_v55 = vadd.f32 %v6417_v63, %v8751_v47  ;;  %6379 = vmatmul.mubr.msk.bf16.gmra.mrb[52].mxu1 %vm4967_vm13, %v4954_v9  ;;  %vm4871_vm4 = vcmp.gt.f32.partialorder %v4839_v53, 0.0 }
 0x27e   : > { %vm4874_vm5 = vcmp.gt.f32.partialorder %v4842_v56, 0.0  ;;  %v4906_v41 = vmul.f32 0.1, %v4842_v56  ;;  %v4937_v20 = vsel %vm4873_vm3, %v4841_v12, %v4905_v44 }
 0x27f   : > { %vm4872_vm6 = vcmp.gt.f32.partialorder %v4840_v55, 0.0  ;;  %v4904_v33 = vmul.f32 0.1, %v4840_v55  ;;  %v6354_v42 = vpop.f32.mrb[28].mxu0  ;;  %v4935_v30 = vsel %vm4871_vm4, %v4839_v53, %v4903_v13 }
 0x280   : > { %v4938_v5 = vsel %vm4874_vm5, %v4842_v56, %v4906_v41  ;;  %v6418_v48 = vadd.f32 %v6354_v42, %v8740_v16  ;;  %v4761_v23 = vpop.f32.mrb[29].mxu0 }
 0x281   : > { %v4936_v32 = vsel %vm4872_vm6, %v4840_v55, %v4904_v33  ;;  %v6419_v19 = vadd.f32 %v4761_v23, %v8742_v24  ;;  %v6355_v57 = vpop.f32.mrb[30].mxu0  ;;  %v4956_v27 = vpack.c.bf16 %v4938_v5, %v4937_v20 }
 0x282   : > { %v4845_v58 = vadd.f32 %v6418_v48, %v8751_v47  ;;  %v6420_v17 = vadd.f32 %v6355_v57, %v8744_v6  ;;  %v4764_v54 = vpop.f32.mrb[31].mxu0  ;;  %v4955_v18 = vpack.c.bf16 %v4936_v32, %v4935_v30 }
 0x283   : > { %v4843_v45 = vadd.f32 %v6419_v19, %v8751_v47  ;;  %v6421_v51 = vadd.f32 %v4764_v54, %v8746_v26 }
 0x284   : > { %v4909_v4 = vmul.f32 0.1, %v4845_v58  ;;  %v4846_v16 = vadd.f32 %v6420_v17, %v8751_v47  ;;  %6382 = vmatprep.mubr.msk.bf16.mxu1 %vm4967_vm13, %v4955_v18  ;;  %vm4877_vm7 = vcmp.gt.f32.partialorder %v4845_v58, 0.0 }
 0x285   : > { %v4907_v15 = vmul.f32 0.1, %v4843_v45  ;;  %v4844_v24 = vadd.f32 %v6421_v51, %v8751_v47  ;;  %6383 = vmatmul.mubr.msk.bf16.gmra.mrb[56].mxu1 %vm4967_vm13, %v4956_v27  ;;  %vm4875_vm8 = vcmp.gt.f32.partialorder %v4843_v45, 0.0  ;;  %v8831_v47 = vld [vmem:[%s8960_s4] ss:$0 sm:$0xff] }
 0x286   : > { %vm4878_vm9 = vcmp.gt.f32.partialorder %v4846_v16, 0.0  ;;  %v4910_v6 = vmul.f32 0.1, %v4846_v16  ;;  %v4941_v3 = vsel %vm4877_vm7, %v4845_v58, %v4909_v4 }
 0x287   : > { %vm4876_vm10 = vcmp.gt.f32.partialorder %v4844_v24, 0.0  ;;  %v4908_v29 = vmul.f32 0.1, %v4844_v24  ;;  %v4939_v40 = vsel %vm4875_vm8, %v4843_v45, %v4907_v15 }
 0x288   : > { %v4942_v26 = vsel %vm4878_vm9, %v4846_v16, %v4910_v6 }
 0x289   : > { %v4940_v11 = vsel %vm4876_vm10, %v4844_v24, %v4908_v29  ;;  %v4958_v38 = vpack.c.bf16 %v4942_v26, %v4941_v3 }
 0x28a   : > { %v4957_v31 = vpack.c.bf16 %v4940_v11, %v4939_v40 }
 0x28c   : > { %6386 = vmatprep.mubr.msk.bf16.mxu1 %vm4967_vm13, %v4957_v31 }
 0x28d   : > { %6387 = vmatmul.mubr.msk.bf16.gmra.mrb[60].mxu1 %vm4967_vm13, %v4958_v38 }
 0x328   : > { %v6360_v43 = vpop.f32.mrb[32].mxu1 }
 0x329   : > { %v5063_v52 = vadd.f32 %v6360_v43, %v8831_v47  ;;  %v5054_v2 = vpop.f32.mrb[33].mxu1 }
 0x32a   : > { %v5055_v21 = vadd.f32 %v8831_v47, %v5054_v2  ;;  %v6361_v14 = vpop.f32.mrb[34].mxu1 }
 0x32b   : > { %5183 = vst [vmem:[%s8835_s8 + $0x10] sm:$0xff] %v5063_v52  ;;  %v5066_v37 = vadd.f32 %v6361_v14, %v8831_v47  ;;  %v5057_v39 = vpop.f32.mrb[35].mxu1 }
 0x32c   : > { %5181 = vst [vmem:[%s8835_s8] sm:$0xff] %v5055_v21  ;;  %v5058_v50 = vadd.f32 %v8831_v47, %v5057_v39 }
 0x32d   : > { %5184 = vst [vmem:[%s8835_s8 + $0x18] sm:$0xff] %v5066_v37 }
 0x32e   : > { %5182 = vst [vmem:[%s8835_s8 + $0x8] sm:$0xff] %v5058_v50 }
 0x330   : > { %v6364_v34 = vpop.f32.mrb[36].mxu1 }
 0x331   : > { %v5079_v1 = vadd.f32 %v6364_v34, %v8831_v47  ;;  %v5070_v25 = vpop.f32.mrb[37].mxu1 }
 0x332   : > { %v5071_v60 = vadd.f32 %v8831_v47, %v5070_v25  ;;  %v6365_v59 = vpop.f32.mrb[38].mxu1 }
 0x333   : > { %5187 = vst [vmem:[%s8835_s8 + $0x30] sm:$0xff] %v5079_v1  ;;  %v5082_v61 = vadd.f32 %v6365_v59, %v8831_v47  ;;  %v5073_v35 = vpop.f32.mrb[39].mxu1 }
 0x334   : > { %5185 = vst [vmem:[%s8835_s8 + $0x20] sm:$0xff] %v5071_v60  ;;  %v5074_v36 = vadd.f32 %v8831_v47, %v5073_v35 }
 0x335   : > { %5188 = vst [vmem:[%s8835_s8 + $0x38] sm:$0xff] %v5082_v61 }
 0x336   : > { %5186 = vst [vmem:[%s8835_s8 + $0x28] sm:$0xff] %v5074_v36 }
 0x338   : > { %v6368_v10 = vpop.f32.mrb[40].mxu1 }
 0x339   : > { %v5095_v46 = vadd.f32 %v6368_v10, %v8831_v47  ;;  %v5086_v7 = vpop.f32.mrb[41].mxu1 }
 0x33a   : > { %v5087_v22 = vadd.f32 %v8831_v47, %v5086_v7  ;;  %v6369_v8 = vpop.f32.mrb[42].mxu1 }
 0x33b   : > { %5191 = vst [vmem:[%s8835_s8 + $0x50] sm:$0xff] %v5095_v46  ;;  %v5098_v28 = vadd.f32 %v6369_v8, %v8831_v47  ;;  %v5089_v9 = vpop.f32.mrb[43].mxu1 }
 0x33c   : > { %5189 = vst [vmem:[%s8835_s8 + $0x40] sm:$0xff] %v5087_v22  ;;  %v5090_v12 = vadd.f32 %v8831_v47, %v5089_v9 }
 0x33d   : > { %5192 = vst [vmem:[%s8835_s8 + $0x58] sm:$0xff] %v5098_v28 }
 0x33e   : > { %5190 = vst [vmem:[%s8835_s8 + $0x48] sm:$0xff] %v5090_v12 }
 0x340   : > { %v6372_v62 = vpop.f32.mrb[44].mxu1 }
 0x341   : > { %v5111_v0 = vadd.f32 %v6372_v62, %v8831_v47  ;;  %v5102_v49 = vpop.f32.mrb[45].mxu1 }
 0x342   : > { %v5103_v53 = vadd.f32 %v8831_v47, %v5102_v49  ;;  %v6373_v63 = vpop.f32.mrb[46].mxu1 }
 0x343   : > { %5195 = vst [vmem:[%s8835_s8 + $0x70] sm:$0xff] %v5111_v0  ;;  %v5114_v44 = vadd.f32 %v6373_v63, %v8831_v47  ;;  %v5105_v56 = vpop.f32.mrb[47].mxu1 }
 0x344   : > { %5193 = vst [vmem:[%s8835_s8 + $0x60] sm:$0xff] %v5103_v53  ;;  %v5106_v13 = vadd.f32 %v8831_v47, %v5105_v56 }
 0x345   : > { %5196 = vst [vmem:[%s8835_s8 + $0x78] sm:$0xff] %v5114_v44 }
 0x346   : > { %5194 = vst [vmem:[%s8835_s8 + $0x68] sm:$0xff] %v5106_v13 }
 0x348   : > { %v6376_v55 = vpop.f32.mrb[48].mxu1 }
 0x349   : > { %v5127_v41 = vadd.f32 %v6376_v55, %v8831_v47  ;;  %v5118_v33 = vpop.f32.mrb[49].mxu1 }
 0x34a   : > { %v5119_v42 = vadd.f32 %v8831_v47, %v5118_v33  ;;  %v6377_v20 = vpop.f32.mrb[50].mxu1 }
 0x34b   : > { %5199 = vst [vmem:[%s8835_s8 + $0x90] sm:$0xff] %v5127_v41  ;;  %v5130_v5 = vadd.f32 %v6377_v20, %v8831_v47  ;;  %v5121_v48 = vpop.f32.mrb[51].mxu1 }
 0x34c   : > { %5197 = vst [vmem:[%s8835_s8 + $0x80] sm:$0xff] %v5119_v42  ;;  %v5122_v23 = vadd.f32 %v8831_v47, %v5121_v48 }
 0x34d   : > { %5200 = vst [vmem:[%s8835_s8 + $0x98] sm:$0xff] %v5130_v5 }
 0x34e   : > { %5198 = vst [vmem:[%s8835_s8 + $0x88] sm:$0xff] %v5122_v23 }
 0x350   : > { %v6380_v30 = vpop.f32.mrb[52].mxu1 }
 0x351   : > { %v5143_v32 = vadd.f32 %v6380_v30, %v8831_v47  ;;  %v5134_v19 = vpop.f32.mrb[53].mxu1 }
 0x352   : > { %v5135_v57 = vadd.f32 %v8831_v47, %v5134_v19  ;;  %v6381_v27 = vpop.f32.mrb[54].mxu1 }
 0x353   : > { %5203 = vst [vmem:[%s8835_s8 + $0xb0] sm:$0xff] %v5143_v32  ;;  %v5146_v58 = vadd.f32 %v6381_v27, %v8831_v47  ;;  %v5137_v17 = vpop.f32.mrb[55].mxu1 }
 0x354   : > { %5201 = vst [vmem:[%s8835_s8 + $0xa0] sm:$0xff] %v5135_v57  ;;  %v5138_v54 = vadd.f32 %v8831_v47, %v5137_v17 }
 0x355   : > { %5204 = vst [vmem:[%s8835_s8 + $0xb8] sm:$0xff] %v5146_v58 }
 0x356   : > { %5202 = vst [vmem:[%s8835_s8 + $0xa8] sm:$0xff] %v5138_v54 }
 0x358   : > { %v6384_v18 = vpop.f32.mrb[56].mxu1 }
 0x359   : > { %v5159_v45 = vadd.f32 %v6384_v18, %v8831_v47  ;;  %v5150_v51 = vpop.f32.mrb[57].mxu1 }
 0x35a   : > { %v5151_v4 = vadd.f32 %v8831_v47, %v5150_v51  ;;  %v6385_v16 = vpop.f32.mrb[58].mxu1 }
 0x35b   : > { %5207 = vst [vmem:[%s8835_s8 + $0xd0] sm:$0xff] %v5159_v45  ;;  %v5162_v15 = vadd.f32 %v6385_v16, %v8831_v47  ;;  %v5153_v24 = vpop.f32.mrb[59].mxu1 }
 0x35c   : > { %5205 = vst [vmem:[%s8835_s8 + $0xc0] sm:$0xff] %v5151_v4  ;;  %v5154_v6 = vadd.f32 %v8831_v47, %v5153_v24 }
 0x35d   : > { %5208 = vst [vmem:[%s8835_s8 + $0xd8] sm:$0xff] %v5162_v15 }
 0x35e   : > { %5206 = vst [vmem:[%s8835_s8 + $0xc8] sm:$0xff] %v5154_v6 }
 0x360   : > { %v6388_v29 = vpop.f32.mrb[60].mxu1 }
 0x361   : > { %v5175_v3 = vadd.f32 %v6388_v29, %v8831_v47  ;;  %v5166_v26 = vpop.f32.mrb[61].mxu1 }
 0x362   : > { %v5167_v40 = vadd.f32 %v8831_v47, %v5166_v26  ;;  %v6389_v11 = vpop.f32.mrb[62].mxu1 }
 0x363   : > { %5211 = vst [vmem:[%s8835_s8 + $0xf0] sm:$0xff] %v5175_v3  ;;  %v5178_v38 = vadd.f32 %v6389_v11, %v8831_v47  ;;  %v5169_v31 = vpop.f32.mrb[63].mxu1 }
 0x364   : > { %5209 = vst [vmem:[%s8835_s8 + $0xe0] sm:$0xff] %v5167_v40  ;;  %v5170_v43 = vadd.f32 %v8831_v47, %v5169_v31 }
 0x365   : > { %5212 = vst [vmem:[%s8835_s8 + $0xf8] sm:$0xff] %v5178_v38 }
 0x366   : > { %5210 = vst [vmem:[%s8835_s8 + $0xe8] sm:$0xff] %v5170_v43 }
 0x367   : > { %6827 = shalt.err (!%p6824_p5)
}
 0x368   : > { %s6828_s24 = scalar_lea.hbm %s8900_s13, 4096  ;;  %s6832_s29 = scalar_lea.hbm %s8961_s5, 8192 }
 0x369   : > { %p6829_p6 = scmp.ne.s32.totalorder %s8900_s13, %s6828_s24  ;;  %p6833_p10 = scmp.lt.u32.totalorder %s8900_s13, %s8961_s5 }
 0x36a   : > { %p6834_p11 = scmp.lt.u32.totalorder %s6832_s29, %s6828_s24  ;;  %p6836_p13 = scmp.lt.u32.totalorder %s6828_s24, %s8900_s13 }
 0x36b   : > { %p6830_p7 = pnand %p6829_p6, %p6967_p4 }
 0x36c   : > { %p6835_p12 = por %p6834_p11, %p6833_p10 }
 0x36d   : > { %p6831_p9 = pneg %p6830_p7 }
 0x36e   : > { %p6837_p0 = por %p6836_p13, %p6835_p12 }
 0x370   : > { %p6838_p1 = pnand %p6837_p0, %p6831_p9 }
 0x372   : > { %6841 = shalt.err (!%p6838_p1)
}
 0x373   : > { %s6895_s9 = smov 128   ;;  %s6896_s11 = smov 8  }
 0x374   : > { %6657 = dma.vmem_to_hbm [thread:$0]  (%p6967_p4), %s8902_s10, 4096, %s8900_s13, %s8910_s21, %s6895_s9, %s6895_s9, %s6896_s11  }
 0x375 PF: > { %p6663_p2 = scmp.ge.s32.totalorder %s6892_s23, 2  ;;  %s5245_s12 = sand.u32 1, %s6872_s18  }
 0x376   : > { %s5246_s14 = scalar_lea.sflag [#allocation3], %s5245_s12 }
 0x377   : > { %p6660_p3 = pnand %p6663_p2, %p6974_p8 }
 0x379   : > { %6867 = dma.done.wait (!%p6660_p3), %s5246_s14, 4096  }
 0x37a   : > { %6869 = vsyncadd (!%p6660_p3), %s5246_s14, 4294963200  ;;  %s18_s23 = sadd.s32 1, %s6892_s23   ;;  %s9044_s18 = smov %s6876_s19 }
 0x37b   : > { %p15_p5 = scmp.ge.s32.totalorder %s18_s23, 4   ;;  %s9045_s19 = smov %s6880_s20 }
 0x37c   : > { %s9046_s20 = smov %s6980_s6  ;;  %s9047_s21 = smov %s6888_s22 }
 0x37d   : > { %s9048_s22 = smov %s9050_s26  ;;  %17 = sbr.rel (!%p15_p5) target bundleno = 4 (0x4), region = 86 }
 0x384   :  { %5251 = vsyncpa [#allocation3], 1 }
 0x385   :  { %5253 = vsyncpa [#allocation3 + $0x1], 1 }

</bundles_post_ra>
